<compile_context>
chip_gen: v5e
topology: v5e:2x2
jax: 0.10.0
libtpu: 0.0.40
codegen_flags: <defaults>
</compile_context>

<pallas_src>
import numpy as np

import jax
import jax.numpy as jnp
from jax.experimental import pallas as pl
from jax.experimental.pallas import tpu as pltpu  # noqa: F401  (TPU backend)

BN_EPS = 1e-5


# ----------------------------- Pallas kernel -------------------------------- #
def _simplenet_fused_kernel(x_ref,
                            r1_ref, b1w_ref, b1b_ref,
                            r2_ref, b2w_ref, b2b_ref,
                            r3_ref, b3w_ref, b3b_ref,
                            wfc_ref, b4_ref,
                            o_ref):
    """Whole SimpleNet forward; all intermediates stay in VMEM/vregs."""

    def conv_bn_relu(act, r_ref, bw_ref, bias_ref):
        # act: (rows_in, W_in*C_in) -> (rows_out, W_out*C_out)
        acc = None
        for kh in range(3):                      # static unroll, 3 taps in H
            rows = jnp.dot(r_ref[kh], act, preferred_element_type=jnp.float32)
            part = jnp.dot(rows, bw_ref[kh], preferred_element_type=jnp.float32)
            acc = part if acc is None else acc + part
        return jnp.maximum(acc + bias_ref[...], 0.0)

    a0 = x_ref[...]                              # (N*32, 32*3)
    a1 = conv_bn_relu(a0, r1_ref, b1w_ref, b1b_ref)   # (N*16, 16*32)
    a2 = conv_bn_relu(a1, r2_ref, b2w_ref, b2b_ref)   # (N*8,  8*32)
    a3 = conv_bn_relu(a2, r3_ref, b3w_ref, b3b_ref)   # (4*N,  4*64)  rows ordered (i, n)

    # FC (fc1, no bias) + BN4 scale folded into wfc; bias added here. No ReLU.
    n_b = o_ref.shape[0]
    acc = None
    for i in range(4):                           # 4 spatial rows of the 4x4 feature map
        part = jnp.dot(a3[i * n_b:(i + 1) * n_b, :], wfc_ref[i],
                       preferred_element_type=jnp.float32)
        acc = part if acc is None else acc + part
    o_ref[...] = (acc + b4_ref[...]).astype(o_ref.dtype)


def simplenet_fused(x2d, consts, n_batch):
    (r1, b1w, b1b, r2, b2w, b2b, r3, b3w, b3b, wfc, b4) = consts
    args = (x2d, r1, b1w, b1b, r2, b2w, b2b, r3, b3w, b3b, wfc, b4)

    def full_spec(a):
        nd = a.ndim
        return pl.BlockSpec(a.shape, lambda i, nd=nd: (0,) * nd)

    return pl.pallas_call(
        _simplenet_fused_kernel,
        out_shape=jax.ShapeDtypeStruct((n_batch, b4.shape[1]), jnp.float32),
        grid=(1,),
        in_specs=[full_spec(a) for a in args],
        out_specs=pl.BlockSpec((n_batch, b4.shape[1]), lambda i: (0, 0)),
    )(*args)


# ----------------------- constant-folding preparation ----------------------- #
def fold_bn(gamma, beta, mean, var, eps=BN_EPS):
    scale = gamma / jnp.sqrt(var + eps)
    bias = beta - mean * scale
    return scale, bias


def _row_select(n_batch, h_in, h_out, out_order="nh"):
    """(3, rows_out, rows_in) 0/1 matrices: output row picks input row 2i-1+kh (0 if padded)."""
    r = np.zeros((3, n_batch * h_out, n_batch * h_in), np.float32)
    for kh in range(3):
        for n in range(n_batch):
            for i in range(h_out):
                h = 2 * i - 1 + kh
                if 0 <= h < h_in:
                    ro = n * h_out + i if out_order == "nh" else i * n_batch + n
                    r[kh, ro, n * h_in + h] = 1.0
    return jnp.asarray(r)


def _col_weight(w_oihw_scaled, w_in, w_out):
    """(3, W_in*Cin, W_out*Cout): folds kw taps, stride-2 W gather, zero pad and BN scale."""
    cout, cin, _, _ = w_oihw_scaled.shape
    sel = np.zeros((w_in, w_out, 3), np.float32)
    for j in range(w_out):
        for kw in range(3):
            w = 2 * j - 1 + kw
            if 0 <= w < w_in:
                sel[w, j, kw] = 1.0
    sel = jnp.asarray(sel)
    wt = jnp.transpose(w_oihw_scaled, (2, 3, 1, 0))          # (kh, kw, cin, cout)
    b = jnp.einsum("wjk,hkco->hwcjo", sel, wt)               # (3, w_in, cin, w_out, cout)
    return b.reshape(3, w_in * cin, w_out * cout)


def prepare_constants(params, n_batch):
    """One-time prep: fold BN into weights/biases and build the structured-conv matrices."""
    s1, bb1 = fold_bn(*params["bn1"])
    s2, bb2 = fold_bn(*params["bn2"])
    s3, bb3 = fold_bn(*params["bn3"])
    s4, bb4 = fold_bn(*params["bn4"])

    w1 = params["conv1_w"] * s1[:, None, None, None]
    w2 = params["conv2_w"] * s2[:, None, None, None]
    w3 = params["conv3_w"] * s3[:, None, None, None]

    r1, b1w = _row_select(n_batch, 32, 16), _col_weight(w1, 32, 16)   # (3,32N,64N), (3,96,512)
    b1b = jnp.tile(bb1, 16).reshape(1, 16 * 32)

    r2, b2w = _row_select(n_batch, 16, 8), _col_weight(w2, 16, 8)     # (3,16N,32N), (3,512,256)
    b2b = jnp.tile(bb2, 8).reshape(1, 8 * 32)

    r3 = _row_select(n_batch, 8, 4, out_order="hn")                   # conv3 out rows = (i, n)
    b3w = _col_weight(w3, 8, 4)                                       # (3,256,256)
    b3b = jnp.tile(bb3, 4).reshape(1, 4 * 64)

    # fc1 weight (10, 64*4*4) indexed by NCHW-flatten (c, i, j); fold BN4 scale, permute to
    # per-spatial-row slices indexed by (j, c) to match the conv3 output column order.
    wfc = params["fc1_w"] * s4[:, None]
    wfc = wfc.reshape(10, 64, 4, 4)                                   # (k, c, i, j)
    wfc = jnp.transpose(wfc, (2, 3, 1, 0)).reshape(4, 4 * 64, 10)     # (i, (j,c), k)
    b4 = bb4.reshape(1, 10)

    return (r1, b1w, b1b, r2, b2w, b2b, r3, b3w, b3b, wfc, b4)


# ------------------------------ forward pass --------------------------------- #
def simplenet_forward(x_nchw, consts):
    n, c, h, w = x_nchw.shape
    # Only wrapper-side data op: tiny NCHW -> (N*H, W*C) relayout of the 12 KB input.
    x2d = jnp.transpose(x_nchw, (0, 2, 3, 1)).reshape(n * h, w * c).astype(jnp.float32)
    return simplenet_fused(x2d, consts, n)


# ------------------------- deterministic params ------------------------------ #
def make_params(key):
    ks = jax.random.split(key, 16)

    def bn(k, ch):
        kg, kb, km, kv = jax.random.split(k, 4)
        gamma = 1.0 + 0.1 * jax.random.normal(kg, (ch,), jnp.float32)
        beta = 0.1 * jax.random.normal(kb, (ch,), jnp.float32)
        mean = 0.1 * jax.random.normal(km, (ch,), jnp.float32)
        var = 1.0 + 0.1 * jax.random.uniform(kv, (ch,), jnp.float32)
        return gamma, beta, mean, var

    return {
        "conv1_w": 0.1 * jax.random.normal(ks[0], (32, 3, 3, 3), jnp.float32),
        "bn1": bn(ks[1], 32),
        "conv2_w": 0.1 * jax.random.normal(ks[2], (32, 32, 3, 3), jnp.float32),
        "bn2": bn(ks[3], 32),
        "conv3_w": 0.1 * jax.random.normal(ks[4], (64, 32, 3, 3), jnp.float32),
        "bn3": bn(ks[5], 64),
        "fc1_w": 0.1 * jax.random.normal(ks[6], (10, 64 * 4 * 4), jnp.float32),
        "bn4": bn(ks[7], 10),
    }


# ------------------------------ reference ------------------------------------ #
def reference_forward(x_nchw, params):
    def conv(x, w):
        return jax.lax.conv_general_dilated(
            x, w, window_strides=(2, 2), padding=((1, 1), (1, 1)),
            dimension_numbers=("NCHW", "OIHW", "NCHW"))

    def bn(x, p, axis):
        gamma, beta, mean, var = p
        shape = [1] * x.ndim
        shape[axis] = -1
        return (x - mean.reshape(shape)) / jnp.sqrt(var.reshape(shape) + BN_EPS) \
            * gamma.reshape(shape) + beta.reshape(shape)

    x = jax.nn.relu(bn(conv(x_nchw, params["conv1_w"]), params["bn1"], 1))
    x = jax.nn.relu(bn(conv(x, params["conv2_w"]), params["bn2"], 1))
    x = jax.nn.relu(bn(conv(x, params["conv3_w"]), params["bn3"], 1))
    x = x.reshape(x.shape[0], -1)
    x = x @ params["fc1_w"].T
    return bn(x, params["bn4"], 1)


# --------------------------------- main --------------------------------------- #
if __name__ == "__main__":
    key = jax.random.PRNGKey(0)
    k_x, k_p = jax.random.split(key)
    # Shapes implied by the module: 3x32x32 input -> 16 -> 8 -> 4 spatial before fc1.
    x = jax.random.normal(k_x, (2, 3, 32, 32), jnp.float32)
    params = make_params(k_p)

    consts = prepare_constants(params, n_batch=x.shape[0])   # one-time, outside hot path
    fwd = jax.jit(simplenet_forward)

    out = jax.block_until_ready(fwd(x, consts))
    assert out.shape == (2, 10), out.shape

    ref = jax.block_until_ready(reference_forward(x, params))
    assert jnp.allclose(out, ref, atol=5e-4, rtol=5e-4), float(jnp.max(jnp.abs(out - ref)))

    print("KERNEL_OK")
</pallas_src>

<mosaic_0001>
module attributes {stable_mosaic.version = 11 : i64} {
  func.func @_simplenet_fused_kernel(%arg0: i32, %arg1: memref<64x96xf32, #tpu.memory_space<vmem>>, %arg2: memref<3x32x64xf32, #tpu.memory_space<vmem>>, %arg3: memref<3x96x512xf32, #tpu.memory_space<vmem>>, %arg4: memref<1x512xf32, #tpu.memory_space<vmem>>, %arg5: memref<3x16x32xf32, #tpu.memory_space<vmem>>, %arg6: memref<3x512x256xf32, #tpu.memory_space<vmem>>, %arg7: memref<1x256xf32, #tpu.memory_space<vmem>>, %arg8: memref<3x8x16xf32, #tpu.memory_space<vmem>>, %arg9: memref<3x256x256xf32, #tpu.memory_space<vmem>>, %arg10: memref<1x256xf32, #tpu.memory_space<vmem>>, %arg11: memref<4x256x10xf32, #tpu.memory_space<vmem>>, %arg12: memref<1x10xf32, #tpu.memory_space<vmem>>, %arg13: memref<2x10xf32, #tpu.memory_space<vmem>>) attributes {dimension_semantics = [#tpu.dimension_semantics<arbitrary>], iteration_bounds = array<i64: 1>, scalar_prefetch = 0 : i64, scratch_operands = 0 : i64, tpu.core_type = #tpu.core_type<tc>, window_params = [{pipeline_mode = #tpu.pipeline_mode<synchronous>, transform_indices = @transform_0, window_bounds = array<i64: 64, 96>}, {pipeline_mode = #tpu.pipeline_mode<synchronous>, transform_indices = @transform_1, window_bounds = array<i64: 3, 32, 64>}, {pipeline_mode = #tpu.pipeline_mode<synchronous>, transform_indices = @transform_2, window_bounds = array<i64: 3, 96, 512>}, {pipeline_mode = #tpu.pipeline_mode<synchronous>, transform_indices = @transform_3, window_bounds = array<i64: 1, 512>}, {pipeline_mode = #tpu.pipeline_mode<synchronous>, transform_indices = @transform_4, window_bounds = array<i64: 3, 16, 32>}, {pipeline_mode = #tpu.pipeline_mode<synchronous>, transform_indices = @transform_5, window_bounds = array<i64: 3, 512, 256>}, {pipeline_mode = #tpu.pipeline_mode<synchronous>, transform_indices = @transform_6, window_bounds = array<i64: 1, 256>}, {pipeline_mode = #tpu.pipeline_mode<synchronous>, transform_indices = @transform_7, window_bounds = array<i64: 3, 8, 16>}, {pipeline_mode = #tpu.pipeline_mode<synchronous>, transform_indices = @transform_8, window_bounds = array<i64: 3, 256, 256>}, {pipeline_mode = #tpu.pipeline_mode<synchronous>, transform_indices = @transform_9, window_bounds = array<i64: 1, 256>}, {pipeline_mode = #tpu.pipeline_mode<synchronous>, transform_indices = @transform_10, window_bounds = array<i64: 4, 256, 10>}, {pipeline_mode = #tpu.pipeline_mode<synchronous>, transform_indices = @transform_11, window_bounds = array<i64: 1, 10>}, {pipeline_mode = #tpu.pipeline_mode<synchronous>, transform_indices = @transform_12, window_bounds = array<i64: 2, 10>}]} {
    %c0 = arith.constant 0 : index
    %c0_0 = arith.constant 0 : index
    %0 = vector.load %arg1[%c0, %c0_0] : memref<64x96xf32, #tpu.memory_space<vmem>>, vector<64x96xf32>
    %c0_1 = arith.constant 0 : index
    %c0_2 = arith.constant 0 : index
    %c0_3 = arith.constant 0 : index
    %1 = vector.load %arg2[%c0_1, %c0_2, %c0_3] : memref<3x32x64xf32, #tpu.memory_space<vmem>>, vector<1x32x64xf32>
    %2 = vector.shape_cast %1 : vector<1x32x64xf32> to vector<32x64xf32>
    %cst = arith.constant dense<0.000000e+00> : vector<32x96xf32>
    %3 = tpu.matmul %2, %0, %cst {dimension_numbers = #tpu.dot_dimension_numbers<[1], [0], [0], [1], [0, 0, 1, 1], [], []>} : vector<32x64xf32>, vector<64x96xf32>, vector<32x96xf32> -> vector<32x96xf32>
    %c0_4 = arith.constant 0 : index
    %c0_5 = arith.constant 0 : index
    %c0_6 = arith.constant 0 : index
    %4 = vector.load %arg3[%c0_4, %c0_5, %c0_6] : memref<3x96x512xf32, #tpu.memory_space<vmem>>, vector<1x96x512xf32>
    %5 = vector.shape_cast %4 : vector<1x96x512xf32> to vector<96x512xf32>
    %cst_7 = arith.constant dense<0.000000e+00> : vector<32x512xf32>
    %6 = tpu.matmul %3, %5, %cst_7 {dimension_numbers = #tpu.dot_dimension_numbers<[1], [0], [0], [1], [0, 0, 1, 1], [], []>} : vector<32x96xf32>, vector<96x512xf32>, vector<32x512xf32> -> vector<32x512xf32>
    %c1 = arith.constant 1 : index
    %c0_8 = arith.constant 0 : index
    %c0_9 = arith.constant 0 : index
    %7 = vector.load %arg2[%c1, %c0_8, %c0_9] : memref<3x32x64xf32, #tpu.memory_space<vmem>>, vector<1x32x64xf32>
    %8 = vector.shape_cast %7 : vector<1x32x64xf32> to vector<32x64xf32>
    %cst_10 = arith.constant dense<0.000000e+00> : vector<32x96xf32>
    %9 = tpu.matmul %8, %0, %cst_10 {dimension_numbers = #tpu.dot_dimension_numbers<[1], [0], [0], [1], [0, 0, 1, 1], [], []>} : vector<32x64xf32>, vector<64x96xf32>, vector<32x96xf32> -> vector<32x96xf32>
    %c1_11 = arith.constant 1 : index
    %c0_12 = arith.constant 0 : index
    %c0_13 = arith.constant 0 : index
    %10 = vector.load %arg3[%c1_11, %c0_12, %c0_13] : memref<3x96x512xf32, #tpu.memory_space<vmem>>, vector<1x96x512xf32>
    %11 = vector.shape_cast %10 : vector<1x96x512xf32> to vector<96x512xf32>
    %cst_14 = arith.constant dense<0.000000e+00> : vector<32x512xf32>
    %12 = tpu.matmul %9, %11, %cst_14 {dimension_numbers = #tpu.dot_dimension_numbers<[1], [0], [0], [1], [0, 0, 1, 1], [], []>} : vector<32x96xf32>, vector<96x512xf32>, vector<32x512xf32> -> vector<32x512xf32>
    %13 = arith.addf %6, %12 : vector<32x512xf32>
    %c2 = arith.constant 2 : index
    %c0_15 = arith.constant 0 : index
    %c0_16 = arith.constant 0 : index
    %14 = vector.load %arg2[%c2, %c0_15, %c0_16] : memref<3x32x64xf32, #tpu.memory_space<vmem>>, vector<1x32x64xf32>
    %15 = vector.shape_cast %14 : vector<1x32x64xf32> to vector<32x64xf32>
    %cst_17 = arith.constant dense<0.000000e+00> : vector<32x96xf32>
    %16 = tpu.matmul %15, %0, %cst_17 {dimension_numbers = #tpu.dot_dimension_numbers<[1], [0], [0], [1], [0, 0, 1, 1], [], []>} : vector<32x64xf32>, vector<64x96xf32>, vector<32x96xf32> -> vector<32x96xf32>
    %c2_18 = arith.constant 2 : index
    %c0_19 = arith.constant 0 : index
    %c0_20 = arith.constant 0 : index
    %17 = vector.load %arg3[%c2_18, %c0_19, %c0_20] : memref<3x96x512xf32, #tpu.memory_space<vmem>>, vector<1x96x512xf32>
    %18 = vector.shape_cast %17 : vector<1x96x512xf32> to vector<96x512xf32>
    %cst_21 = arith.constant dense<0.000000e+00> : vector<32x512xf32>
    %19 = tpu.matmul %16, %18, %cst_21 {dimension_numbers = #tpu.dot_dimension_numbers<[1], [0], [0], [1], [0, 0, 1, 1], [], []>} : vector<32x96xf32>, vector<96x512xf32>, vector<32x512xf32> -> vector<32x512xf32>
    %20 = arith.addf %13, %19 : vector<32x512xf32>
    %c0_22 = arith.constant 0 : index
    %c0_23 = arith.constant 0 : index
    %21 = vector.load %arg4[%c0_22, %c0_23] : memref<1x512xf32, #tpu.memory_space<vmem>>, vector<1x512xf32>
    %22 = vector.broadcast %21 : vector<1x512xf32> to vector<32x512xf32>
    %23 = arith.addf %20, %22 : vector<32x512xf32>
    %cst_24 = arith.constant 0.000000e+00 : f32
    %24 = vector.broadcast %cst_24 : f32 to vector<32x512xf32>
    %25 = arith.maximumf %23, %24 : vector<32x512xf32>
    %c0_25 = arith.constant 0 : index
    %c0_26 = arith.constant 0 : index
    %c0_27 = arith.constant 0 : index
    %26 = vector.load %arg5[%c0_25, %c0_26, %c0_27] : memref<3x16x32xf32, #tpu.memory_space<vmem>>, vector<1x16x32xf32>
    %27 = vector.shape_cast %26 : vector<1x16x32xf32> to vector<16x32xf32>
    %cst_28 = arith.constant dense<0.000000e+00> : vector<16x512xf32>
    %28 = tpu.matmul %27, %25, %cst_28 {dimension_numbers = #tpu.dot_dimension_numbers<[1], [0], [0], [1], [0, 0, 1, 1], [], []>} : vector<16x32xf32>, vector<32x512xf32>, vector<16x512xf32> -> vector<16x512xf32>
    %c0_29 = arith.constant 0 : index
    %c0_30 = arith.constant 0 : index
    %c0_31 = arith.constant 0 : index
    %29 = vector.load %arg6[%c0_29, %c0_30, %c0_31] : memref<3x512x256xf32, #tpu.memory_space<vmem>>, vector<1x512x256xf32>
    %30 = vector.shape_cast %29 : vector<1x512x256xf32> to vector<512x256xf32>
    %cst_32 = arith.constant dense<0.000000e+00> : vector<16x256xf32>
    %31 = tpu.matmul %28, %30, %cst_32 {dimension_numbers = #tpu.dot_dimension_numbers<[1], [0], [0], [1], [0, 0, 1, 1], [], []>} : vector<16x512xf32>, vector<512x256xf32>, vector<16x256xf32> -> vector<16x256xf32>
    %c1_33 = arith.constant 1 : index
    %c0_34 = arith.constant 0 : index
    %c0_35 = arith.constant 0 : index
    %32 = vector.load %arg5[%c1_33, %c0_34, %c0_35] : memref<3x16x32xf32, #tpu.memory_space<vmem>>, vector<1x16x32xf32>
    %33 = vector.shape_cast %32 : vector<1x16x32xf32> to vector<16x32xf32>
    %cst_36 = arith.constant dense<0.000000e+00> : vector<16x512xf32>
    %34 = tpu.matmul %33, %25, %cst_36 {dimension_numbers = #tpu.dot_dimension_numbers<[1], [0], [0], [1], [0, 0, 1, 1], [], []>} : vector<16x32xf32>, vector<32x512xf32>, vector<16x512xf32> -> vector<16x512xf32>
    %c1_37 = arith.constant 1 : index
    %c0_38 = arith.constant 0 : index
    %c0_39 = arith.constant 0 : index
    %35 = vector.load %arg6[%c1_37, %c0_38, %c0_39] : memref<3x512x256xf32, #tpu.memory_space<vmem>>, vector<1x512x256xf32>
    %36 = vector.shape_cast %35 : vector<1x512x256xf32> to vector<512x256xf32>
    %cst_40 = arith.constant dense<0.000000e+00> : vector<16x256xf32>
    %37 = tpu.matmul %34, %36, %cst_40 {dimension_numbers = #tpu.dot_dimension_numbers<[1], [0], [0], [1], [0, 0, 1, 1], [], []>} : vector<16x512xf32>, vector<512x256xf32>, vector<16x256xf32> -> vector<16x256xf32>
    %38 = arith.addf %31, %37 : vector<16x256xf32>
    %c2_41 = arith.constant 2 : index
    %c0_42 = arith.constant 0 : index
    %c0_43 = arith.constant 0 : index
    %39 = vector.load %arg5[%c2_41, %c0_42, %c0_43] : memref<3x16x32xf32, #tpu.memory_space<vmem>>, vector<1x16x32xf32>
    %40 = vector.shape_cast %39 : vector<1x16x32xf32> to vector<16x32xf32>
    %cst_44 = arith.constant dense<0.000000e+00> : vector<16x512xf32>
    %41 = tpu.matmul %40, %25, %cst_44 {dimension_numbers = #tpu.dot_dimension_numbers<[1], [0], [0], [1], [0, 0, 1, 1], [], []>} : vector<16x32xf32>, vector<32x512xf32>, vector<16x512xf32> -> vector<16x512xf32>
    %c2_45 = arith.constant 2 : index
    %c0_46 = arith.constant 0 : index
    %c0_47 = arith.constant 0 : index
    %42 = vector.load %arg6[%c2_45, %c0_46, %c0_47] : memref<3x512x256xf32, #tpu.memory_space<vmem>>, vector<1x512x256xf32>
    %43 = vector.shape_cast %42 : vector<1x512x256xf32> to vector<512x256xf32>
    %cst_48 = arith.constant dense<0.000000e+00> : vector<16x256xf32>
    %44 = tpu.matmul %41, %43, %cst_48 {dimension_numbers = #tpu.dot_dimension_numbers<[1], [0], [0], [1], [0, 0, 1, 1], [], []>} : vector<16x512xf32>, vector<512x256xf32>, vector<16x256xf32> -> vector<16x256xf32>
    %45 = arith.addf %38, %44 : vector<16x256xf32>
    %c0_49 = arith.constant 0 : index
    %c0_50 = arith.constant 0 : index
    %46 = vector.load %arg7[%c0_49, %c0_50] : memref<1x256xf32, #tpu.memory_space<vmem>>, vector<1x256xf32>
    %47 = vector.broadcast %46 : vector<1x256xf32> to vector<16x256xf32>
    %48 = arith.addf %45, %47 : vector<16x256xf32>
    %cst_51 = arith.constant 0.000000e+00 : f32
    %49 = vector.broadcast %cst_51 : f32 to vector<16x256xf32>
    %50 = arith.maximumf %48, %49 : vector<16x256xf32>
    %c0_52 = arith.constant 0 : index
    %c0_53 = arith.constant 0 : index
    %c0_54 = arith.constant 0 : index
    %51 = vector.load %arg8[%c0_52, %c0_53, %c0_54] : memref<3x8x16xf32, #tpu.memory_space<vmem>>, vector<1x8x16xf32>
    %52 = vector.shape_cast %51 : vector<1x8x16xf32> to vector<8x16xf32>
    %cst_55 = arith.constant dense<0.000000e+00> : vector<8x256xf32>
    %53 = tpu.matmul %52, %50, %cst_55 {dimension_numbers = #tpu.dot_dimension_numbers<[1], [0], [0], [1], [0, 0, 1, 1], [], []>} : vector<8x16xf32>, vector<16x256xf32>, vector<8x256xf32> -> vector<8x256xf32>
    %c0_56 = arith.constant 0 : index
    %c0_57 = arith.constant 0 : index
    %c0_58 = arith.constant 0 : index
    %54 = vector.load %arg9[%c0_56, %c0_57, %c0_58] : memref<3x256x256xf32, #tpu.memory_space<vmem>>, vector<1x256x256xf32>
    %55 = vector.shape_cast %54 : vector<1x256x256xf32> to vector<256x256xf32>
    %cst_59 = arith.constant dense<0.000000e+00> : vector<8x256xf32>
    %56 = tpu.matmul %53, %55, %cst_59 {dimension_numbers = #tpu.dot_dimension_numbers<[1], [0], [0], [1], [0, 0, 1, 1], [], []>} : vector<8x256xf32>, vector<256x256xf32>, vector<8x256xf32> -> vector<8x256xf32>
    %c1_60 = arith.constant 1 : index
    %c0_61 = arith.constant 0 : index
    %c0_62 = arith.constant 0 : index
    %57 = vector.load %arg8[%c1_60, %c0_61, %c0_62] : memref<3x8x16xf32, #tpu.memory_space<vmem>>, vector<1x8x16xf32>
    %58 = vector.shape_cast %57 : vector<1x8x16xf32> to vector<8x16xf32>
    %cst_63 = arith.constant dense<0.000000e+00> : vector<8x256xf32>
    %59 = tpu.matmul %58, %50, %cst_63 {dimension_numbers = #tpu.dot_dimension_numbers<[1], [0], [0], [1], [0, 0, 1, 1], [], []>} : vector<8x16xf32>, vector<16x256xf32>, vector<8x256xf32> -> vector<8x256xf32>
    %c1_64 = arith.constant 1 : index
    %c0_65 = arith.constant 0 : index
    %c0_66 = arith.constant 0 : index
    %60 = vector.load %arg9[%c1_64, %c0_65, %c0_66] : memref<3x256x256xf32, #tpu.memory_space<vmem>>, vector<1x256x256xf32>
    %61 = vector.shape_cast %60 : vector<1x256x256xf32> to vector<256x256xf32>
    %cst_67 = arith.constant dense<0.000000e+00> : vector<8x256xf32>
    %62 = tpu.matmul %59, %61, %cst_67 {dimension_numbers = #tpu.dot_dimension_numbers<[1], [0], [0], [1], [0, 0, 1, 1], [], []>} : vector<8x256xf32>, vector<256x256xf32>, vector<8x256xf32> -> vector<8x256xf32>
    %63 = arith.addf %56, %62 : vector<8x256xf32>
    %c2_68 = arith.constant 2 : index
    %c0_69 = arith.constant 0 : index
    %c0_70 = arith.constant 0 : index
    %64 = vector.load %arg8[%c2_68, %c0_69, %c0_70] : memref<3x8x16xf32, #tpu.memory_space<vmem>>, vector<1x8x16xf32>
    %65 = vector.shape_cast %64 : vector<1x8x16xf32> to vector<8x16xf32>
    %cst_71 = arith.constant dense<0.000000e+00> : vector<8x256xf32>
    %66 = tpu.matmul %65, %50, %cst_71 {dimension_numbers = #tpu.dot_dimension_numbers<[1], [0], [0], [1], [0, 0, 1, 1], [], []>} : vector<8x16xf32>, vector<16x256xf32>, vector<8x256xf32> -> vector<8x256xf32>
    %c2_72 = arith.constant 2 : index
    %c0_73 = arith.constant 0 : index
    %c0_74 = arith.constant 0 : index
    %67 = vector.load %arg9[%c2_72, %c0_73, %c0_74] : memref<3x256x256xf32, #tpu.memory_space<vmem>>, vector<1x256x256xf32>
    %68 = vector.shape_cast %67 : vector<1x256x256xf32> to vector<256x256xf32>
    %cst_75 = arith.constant dense<0.000000e+00> : vector<8x256xf32>
    %69 = tpu.matmul %66, %68, %cst_75 {dimension_numbers = #tpu.dot_dimension_numbers<[1], [0], [0], [1], [0, 0, 1, 1], [], []>} : vector<8x256xf32>, vector<256x256xf32>, vector<8x256xf32> -> vector<8x256xf32>
    %70 = arith.addf %63, %69 : vector<8x256xf32>
    %c0_76 = arith.constant 0 : index
    %c0_77 = arith.constant 0 : index
    %71 = vector.load %arg10[%c0_76, %c0_77] : memref<1x256xf32, #tpu.memory_space<vmem>>, vector<1x256xf32>
    %72 = vector.broadcast %71 : vector<1x256xf32> to vector<8x256xf32>
    %73 = arith.addf %70, %72 : vector<8x256xf32>
    %cst_78 = arith.constant 0.000000e+00 : f32
    %74 = vector.broadcast %cst_78 : f32 to vector<8x256xf32>
    %75 = arith.maximumf %73, %74 : vector<8x256xf32>
    %76 = vector.extract_strided_slice %75 {offsets = [0, 0], sizes = [2, 256], strides = [1, 1]} : vector<8x256xf32> to vector<2x256xf32>
    %c0_79 = arith.constant 0 : index
    %c0_80 = arith.constant 0 : index
    %c0_81 = arith.constant 0 : index
    %77 = vector.load %arg11[%c0_79, %c0_80, %c0_81] : memref<4x256x10xf32, #tpu.memory_space<vmem>>, vector<1x256x10xf32>
    %78 = vector.shape_cast %77 : vector<1x256x10xf32> to vector<256x10xf32>
    %cst_82 = arith.constant dense<0.000000e+00> : vector<2x10xf32>
    %79 = tpu.matmul %76, %78, %cst_82 {dimension_numbers = #tpu.dot_dimension_numbers<[1], [0], [0], [1], [0, 0, 1, 1], [], []>} : vector<2x256xf32>, vector<256x10xf32>, vector<2x10xf32> -> vector<2x10xf32>
    %80 = vector.extract_strided_slice %75 {offsets = [2, 0], sizes = [2, 256], strides = [1, 1]} : vector<8x256xf32> to vector<2x256xf32>
    %c1_83 = arith.constant 1 : index
    %c0_84 = arith.constant 0 : index
    %c0_85 = arith.constant 0 : index
    %81 = vector.load %arg11[%c1_83, %c0_84, %c0_85] : memref<4x256x10xf32, #tpu.memory_space<vmem>>, vector<1x256x10xf32>
    %82 = vector.shape_cast %81 : vector<1x256x10xf32> to vector<256x10xf32>
    %cst_86 = arith.constant dense<0.000000e+00> : vector<2x10xf32>
    %83 = tpu.matmul %80, %82, %cst_86 {dimension_numbers = #tpu.dot_dimension_numbers<[1], [0], [0], [1], [0, 0, 1, 1], [], []>} : vector<2x256xf32>, vector<256x10xf32>, vector<2x10xf32> -> vector<2x10xf32>
    %84 = arith.addf %79, %83 : vector<2x10xf32>
    %85 = vector.extract_strided_slice %75 {offsets = [4, 0], sizes = [2, 256], strides = [1, 1]} : vector<8x256xf32> to vector<2x256xf32>
    %c2_87 = arith.constant 2 : index
    %c0_88 = arith.constant 0 : index
    %c0_89 = arith.constant 0 : index
    %86 = vector.load %arg11[%c2_87, %c0_88, %c0_89] : memref<4x256x10xf32, #tpu.memory_space<vmem>>, vector<1x256x10xf32>
    %87 = vector.shape_cast %86 : vector<1x256x10xf32> to vector<256x10xf32>
    %cst_90 = arith.constant dense<0.000000e+00> : vector<2x10xf32>
    %88 = tpu.matmul %85, %87, %cst_90 {dimension_numbers = #tpu.dot_dimension_numbers<[1], [0], [0], [1], [0, 0, 1, 1], [], []>} : vector<2x256xf32>, vector<256x10xf32>, vector<2x10xf32> -> vector<2x10xf32>
    %89 = arith.addf %84, %88 : vector<2x10xf32>
    %90 = vector.extract_strided_slice %75 {offsets = [6, 0], sizes = [2, 256], strides = [1, 1]} : vector<8x256xf32> to vector<2x256xf32>
    %c3 = arith.constant 3 : index
    %c0_91 = arith.constant 0 : index
    %c0_92 = arith.constant 0 : index
    %91 = vector.load %arg11[%c3, %c0_91, %c0_92] : memref<4x256x10xf32, #tpu.memory_space<vmem>>, vector<1x256x10xf32>
    %92 = vector.shape_cast %91 : vector<1x256x10xf32> to vector<256x10xf32>
    %cst_93 = arith.constant dense<0.000000e+00> : vector<2x10xf32>
    %93 = tpu.matmul %90, %92, %cst_93 {dimension_numbers = #tpu.dot_dimension_numbers<[1], [0], [0], [1], [0, 0, 1, 1], [], []>} : vector<2x256xf32>, vector<256x10xf32>, vector<2x10xf32> -> vector<2x10xf32>
    %94 = arith.addf %89, %93 : vector<2x10xf32>
    %c0_94 = arith.constant 0 : index
    %c0_95 = arith.constant 0 : index
    %95 = vector.load %arg12[%c0_94, %c0_95] : memref<1x10xf32, #tpu.memory_space<vmem>>, vector<1x10xf32>
    %96 = vector.broadcast %95 : vector<1x10xf32> to vector<2x10xf32>
    %97 = arith.addf %94, %96 : vector<2x10xf32>
    %c0_96 = arith.constant 0 : index
    %c0_97 = arith.constant 0 : index
    %98 = vector.load %arg13[%c0_96, %c0_97] : memref<2x10xf32, #tpu.memory_space<vmem>>, vector<2x10xf32>
    tpu.vector_store %arg13[%c0_96, %c0_97], %97 {strides = array<i32>} : memref<2x10xf32, #tpu.memory_space<vmem>>, vector<2x10xf32>,
    return
  }
  func.func @transform_0(%arg0: i32) -> (i32, i32) {
    %c0_i32 = arith.constant 0 : i32
    %c0_i32_0 = arith.constant 0 : i32
    %c0_i32_1 = arith.constant 0 : i32
    return %c0_i32, %c0_i32_0 : i32, i32
  }
  func.func @transform_1(%arg0: i32) -> (i32, i32, i32) {
    %c0_i32 = arith.constant 0 : i32
    %c0_i32_0 = arith.constant 0 : i32
    %c0_i32_1 = arith.constant 0 : i32
    %c0_i32_2 = arith.constant 0 : i32
    return %c0_i32, %c0_i32_0, %c0_i32_1 : i32, i32, i32
  }
  func.func @transform_2(%arg0: i32) -> (i32, i32, i32) {
    %c0_i32 = arith.constant 0 : i32
    %c0_i32_0 = arith.constant 0 : i32
    %c0_i32_1 = arith.constant 0 : i32
    %c0_i32_2 = arith.constant 0 : i32
    return %c0_i32, %c0_i32_0, %c0_i32_1 : i32, i32, i32
  }
  func.func @transform_3(%arg0: i32) -> (i32, i32) {
    %c0_i32 = arith.constant 0 : i32
    %c0_i32_0 = arith.constant 0 : i32
    %c0_i32_1 = arith.constant 0 : i32
    return %c0_i32, %c0_i32_0 : i32, i32
  }
  func.func @transform_4(%arg0: i32) -> (i32, i32, i32) {
    %c0_i32 = arith.constant 0 : i32
    %c0_i32_0 = arith.constant 0 : i32
    %c0_i32_1 = arith.constant 0 : i32
    %c0_i32_2 = arith.constant 0 : i32
    return %c0_i32, %c0_i32_0, %c0_i32_1 : i32, i32, i32
  }
  func.func @transform_5(%arg0: i32) -> (i32, i32, i32) {
    %c0_i32 = arith.constant 0 : i32
    %c0_i32_0 = arith.constant 0 : i32
    %c0_i32_1 = arith.constant 0 : i32
    %c0_i32_2 = arith.constant 0 : i32
    return %c0_i32, %c0_i32_0, %c0_i32_1 : i32, i32, i32
  }
  func.func @transform_6(%arg0: i32) -> (i32, i32) {
    %c0_i32 = arith.constant 0 : i32
    %c0_i32_0 = arith.constant 0 : i32
    %c0_i32_1 = arith.constant 0 : i32
    return %c0_i32, %c0_i32_0 : i32, i32
  }
  func.func @transform_7(%arg0: i32) -> (i32, i32, i32) {
    %c0_i32 = arith.constant 0 : i32
    %c0_i32_0 = arith.constant 0 : i32
    %c0_i32_1 = arith.constant 0 : i32
    %c0_i32_2 = arith.constant 0 : i32
    return %c0_i32, %c0_i32_0, %c0_i32_1 : i32, i32, i32
  }
  func.func @transform_8(%arg0: i32) -> (i32, i32, i32) {
    %c0_i32 = arith.constant 0 : i32
    %c0_i32_0 = arith.constant 0 : i32
    %c0_i32_1 = arith.constant 0 : i32
    %c0_i32_2 = arith.constant 0 : i32
    return %c0_i32, %c0_i32_0, %c0_i32_1 : i32, i32, i32
  }
  func.func @transform_9(%arg0: i32) -> (i32, i32) {
    %c0_i32 = arith.constant 0 : i32
    %c0_i32_0 = arith.constant 0 : i32
    %c0_i32_1 = arith.constant 0 : i32
    return %c0_i32, %c0_i32_0 : i32, i32
  }
  func.func @transform_10(%arg0: i32) -> (i32, i32, i32) {
    %c0_i32 = arith.constant 0 : i32
    %c0_i32_0 = arith.constant 0 : i32
    %c0_i32_1 = arith.constant 0 : i32
    %c0_i32_2 = arith.constant 0 : i32
    return %c0_i32, %c0_i32_0, %c0_i32_1 : i32, i32, i32
  }
  func.func @transform_11(%arg0: i32) -> (i32, i32) {
    %c0_i32 = arith.constant 0 : i32
    %c0_i32_0 = arith.constant 0 : i32
    %c0_i32_1 = arith.constant 0 : i32
    return %c0_i32, %c0_i32_0 : i32, i32
  }
  func.func @transform_12(%arg0: i32) -> (i32, i32) {
    %c0_i32 = arith.constant 0 : i32
    %c0_i32_0 = arith.constant 0 : i32
    %c0_i32_1 = arith.constant 0 : i32
    return %c0_i32, %c0_i32_0 : i32, i32
  }
}

</mosaic_0001>

<bundles_post_ra>
// kernel: simplenet_forward.1
= control target key start
LH: loop header
LB: loop body
LE: loop exit
PB: predicated region body
PF: predicated region fallthrough
CT: control target
= control target key end

     0   :  { %17 = vsyncpa [#allocation3], 0  ;;  %s4533_s0 = inlined_call_operand.vmem [shape: f32[64,96], index: 0, kind: input, shape index: {}]   ;;  %s4534_s1 = inlined_call_operand.hbm [shape: f32[3,32,64], index: 1, kind: input, shape index: {}]   ;;  %s4535_s2 = inlined_call_operand.hbm [shape: f32[3,96,512], index: 2, kind: input, shape index: {}]   ;;  %s4536_s3 = inlined_call_operand.hbm [shape: f32[1,512], index: 3, kind: input, shape index: {}]   ;;  %s4537_s4 = inlined_call_operand.hbm [shape: f32[3,16,32], index: 4, kind: input, shape index: {}]   ;;  %s4538_s5 = inlined_call_operand.hbm [shape: f32[3,512,256], index: 5, kind: input, shape index: {}]   ;;  %s4539_s6 = inlined_call_operand.hbm [shape: f32[1,256], index: 6, kind: input, shape index: {}]   ;;  %s4540_s7 = inlined_call_operand.hbm [shape: f32[3,8,16], index: 7, kind: input, shape index: {}]   ;;  %s4541_s8 = inlined_call_operand.hbm [shape: f32[3,256,256], index: 8, kind: input, shape index: {}]   ;;  %s4542_s9 = inlined_call_operand.hbm [shape: f32[1,256], index: 9, kind: input, shape index: {}]   ;;  %s4543_s10 = inlined_call_operand.vmem [shape: f32[4,256,10], index: 10, kind: input, shape index: {}]   ;;  %s4544_s11 = inlined_call_operand.hbm [shape: f32[1,10], index: 11, kind: input, shape index: {}]   ;;  %s4545_s12 = inlined_call_operand.hbm [shape: f32[2,10], index: 12, kind: output, shape index: {}]  }
   0x1   :  { %18 = vsyncpa [#allocation6], 0 }
   0x2   :  { %19 = vsyncpa [#allocation9], 0 }
   0x3   :  { %20 = vsyncpa [#allocation12], 0 }
   0x4   :  { %21 = vsyncpa [#allocation15], 0 }
   0x5   :  { %22 = vsyncpa [#allocation18], 0  ;;  %s43_s23 = sshll.u32 %s4535_s2, 4  ;;  %s44_s23 = int_to_ptr.hbm [resolvable:$true] %s43_s23 }
   0x6   :  { %23 = vsyncpa [#allocation4], 0  ;;  %s3583_s24 = smov [#allocation5]   ;;  %s3584_s26 = smov 512  }
   0x7   :  { %s45_s25 = sshll.u32 %s3583_s24, 4  ;;  %s3585_s27 = smov 32   ;;  %s46_s25 = int_to_ptr.vmem [resolvable:$true] %s45_s25 }
   0x8   :  { %51 = dma.hbm_to_vmem [thread:$0]  %s44_s23, 18432, %s46_s25, [#allocation6], %s3584_s26, %s3584_s26, %s3585_s27  }
   0x9   :  { %s67_s30 = sshll.u32 %s4537_s4, 4  ;;  %s3586_s13 = smov [#allocation8]   ;;  %s68_s30 = int_to_ptr.hbm [resolvable:$true] %s67_s30 }
   0xa   :  { %s69_s14 = sshll.u32 %s3586_s13, 4  ;;  %s94_s17 = sshll.u32 %s4539_s6, 4  ;;  %s70_s14 = int_to_ptr.vmem [resolvable:$true] %s69_s14  ;;  %s95_s17 = int_to_ptr.hbm [resolvable:$true] %s94_s17 }
   0xb   :  { %s3587_s2 = smov 128   ;;  %s3588_s18 = smov 8  }
   0xc   :  { %75 = dma.hbm_to_vmem [thread:$0]  %s68_s30, 768, %s70_s14, [#allocation9], %s3587_s2, %s3587_s2, %s3588_s18  }
   0xd   :  { %s3589_s19 = smov [#allocation11]   ;;  %s117_s22 = sshll.u32 %s4541_s8, 4  ;;  %s118_s22 = int_to_ptr.hbm [resolvable:$true] %s117_s22 }
   0xe   :  { %s96_s20 = sshll.u32 %s3589_s19, 4  ;;  %s3590_s23 = smov [#allocation14]   ;;  %s97_s20 = int_to_ptr.vmem [resolvable:$true] %s96_s20 }
   0xf   :  { %99 = dma.hbm_to_vmem [thread:$0]  %s95_s17, 32, %s97_s20, [#allocation12]  }
  0x10   :  { %s119_s24 = sshll.u32 %s3590_s23, 4  ;;  %s30_s26 = sshll.u32 %s4534_s1, 4  ;;  %s120_s24 = int_to_ptr.vmem [resolvable:$true] %s119_s24  ;;  %s31_s26 = int_to_ptr.hbm [resolvable:$true] %s30_s26 }
  0x11   :  { %s3591_s27 = smov 256   ;;  %s3592_s28 = smov 16  }
  0x12   :  { %125 = dma.hbm_to_vmem [thread:$0]  %s118_s22, 24576, %s120_s24, [#allocation15], %s3591_s27, %s3591_s27, %s3592_s28  }
  0x13   :  { %s57_s13 = sshll.u32 %s4536_s3, 4  ;;  %s3593_s14 = smov [#allocation2]   ;;  %s58_s13 = int_to_ptr.hbm [resolvable:$true] %s57_s13 }
  0x14   :  { %s32_s15 = sshll.u32 %s3593_s14, 4  ;;  %s3594_s8 = smov [#allocation7]   ;;  %s33_s15 = int_to_ptr.vmem [resolvable:$true] %s32_s15 }
  0x15   :  { %38 = dma.hbm_to_vmem [thread:$0]  %s31_s26, 1536, %s33_s15, [#allocation3], %s3587_s2, %s3587_s2, %s3588_s18  }
  0x16   :  { %s59_s16 = sshll.u32 %s3594_s8, 4  ;;  %s80_s19 = sshll.u32 %s4538_s5, 4  ;;  %s60_s16 = int_to_ptr.vmem [resolvable:$true] %s59_s16  ;;  %s81_s19 = int_to_ptr.hbm [resolvable:$true] %s80_s19 }
  0x17   :  { %62 = dma.hbm_to_vmem [thread:$0]  %s58_s13, 64, %s60_s16, [#allocation6]  }
  0x18   :  { %s104_s3 = sshll.u32 %s4540_s7, 4  ;;  %s3595_s4 = smov [#allocation10]   ;;  %s105_s3 = int_to_ptr.hbm [resolvable:$true] %s104_s3 }
  0x19   :  { %s82_s22 = sshll.u32 %s3595_s4, 4  ;;  %s3596_s23 = smov [#allocation13]   ;;  %s83_s22 = int_to_ptr.vmem [resolvable:$true] %s82_s22 }
  0x1a   :  { %88 = dma.hbm_to_vmem [thread:$0]  %s81_s19, 49152, %s83_s22, [#allocation9], %s3591_s27, %s3591_s27, %s3592_s28  }
  0x1b   :  { %s106_s24 = sshll.u32 %s3596_s23, 4  ;;  %s131_s26 = sshll.u32 %s4542_s9, 4  ;;  %s107_s24 = int_to_ptr.vmem [resolvable:$true] %s106_s24  ;;  %s132_s26 = int_to_ptr.hbm [resolvable:$true] %s131_s26 }
  0x1c   :  { %112 = dma.hbm_to_vmem [thread:$0]  %s105_s3, 384, %s107_s24, [#allocation12], %s3587_s2, %s3587_s2, %s3588_s18  }
  0x1d   :  { %s144_s7 = sshll.u32 %s4544_s11, 4  ;;  %s3597_s30 = smov [#allocation16]   ;;  %s145_s7 = int_to_ptr.hbm [resolvable:$true] %s144_s7 }
  0x1e   :  { %s133_s13 = sshll.u32 %s3597_s30, 4  ;;  %s3598_s27 = smov [#allocation17]   ;;  %s134_s13 = int_to_ptr.vmem [resolvable:$true] %s133_s13 }
  0x1f   :  { %136 = dma.hbm_to_vmem [thread:$0]  %s132_s26, 32, %s134_s13, [#allocation15]  }
  0x20   :  { %s146_s28 = sshll.u32 %s3598_s27, 4  ;;  %s147_s28 = int_to_ptr.vmem [resolvable:$true] %s146_s28 }
  0x21   :  { %149 = dma.hbm_to_vmem [thread:$0]  %s145_s7, 16, %s147_s28, [#allocation18]  }
  0x22   :  { %3569 = dma.done.wait [#allocation3], 1536  }
  0x23   :  { %3570 = vsyncadd [#allocation3], 4294965760 }
  0x24   :  { %3571 = dma.done.wait [#allocation6], 18496  }
  0x25   :  { %3572 = vsyncadd [#allocation6], 4294948800 }
  0x26   :  { %3573 = dma.done.wait [#allocation9], 49920  }
  0x27   :  { %3574 = vsyncadd [#allocation9], 4294917376 }
  0x28   :  { %3575 = dma.done.wait [#allocation12], 416  }
  0x29   :  { %3576 = vsyncadd [#allocation12], 4294966880 }
  0x2a   :  { %3577 = dma.done.wait [#allocation15], 24608  }
  0x2b   :  { %3578 = vsyncadd [#allocation15], 4294942688 }
  0x2c   :  { %3579 = dma.done.wait [#allocation18], 16  }
  0x2d   :  { %3580 = vsyncadd [#allocation18], 4294967280  ;;  %v3707_v0 = vld [vmem:[%s4533_s0 + $0x38] sm:$0xff]  ;;  %v3712_v1 = vld [vmem:[%s4533_s0 + $0x30] sm:$0xff]  ;;  %vm202_vm0 = vcmask 523264   ;;  %vm387_vm1 = vcmask 785408  }
  0x2e   :  { %317 = vmatpush.msra.mxu1 %v3707_v0  ;;  %223 = vmatpush.msra.mxu0 %v3707_v0  ;;  %v3719_v2 = vld [vmem:[%s4533_s0 + $0x28] sm:$0xff]  ;;  %v3726_v3 = vld [vmem:[%s4533_s0 + $0x20] sm:$0xff]  ;;  %v3733_v4 = vld [vmem:[%s4533_s0 + $0x18] sm:$0xff]  ;;  %vm927_vm2 = vcmask 261120   ;;  %vm2185_vm3 = vcmask 130048   ;;  %s3086_s4 = sshll.u32 %s4545_s12, 4  ;;  %s3087_s4 = int_to_ptr.hbm [resolvable:$true] %s3086_s4 }
  0x2f   :  { %v3740_v5 = vld [vmem:[%s4533_s0 + $0x10] sm:$0xff]  ;;  %v383_v6 = vld [vmem:[#allocation5 + $0x2e0] sm:$0xff]  ;;  %v384_v7 = vld [vmem:[#allocation5 + $0x2e8] sm:$0xff]  ;;  %vm3077_vm4 = vcmask 74752  }
  0x30   :  { %318 = vmatpush.msra.mxu1 %v3712_v1  ;;  %224 = vmatpush.msra.mxu0 %v3712_v1  ;;  %v3747_v8 = vld [vmem:[%s4533_s0 + $0x8] sm:$0xff]  ;;  %v379_v9 = vld [vmem:[#allocation5 + $0x2c0] sm:$0xff]  ;;  %v385_v16 = vld [vmem:[#allocation5 + $0x2f0] sm:$0xff] }
  0x31   :  { %404 = vmatpush.msra.mxu2 %v383_v6  ;;  %433 = vmatpush.msra.mxu3 %v384_v7  ;;  %v380_v10 = vld [vmem:[#allocation5 + $0x2c8] sm:$0xff]  ;;  %v3754_v11 = vld [vmem:[%s4533_s0] sm:$0xff]  ;;  %v386_v17 = vld [vmem:[#allocation5 + $0x2f8] sm:$0xff] }
  0x32   :  { %319 = vmatpush.msra.mxu1 %v3719_v2  ;;  %225 = vmatpush.msra.mxu0 %v3719_v2  ;;  %v375_v12 = vld [vmem:[#allocation5 + $0x2a0] sm:$0xff]  ;;  %v376_v13 = vld [vmem:[#allocation5 + $0x2a8] sm:$0xff]  ;;  %v381_v20 = vld [vmem:[#allocation5 + $0x2d0] sm:$0xff] }
  0x33   :  { %405 = vmatpush.msra.mxu2 %v379_v9  ;;  %434 = vmatpush.msra.mxu3 %v380_v10  ;;  %v293_v14 = vld [vmem:[#allocation2 + $0x20] sm:$0xff]  ;;  %v372_v19 = vld [vmem:[#allocation5 + $0x288] sm:$0xff]  ;;  %v382_v21 = vld [vmem:[#allocation5 + $0x2d8] sm:$0xff] }
  0x34   :  { %320 = vmatpush.msra.mxu1 %v3726_v3  ;;  %226 = vmatpush.msra.mxu0 %v3726_v3  ;;  %v198_v15 = vld [vmem:[#allocation2] sm:$0xff]  ;;  %v368_v23 = vld [vmem:[#allocation5 + $0x268] sm:$0xff]  ;;  %v377_v24 = vld [vmem:[#allocation5 + $0x2b0] sm:$0xff] }
  0x35   :  { %406 = vmatpush.msra.mxu2 %v375_v12  ;;  %435 = vmatpush.msra.mxu3 %v376_v13  ;;  %v371_v18 = vld [vmem:[#allocation5 + $0x280] sm:$0xff]  ;;  %v378_v25 = vld [vmem:[#allocation5 + $0x2b8] sm:$0xff]  ;;  %v364_v27 = vld [vmem:[#allocation5 + $0x248] sm:$0xff] }
  0x36   :  { %321 = vmatpush.msra.mxu1 %v3733_v4  ;;  %227 = vmatpush.msra.mxu0 %v3733_v4  ;;  %v367_v22 = vld [vmem:[#allocation5 + $0x260] sm:$0xff]  ;;  %v373_v28 = vld [vmem:[#allocation5 + $0x290] sm:$0xff]  ;;  %v374_v29 = vld [vmem:[#allocation5 + $0x298] sm:$0xff] }
  0x37   :  { %407 = vmatpush.msra.mxu2 %v371_v18  ;;  %436 = vmatpush.msra.mxu3 %v372_v19  ;;  %v363_v26 = vld [vmem:[#allocation5 + $0x240] sm:$0xff]  ;;  %v294_v30 = vld [vmem:[#allocation2 + $0x28] sm:$0xff]  ;;  %v369_v32 = vld [vmem:[#allocation5 + $0x270] sm:$0xff] }
  0x38   :  { %322 = vmatpush.msra.mxu1 %v3740_v5  ;;  %228 = vmatpush.msra.mxu0 %v3740_v5  ;;  %v199_v31 = vld [vmem:[#allocation2 + $0x8] sm:$0xff]  ;;  %v370_v33 = vld [vmem:[#allocation5 + $0x278] sm:$0xff]  ;;  %v359_v34 = vld [vmem:[#allocation5 + $0x220] sm:$0xff] }
  0x39   :  { %408 = vmatpush.msra.mxu2 %v367_v22  ;;  %437 = vmatpush.msra.mxu3 %v368_v23  ;;  %v360_v35 = vld [vmem:[#allocation5 + $0x228] sm:$0xff]  ;;  %v365_v36 = vld [vmem:[#allocation5 + $0x250] sm:$0xff]  ;;  %v366_v37 = vld [vmem:[#allocation5 + $0x258] sm:$0xff] }
  0x3a   :  { %323 = vmatpush.msra.mxu1 %v3747_v8  ;;  %229 = vmatpush.msra.mxu0 %v3747_v8  ;;  %v355_v38 = vld [vmem:[#allocation5 + $0x200] sm:$0xff]  ;;  %v356_v39 = vld [vmem:[#allocation5 + $0x208] sm:$0xff]  ;;  %v361_v40 = vld [vmem:[#allocation5 + $0x230] sm:$0xff] }
  0x3b   :  { %409 = vmatpush.msra.mxu2 %v363_v26  ;;  %438 = vmatpush.msra.mxu3 %v364_v27  ;;  %v362_v41 = vld [vmem:[#allocation5 + $0x238] sm:$0xff]  ;;  %v351_v42 = vld [vmem:[#allocation5 + $0x1e0] sm:$0xff]  ;;  %v352_v43 = vld [vmem:[#allocation5 + $0x1e8] sm:$0xff] }
  0x3c   :  { %324 = vmatpush.msra.mxu1 %v3754_v11  ;;  %230 = vmatpush.msra.mxu0 %v3754_v11  ;;  %v357_v44 = vld [vmem:[#allocation5 + $0x210] sm:$0xff]  ;;  %v358_v45 = vld [vmem:[#allocation5 + $0x218] sm:$0xff]  ;;  %v347_v50 = vld [vmem:[#allocation5 + $0x1c0] sm:$0xff] }
  0x3d   :  { %3105 = vmatmul.msk.f32.vlgmr.msra.gmra.mxu1 %vm202_vm0, %v293_v14  ;;  %3101 = vmatmul.msk.f32.vlgmr.msra.gmra.mxu0 %vm202_vm0, %v198_v15  ;;  %v295_v46 = vld [vmem:[#allocation2 + $0x30] sm:$0xff]  ;;  %v354_v49 = vld [vmem:[#allocation5 + $0x1f8] sm:$0xff]  ;;  %v348_v51 = vld [vmem:[#allocation5 + $0x1c8] sm:$0xff] }
  0x3e   :  { %462 = vmatpush.msrb.mxu0 %v385_v16  ;;  %491 = vmatpush.msrb.mxu1 %v386_v17  ;;  %v200_v47 = vld [vmem:[#allocation2 + $0x10] sm:$0xff]  ;;  %v350_v53 = vld [vmem:[#allocation5 + $0x1d8] sm:$0xff]  ;;  %v343_v54 = vld [vmem:[#allocation5 + $0x1a0] sm:$0xff] }
  0x3f   :  { %410 = vmatpush.msra.mxu2 %v359_v34  ;;  %439 = vmatpush.msra.mxu3 %v360_v35  ;;  %v353_v48 = vld [vmem:[#allocation5 + $0x1f0] sm:$0xff]  ;;  %v344_v55 = vld [vmem:[#allocation5 + $0x1a8] sm:$0xff]  ;;  %v346_v57 = vld [vmem:[#allocation5 + $0x1b8] sm:$0xff] }
  0x40   :  { %463 = vmatpush.msrb.mxu0 %v381_v20  ;;  %492 = vmatpush.msrb.mxu1 %v382_v21  ;;  %v349_v52 = vld [vmem:[#allocation5 + $0x1d0] sm:$0xff]  ;;  %v296_v58 = vld [vmem:[#allocation2 + $0x38] sm:$0xff]  ;;  %v339_v60 = vld [vmem:[#allocation5 + $0x180] sm:$0xff] }
  0x41   :  { %411 = vmatpush.msra.mxu2 %v355_v38  ;;  %440 = vmatpush.msra.mxu3 %v356_v39  ;;  %v345_v56 = vld [vmem:[#allocation5 + $0x1b0] sm:$0xff]  ;;  %v201_v59 = vld [vmem:[#allocation2 + $0x18] sm:$0xff]  ;;  %v340_v61 = vld [vmem:[#allocation5 + $0x188] sm:$0xff] }
  0x42   :  { %464 = vmatpush.msrb.mxu0 %v377_v24  ;;  %493 = vmatpush.msrb.mxu1 %v378_v25  ;;  %v341_v62 = vld [vmem:[#allocation5 + $0x190] sm:$0xff]  ;;  %v342_v63 = vld [vmem:[#allocation5 + $0x198] sm:$0xff]  ;;  %v288_v6 = vld [vmem:[#allocation5 + $0x160] sm:$0xff] }
  0x43   :  { %412 = vmatpush.msra.mxu2 %v351_v42  ;;  %441 = vmatpush.msra.mxu3 %v352_v43  ;;  %v289_v7 = vld [vmem:[#allocation5 + $0x168] sm:$0xff]  ;;  %v290_v9 = vld [vmem:[#allocation5 + $0x170] sm:$0xff]  ;;  %v291_v10 = vld [vmem:[#allocation5 + $0x178] sm:$0xff] }
  0x44   :  { %465 = vmatpush.msrb.mxu0 %v373_v28  ;;  %494 = vmatpush.msrb.mxu1 %v374_v29  ;;  %v284_v12 = vld [vmem:[#allocation5 + $0x140] sm:$0xff]  ;;  %v285_v13 = vld [vmem:[#allocation5 + $0x148] sm:$0xff]  ;;  %v286_v14 = vld [vmem:[#allocation5 + $0x150] sm:$0xff] }
  0x45   :  { %3106 = vmatmul.msk.f32.gmra.mxu1 %vm202_vm0, %v294_v30  ;;  %3102 = vmatmul.msk.f32.gmra.mxu0 %vm202_vm0, %v199_v31  ;;  %v287_v15 = vld [vmem:[#allocation5 + $0x158] sm:$0xff]  ;;  %v280_v16 = vld [vmem:[#allocation5 + $0x120] sm:$0xff]  ;;  %v281_v17 = vld [vmem:[#allocation5 + $0x128] sm:$0xff] }
  0x46   :  { %466 = vmatpush.msrb.mxu0 %v369_v32  ;;  %495 = vmatpush.msrb.mxu1 %v370_v33  ;;  %v282_v18 = vld [vmem:[#allocation5 + $0x130] sm:$0xff]  ;;  %v283_v19 = vld [vmem:[#allocation5 + $0x138] sm:$0xff]  ;;  %v276_v20 = vld [vmem:[#allocation5 + $0x100] sm:$0xff] }
  0x47   :  { %413 = vmatpush.msra.mxu2 %v347_v50  ;;  %442 = vmatpush.msra.mxu3 %v348_v51  ;;  %v277_v21 = vld [vmem:[#allocation5 + $0x108] sm:$0xff]  ;;  %v278_v22 = vld [vmem:[#allocation5 + $0x110] sm:$0xff]  ;;  %v279_v23 = vld [vmem:[#allocation5 + $0x118] sm:$0xff] }
  0x48   :  { %467 = vmatpush.msrb.mxu0 %v365_v36  ;;  %496 = vmatpush.msrb.mxu1 %v366_v37  ;;  %v272_v24 = vld [vmem:[#allocation5 + $0xe0] sm:$0xff]  ;;  %v273_v25 = vld [vmem:[#allocation5 + $0xe8] sm:$0xff]  ;;  %v274_v26 = vld [vmem:[#allocation5 + $0xf0] sm:$0xff] }
  0x49   :  { %414 = vmatpush.msra.mxu2 %v343_v54  ;;  %443 = vmatpush.msra.mxu3 %v344_v55  ;;  %v275_v27 = vld [vmem:[#allocation5 + $0xf8] sm:$0xff]  ;;  %v268_v28 = vld [vmem:[#allocation5 + $0xc0] sm:$0xff]  ;;  %v269_v29 = vld [vmem:[#allocation5 + $0xc8] sm:$0xff] }
  0x4a   :  { %468 = vmatpush.msrb.mxu0 %v361_v40  ;;  %497 = vmatpush.msrb.mxu1 %v362_v41  ;;  %v270_v30 = vld [vmem:[#allocation5 + $0xd0] sm:$0xff]  ;;  %v271_v31 = vld [vmem:[#allocation5 + $0xd8] sm:$0xff]  ;;  %v264_v32 = vld [vmem:[#allocation5 + $0xa0] sm:$0xff] }
  0x4b   :  { %415 = vmatpush.msra.mxu2 %v339_v60  ;;  %444 = vmatpush.msra.mxu3 %v340_v61  ;;  %v265_v33 = vld [vmem:[#allocation5 + $0xa8] sm:$0xff]  ;;  %v266_v34 = vld [vmem:[#allocation5 + $0xb0] sm:$0xff]  ;;  %v267_v35 = vld [vmem:[#allocation5 + $0xb8] sm:$0xff] }
  0x4c   :  { %469 = vmatpush.msrb.mxu0 %v357_v44  ;;  %498 = vmatpush.msrb.mxu1 %v358_v45  ;;  %v260_v36 = vld [vmem:[#allocation5 + $0x80] sm:$0xff]  ;;  %v261_v37 = vld [vmem:[#allocation5 + $0x88] sm:$0xff]  ;;  %v262_v38 = vld [vmem:[#allocation5 + $0x90] sm:$0xff] }
  0x4d   :  { %3107 = vmatmul.msk.f32.gmra.mxu1 %vm202_vm0, %v295_v46  ;;  %3103 = vmatmul.msk.f32.gmra.mxu0 %vm202_vm0, %v200_v47  ;;  %v263_v39 = vld [vmem:[#allocation5 + $0x98] sm:$0xff]  ;;  %v256_v40 = vld [vmem:[#allocation5 + $0x60] sm:$0xff]  ;;  %v257_v41 = vld [vmem:[#allocation5 + $0x68] sm:$0xff] }
  0x4e   :  { %470 = vmatpush.msrb.mxu0 %v353_v48  ;;  %499 = vmatpush.msrb.mxu1 %v354_v49  ;;  %v258_v42 = vld [vmem:[#allocation5 + $0x70] sm:$0xff]  ;;  %v259_v43 = vld [vmem:[#allocation5 + $0x78] sm:$0xff]  ;;  %v252_v44 = vld [vmem:[#allocation5 + $0x40] sm:$0xff] }
  0x4f   :  { %532 = vmatpush.msrb.mxu2 %v288_v6  ;;  %561 = vmatpush.msrb.mxu3 %v289_v7  ;;  %v253_v45 = vld [vmem:[#allocation5 + $0x48] sm:$0xff]  ;;  %v254_v46 = vld [vmem:[#allocation5 + $0x50] sm:$0xff]  ;;  %v255_v47 = vld [vmem:[#allocation5 + $0x58] sm:$0xff] }
  0x50   :  { %471 = vmatpush.msrb.mxu0 %v349_v52  ;;  %500 = vmatpush.msrb.mxu1 %v350_v53  ;;  %v248_v48 = vld [vmem:[#allocation5 + $0x20] sm:$0xff]  ;;  %v249_v49 = vld [vmem:[#allocation5 + $0x28] sm:$0xff]  ;;  %v250_v50 = vld [vmem:[#allocation5 + $0x30] sm:$0xff] }
  0x51   :  { %533 = vmatpush.msrb.mxu2 %v284_v12  ;;  %562 = vmatpush.msrb.mxu3 %v285_v13  ;;  %v251_v51 = vld [vmem:[#allocation5 + $0x38] sm:$0xff]  ;;  %v244_v53 = vld [vmem:[#allocation5] sm:$0xff]  ;;  %v245_v54 = vld [vmem:[#allocation5 + $0x8] sm:$0xff] }
  0x52   :  { %472 = vmatpush.msrb.mxu0 %v345_v56  ;;  %501 = vmatpush.msrb.mxu1 %v346_v57  ;;  %v246_v55 = vld [vmem:[#allocation5 + $0x10] sm:$0xff]  ;;  %v247_v56 = vld [vmem:[#allocation5 + $0x18] sm:$0xff] }
  0x53   :  { %534 = vmatpush.msrb.mxu2 %v280_v16  ;;  %563 = vmatpush.msrb.mxu3 %v281_v17  ;;  %v737_v6 = vld [vmem:[#allocation5 + $0x470] sm:$0xff]  ;;  %v738_v7 = vld [vmem:[#allocation5 + $0x478] sm:$0xff] }
  0x54   :  { %473 = vmatpush.msrb.mxu0 %v341_v62  ;;  %502 = vmatpush.msrb.mxu1 %v342_v63  ;;  %v735_v62 = vld [vmem:[#allocation5 + $0x460] sm:$0xff]  ;;  %v736_v63 = vld [vmem:[#allocation5 + $0x468] sm:$0xff]  ;;  %v733_v12 = vld [vmem:[#allocation5 + $0x450] sm:$0xff] }
  0x55   :  { %3108 = vmatmul.msk.f32.gmra.mxu1 %vm202_vm0, %v296_v58  ;;  %3104 = vmatmul.msk.f32.gmra.mxu0 %vm202_vm0, %v201_v59  ;;  %v648_v59 = vld [vmem:[#allocation2 + $0x58] sm:$0xff]  ;;  %v729_v16 = vld [vmem:[#allocation5 + $0x430] sm:$0xff] }
  0x56   :  { %590 = vmatpush.msra.mxu0 %v290_v9  ;;  %619 = vmatpush.msra.mxu1 %v291_v10  ;;  %v731_v9 = vld [vmem:[#allocation5 + $0x440] sm:$0xff]  ;;  %v732_v10 = vld [vmem:[#allocation5 + $0x448] sm:$0xff]  ;;  %v734_v13 = vld [vmem:[#allocation5 + $0x458] sm:$0xff] }
  0x57   :  { %535 = vmatpush.msrb.mxu2 %v276_v20  ;;  %564 = vmatpush.msrb.mxu3 %v277_v21  ;;  %v730_v17 = vld [vmem:[#allocation5 + $0x438] sm:$0xff]  ;;  %v724_v20 = vld [vmem:[#allocation5 + $0x408] sm:$0xff]  ;;  %v725_v21 = vld [vmem:[#allocation5 + $0x410] sm:$0xff] }
  0x58   :  { %591 = vmatpush.msra.mxu0 %v286_v14  ;;  %620 = vmatpush.msra.mxu1 %v287_v15  ;;  %v727_v14 = vld [vmem:[#allocation5 + $0x420] sm:$0xff]  ;;  %v728_v15 = vld [vmem:[#allocation5 + $0x428] sm:$0xff] }
  0x59   :  { %536 = vmatpush.msrb.mxu2 %v272_v24  ;;  %565 = vmatpush.msrb.mxu3 %v273_v25  ;;  %v720_v24 = vld [vmem:[#allocation5 + $0x3e8] sm:$0xff]  ;;  %v721_v25 = vld [vmem:[#allocation5 + $0x3f0] sm:$0xff] }
  0x5a   :  { %592 = vmatpush.msra.mxu0 %v282_v18  ;;  %621 = vmatpush.msra.mxu1 %v283_v19  ;;  %v723_v19 = vld [vmem:[#allocation5 + $0x400] sm:$0xff] }
  0x5b   :  { %537 = vmatpush.msrb.mxu2 %v268_v28  ;;  %566 = vmatpush.msrb.mxu3 %v269_v29  ;;  %v716_v28 = vld [vmem:[#allocation5 + $0x3c8] sm:$0xff]  ;;  %v717_v29 = vld [vmem:[#allocation5 + $0x3d0] sm:$0xff] }
  0x5c   :  { %593 = vmatpush.msra.mxu0 %v278_v22  ;;  %622 = vmatpush.msra.mxu1 %v279_v23  ;;  %v726_v22 = vld [vmem:[#allocation5 + $0x418] sm:$0xff]  ;;  %v719_v23 = vld [vmem:[#allocation5 + $0x3e0] sm:$0xff] }
  0x5d   :  { %538 = vmatpush.msrb.mxu2 %v264_v32  ;;  %567 = vmatpush.msrb.mxu3 %v265_v33  ;;  %v712_v32 = vld [vmem:[#allocation5 + $0x3a8] sm:$0xff]  ;;  %v713_v33 = vld [vmem:[#allocation5 + $0x3b0] sm:$0xff] }
  0x5e   :  { %594 = vmatpush.msra.mxu0 %v274_v26  ;;  %623 = vmatpush.msra.mxu1 %v275_v27  ;;  %v722_v26 = vld [vmem:[#allocation5 + $0x3f8] sm:$0xff]  ;;  %v715_v27 = vld [vmem:[#allocation5 + $0x3c0] sm:$0xff] }
  0x5f   :  { %539 = vmatpush.msrb.mxu2 %v260_v36  ;;  %568 = vmatpush.msrb.mxu3 %v261_v37  ;;  %v707_v36 = vld [vmem:[#allocation5 + $0x380] sm:$0xff]  ;;  %v708_v37 = vld [vmem:[#allocation5 + $0x388] sm:$0xff] }
  0x60   :  { %595 = vmatpush.msra.mxu0 %v270_v30  ;;  %624 = vmatpush.msra.mxu1 %v271_v31  ;;  %v718_v30 = vld [vmem:[#allocation5 + $0x3d8] sm:$0xff]  ;;  %v711_v31 = vld [vmem:[#allocation5 + $0x3a0] sm:$0xff] }
  0x61   :  { %540 = vmatpush.msrb.mxu2 %v256_v40  ;;  %569 = vmatpush.msrb.mxu3 %v257_v41  ;;  %v703_v40 = vld [vmem:[#allocation5 + $0x360] sm:$0xff]  ;;  %v704_v41 = vld [vmem:[#allocation5 + $0x368] sm:$0xff] }
  0x62   :  { %596 = vmatpush.msra.mxu0 %v266_v34  ;;  %625 = vmatpush.msra.mxu1 %v267_v35  ;;  %v714_v34 = vld [vmem:[#allocation5 + $0x3b8] sm:$0xff] }
  0x63   :  { %541 = vmatpush.msrb.mxu2 %v252_v44  ;;  %570 = vmatpush.msrb.mxu3 %v253_v45  ;;  %v699_v44 = vld [vmem:[#allocation5 + $0x340] sm:$0xff]  ;;  %v700_v45 = vld [vmem:[#allocation5 + $0x348] sm:$0xff] }
  0x64   :  { %597 = vmatpush.msra.mxu0 %v262_v38  ;;  %626 = vmatpush.msra.mxu1 %v263_v39  ;;  %v709_v38 = vld [vmem:[#allocation5 + $0x390] sm:$0xff]  ;;  %v710_v39 = vld [vmem:[#allocation5 + $0x398] sm:$0xff] }
  0x65   :  { %542 = vmatpush.msrb.mxu2 %v248_v48  ;;  %571 = vmatpush.msrb.mxu3 %v249_v49  ;;  %v695_v48 = vld [vmem:[#allocation5 + $0x320] sm:$0xff]  ;;  %v696_v49 = vld [vmem:[#allocation5 + $0x328] sm:$0xff] }
  0x66   :  { %598 = vmatpush.msra.mxu0 %v258_v42  ;;  %627 = vmatpush.msra.mxu1 %v259_v43  ;;  %v705_v42 = vld [vmem:[#allocation5 + $0x370] sm:$0xff]  ;;  %v706_v43 = vld [vmem:[#allocation5 + $0x378] sm:$0xff] }
  0x67   :  { %543 = vmatpush.msrb.mxu2 %v244_v53  ;;  %572 = vmatpush.msrb.mxu3 %v245_v54  ;;  %v691_v53 = vld [vmem:[#allocation5 + $0x300] sm:$0xff]  ;;  %v692_v54 = vld [vmem:[#allocation5 + $0x308] sm:$0xff] }
  0x68   :  { %599 = vmatpush.msra.mxu0 %v254_v46  ;;  %628 = vmatpush.msra.mxu1 %v255_v47  ;;  %v701_v46 = vld [vmem:[#allocation5 + $0x350] sm:$0xff]  ;;  %v702_v47 = vld [vmem:[#allocation5 + $0x358] sm:$0xff] }
  0x6a   :  { %600 = vmatpush.msra.mxu0 %v250_v50  ;;  %629 = vmatpush.msra.mxu1 %v251_v51  ;;  %v697_v50 = vld [vmem:[#allocation5 + $0x330] sm:$0xff]  ;;  %v698_v51 = vld [vmem:[#allocation5 + $0x338] sm:$0xff] }
  0x6c   :  { %601 = vmatpush.msra.mxu0 %v246_v55  ;;  %630 = vmatpush.msra.mxu1 %v247_v56  ;;  %v693_v55 = vld [vmem:[#allocation5 + $0x310] sm:$0xff]  ;;  %v694_v56 = vld [vmem:[#allocation5 + $0x318] sm:$0xff] }
  0xba   :  { %v326_v52 = vpop.f32.mrf.mxu1 }
  0xbb   :  { %3109 = vmatmul.msk.f32.vlgmr.msra.gmra.mxu2 %vm387_vm1, %v326_v52  ;;  %3113 = vmatmul.msk.f32.vlgmr.msra.gmra.mxu3 %vm387_vm1, %v326_v52 }
  0xbc   :  { %3117 = vmatmul.msk.f32.vlgmr.msrb.gmra.mxu0 %vm387_vm1, %v326_v52  ;;  %3121 = vmatmul.msk.f32.vlgmr.msrb.gmra.mxu1 %vm387_vm1, %v326_v52 }
  0xbd   :  { %669 = vmatpush.msra.mxu2 %v3707_v0  ;;  %755 = vmatpush.msra.mxu3 %v735_v62 }
  0xbe   :  { %784 = vmatpush.msrb.mxu0 %v736_v63  ;;  %813 = vmatpush.msrb.mxu1 %v737_v6 }
  0xbf   :  { %670 = vmatpush.msra.mxu2 %v3712_v1  ;;  %v232_v1 = vpop.f32.mrf.mxu0  ;;  %756 = vmatpush.msra.mxu3 %v731_v9 }
  0xc0   :  { %785 = vmatpush.msrb.mxu0 %v732_v10  ;;  %814 = vmatpush.msrb.mxu1 %v733_v12 }
  0xc1   :  { %671 = vmatpush.msra.mxu2 %v3719_v2  ;;  %757 = vmatpush.msra.mxu3 %v727_v14 }
  0xc2   :  { %v329_v57 = vpop.f32.mrf.mxu1  ;;  %786 = vmatpush.msrb.mxu0 %v728_v15  ;;  %815 = vmatpush.msrb.mxu1 %v729_v16 }
  0xc3   :  { %3110 = vmatmul.msk.f32.gmra.mxu2 %vm387_vm1, %v329_v57  ;;  %3114 = vmatmul.msk.f32.gmra.mxu3 %vm387_vm1, %v329_v57 }
  0xc4   :  { %3118 = vmatmul.msk.f32.gmra.mxu0 %vm387_vm1, %v329_v57  ;;  %3122 = vmatmul.msk.f32.gmra.mxu1 %vm387_vm1, %v329_v57 }
  0xc5   :  { %672 = vmatpush.msra.mxu2 %v3726_v3  ;;  %758 = vmatpush.msra.mxu3 %v723_v19 }
  0xc6   :  { %787 = vmatpush.msrb.mxu0 %v724_v20  ;;  %816 = vmatpush.msrb.mxu1 %v725_v21 }
  0xc7   :  { %673 = vmatpush.msra.mxu2 %v3733_v4  ;;  %v235_v2 = vpop.f32.mrf.mxu0  ;;  %759 = vmatpush.msra.mxu3 %v719_v23 }
  0xc8   :  { %788 = vmatpush.msrb.mxu0 %v720_v24  ;;  %817 = vmatpush.msrb.mxu1 %v721_v25 }
  0xc9   :  { %674 = vmatpush.msra.mxu2 %v3740_v5  ;;  %v645_v5 = vld [vmem:[#allocation2 + $0x40] sm:$0xff]  ;;  %760 = vmatpush.msra.mxu3 %v715_v27 }
  0xca   :  { %v332_v58 = vpop.f32.mrf.mxu1  ;;  %789 = vmatpush.msrb.mxu0 %v716_v28  ;;  %818 = vmatpush.msrb.mxu1 %v717_v29 }
  0xcb   :  { %3111 = vmatmul.msk.f32.gmra.mxu2 %vm387_vm1, %v332_v58  ;;  %3115 = vmatmul.msk.f32.gmra.mxu3 %vm387_vm1, %v332_v58 }
  0xcc   :  { %3119 = vmatmul.msk.f32.gmra.mxu0 %vm387_vm1, %v332_v58  ;;  %3123 = vmatmul.msk.f32.gmra.mxu1 %vm387_vm1, %v332_v58 }
  0xcd   :  { %675 = vmatpush.msra.mxu2 %v3747_v8  ;;  %v646_v8 = vld [vmem:[#allocation2 + $0x48] sm:$0xff]  ;;  %761 = vmatpush.msra.mxu3 %v711_v31 }
  0xce   :  { %790 = vmatpush.msrb.mxu0 %v712_v32  ;;  %819 = vmatpush.msrb.mxu1 %v713_v33 }
  0xcf   :  { %676 = vmatpush.msra.mxu2 %v3754_v11  ;;  %v238_v3 = vpop.f32.mrf.mxu0  ;;  %v647_v11 = vld [vmem:[#allocation2 + $0x50] sm:$0xff]  ;;  %762 = vmatpush.msra.mxu3 %v707_v36 }
  0xd0   :  { %791 = vmatpush.msrb.mxu0 %v708_v37  ;;  %820 = vmatpush.msrb.mxu1 %v709_v38 }
  0xd1   :  { %763 = vmatpush.msra.mxu3 %v703_v40 }
  0xd2   :  { %v335_v0 = vpop.f32.mrf.mxu1  ;;  %792 = vmatpush.msrb.mxu0 %v704_v41  ;;  %821 = vmatpush.msrb.mxu1 %v705_v42 }
  0xd3   :  { %3112 = vmatmul.msk.f32.gmra.mxu2 %vm387_vm1, %v335_v0  ;;  %3116 = vmatmul.msk.f32.gmra.mxu3 %vm387_vm1, %v335_v0 }
  0xd4   :  { %3120 = vmatmul.msk.f32.gmra.mxu0 %vm387_vm1, %v335_v0  ;;  %3124 = vmatmul.msk.f32.gmra.mxu1 %vm387_vm1, %v335_v0 }
  0xd5   :  { %764 = vmatpush.msra.mxu3 %v699_v44  ;;  %793 = vmatpush.msrb.mxu0 %v700_v45 }
  0xd6   :  { %822 = vmatpush.msrb.mxu1 %v701_v46 }
  0xd7   :  { %v241_v4 = vpop.f32.mrf.mxu0  ;;  %765 = vmatpush.msra.mxu3 %v695_v48  ;;  %794 = vmatpush.msrb.mxu0 %v696_v49 }
  0xd8   :  { %823 = vmatpush.msrb.mxu1 %v697_v50 }
  0xd9   :  { %766 = vmatpush.msra.mxu3 %v691_v53  ;;  %795 = vmatpush.msrb.mxu0 %v692_v54 }
  0xda   :  { %824 = vmatpush.msrb.mxu1 %v693_v55 }
  0xdb   :  { %3125 = vmatmul.msk.f32.vlgmr.msrb.gmra.mxu2 %vm387_vm1, %v232_v1  ;;  %3129 = vmatmul.msk.f32.vlgmr.msrb.gmra.mxu3 %vm387_vm1, %v232_v1 }
  0xdc   :  { %3133 = vmatmul.msk.f32.vlgmr.msra.gmra.mxu0 %vm387_vm1, %v232_v1  ;;  %3137 = vmatmul.msk.f32.vlgmr.msra.gmra.mxu1 %vm387_vm1, %v232_v1 }
  0xdd   :  { %842 = vmatpush.msrb.mxu2 %v738_v7 }
  0xdf   :  { %843 = vmatpush.msrb.mxu2 %v734_v13 }
  0xe1   :  { %844 = vmatpush.msrb.mxu2 %v730_v17 }
  0xe3   :  { %3126 = vmatmul.msk.f32.gmra.mxu2 %vm387_vm1, %v235_v2  ;;  %3130 = vmatmul.msk.f32.gmra.mxu3 %vm387_vm1, %v235_v2 }
  0xe4   :  { %3134 = vmatmul.msk.f32.gmra.mxu0 %vm387_vm1, %v235_v2  ;;  %3138 = vmatmul.msk.f32.gmra.mxu1 %vm387_vm1, %v235_v2 }
  0xe5   :  { %845 = vmatpush.msrb.mxu2 %v726_v22 }
  0xe7   :  { %846 = vmatpush.msrb.mxu2 %v722_v26 }
  0xe9   :  { %847 = vmatpush.msrb.mxu2 %v718_v30 }
  0xeb   :  { %3127 = vmatmul.msk.f32.gmra.mxu2 %vm387_vm1, %v238_v3  ;;  %3131 = vmatmul.msk.f32.gmra.mxu3 %vm387_vm1, %v238_v3 }
  0xec   :  { %3135 = vmatmul.msk.f32.gmra.mxu0 %vm387_vm1, %v238_v3  ;;  %3139 = vmatmul.msk.f32.gmra.mxu1 %vm387_vm1, %v238_v3 }
  0xed   :  { %848 = vmatpush.msrb.mxu2 %v714_v34 }
  0xef   :  { %849 = vmatpush.msrb.mxu2 %v710_v39  ;;  %v883_v39 = vld [vmem:[#allocation7] sm:$0xf] }
  0xf1   :  { %850 = vmatpush.msrb.mxu2 %v706_v43 }
  0xf3   :  { %3128 = vmatmul.msk.f32.gmra.mxu2 %vm387_vm1, %v241_v4  ;;  %3132 = vmatmul.msk.f32.gmra.mxu3 %vm387_vm1, %v241_v4 }
  0xf4   :  { %3136 = vmatmul.msk.f32.gmra.mxu0 %vm387_vm1, %v241_v4  ;;  %3140 = vmatmul.msk.f32.gmra.mxu1 %vm387_vm1, %v241_v4 }
  0xf5   :  { %851 = vmatpush.msrb.mxu2 %v702_v47  ;;  %v887_v47 = vperm.slane %v883_v39, 2 }
  0xf7   :  { %852 = vmatpush.msrb.mxu2 %v698_v51 }
  0xf9   :  { %853 = vmatpush.msrb.mxu2 %v694_v56 }
  0xfb   :  { %3141 = vmatmul.msk.f32.vlgmr.msra.gmra.mxu2 %vm202_vm0, %v645_v5 }
 0x103   :  { %3142 = vmatmul.msk.f32.gmra.mxu2 %vm202_vm0, %v646_v8 }
 0x10b   :  { %3143 = vmatmul.msk.f32.gmra.mxu2 %vm202_vm0, %v647_v11 }
 0x113   :  { %3144 = vmatmul.msk.f32.gmra.mxu2 %vm202_vm0, %v648_v59 }
 0x139   :  { %v504_v5 = vpop.f32.mrf.mxu1  ;;  %v475_v8 = vpop.f32.mrf.mxu0 }
 0x13e   :  { %v3812_v60 = vpop.f32.mrf.mxu2  ;;  %v3844_v11 = vpop.f32.mrf.mxu3 }
 0x141   :  { %v507_v59 = vpop.f32.mrf.mxu1  ;;  %v478_v62 = vpop.f32.mrf.mxu0 }
 0x146   :  { %v3814_v61 = vpop.f32.mrf.mxu2  ;;  %v3846_v63 = vpop.f32.mrf.mxu3 }
 0x149   :  { %v510_v6 = vpop.f32.mrf.mxu1  ;;  %v481_v7 = vpop.f32.mrf.mxu0 }
 0x14e   :  { %v3816_v18 = vpop.f32.mrf.mxu2  ;;  %v3848_v9 = vpop.f32.mrf.mxu3 }
 0x151   :  { %v513_v10 = vpop.f32.mrf.mxu1  ;;  %v484_v12 = vpop.f32.mrf.mxu0 }
 0x156   :  { %v3818_v35 = vpop.f32.mrf.mxu2  ;;  %v455_v13 = vpop.f32.mrf.mxu3 }
 0x159   :  { %v632_v14 = vpop.f32.mrf.mxu1  ;;  %v603_v15 = vpop.f32.mrf.mxu0 }
 0x15a   :  { %v604_v45 = vadd.f32 %v603_v15, %v475_v8  ;;  %v633_v50 = vadd.f32 %v632_v14, %v504_v5  ;;  %v885_v14 = vperm.slane %v883_v39, 0  ;;  %v888_v15 = vperm.slane %v883_v39, 3 }
 0x15e   :  { %v3820_v52 = vpop.f32.mrf.mxu2  ;;  %v3850_v16 = vpop.f32.mrf.mxu3 }
 0x15f   :  { %v546_v54 = vadd.f32 %v3820_v52, %v3812_v60 }
 0x161   :  { %v635_v17 = vpop.f32.mrf.mxu1  ;;  %v606_v19 = vpop.f32.mrf.mxu0 }
 0x162   :  { %v607_v42 = vadd.f32 %v606_v19, %v478_v62 }
 0x166   :  { %v3822_v57 = vpop.f32.mrf.mxu2  ;;  %v3852_v20 = vpop.f32.mrf.mxu3 }
 0x169   :  { %v638_v21 = vpop.f32.mrf.mxu1  ;;  %v609_v22 = vpop.f32.mrf.mxu0 }
 0x16a   :  { %v610_v37 = vadd.f32 %v609_v22, %v481_v7  ;;  %v639_v55 = vadd.f32 %v638_v21, %v510_v6 }
 0x16e   :  { %v3824_v58 = vpop.f32.mrf.mxu2  ;;  %v580_v23 = vpop.f32.mrf.mxu3 }
 0x16f   :  { %v552_v51 = vadd.f32 %v3824_v58, %v3816_v18 }
 0x171   :  { %v641_v24 = vpop.f32.mrf.mxu1  ;;  %v612_v25 = vpop.f32.mrf.mxu0 }
 0x172   :  { %v613_v43 = vadd.f32 %v612_v25, %v484_v12  ;;  %v642_v62 = vadd.f32 %v641_v24, %v513_v10 }
 0x176   :  { %v3826_v0 = vpop.f32.mrf.mxu2  ;;  %v583_v26 = vpop.f32.mrf.mxu3 }
 0x17e   :  { %v678_v1 = vpop.f32.mrf.mxu2 }
 0x17f   :  { %3145 = vmatmul.msk.f32.vlgmr.msra.gmra.mxu3 %vm387_vm1, %v678_v1  ;;  %3149 = vmatmul.msk.f32.vlgmr.msrb.gmra.mxu0 %vm387_vm1, %v678_v1 }
 0x180   :  { %3153 = vmatmul.msk.f32.vlgmr.msrb.gmra.mxu1 %vm387_vm1, %v678_v1  ;;  %3157 = vmatmul.msk.f32.vlgmr.msrb.gmra.mxu2 %vm387_vm1, %v678_v1 }
 0x186   :  { %v681_v2 = vpop.f32.mrf.mxu2 }
 0x187   :  { %3146 = vmatmul.msk.f32.gmra.mxu3 %vm387_vm1, %v681_v2  ;;  %3150 = vmatmul.msk.f32.gmra.mxu0 %vm387_vm1, %v681_v2 }
 0x188   :  { %3154 = vmatmul.msk.f32.gmra.mxu1 %vm387_vm1, %v681_v2  ;;  %3158 = vmatmul.msk.f32.gmra.mxu2 %vm387_vm1, %v681_v2  ;;  %v636_v2 = vadd.f32 %v635_v17, %v507_v59 }
 0x18e   :  { %v684_v3 = vpop.f32.mrf.mxu2 }
 0x18f   :  { %3147 = vmatmul.msk.f32.gmra.mxu3 %vm387_vm1, %v684_v3  ;;  %3151 = vmatmul.msk.f32.gmra.mxu0 %vm387_vm1, %v684_v3 }
 0x190   :  { %3155 = vmatmul.msk.f32.gmra.mxu1 %vm387_vm1, %v684_v3  ;;  %3159 = vmatmul.msk.f32.gmra.mxu2 %vm387_vm1, %v684_v3  ;;  %v549_v3 = vadd.f32 %v3822_v57, %v3814_v61 }
 0x196   :  { %v687_v4 = vpop.f32.mrf.mxu2 }
 0x197   :  { %3148 = vmatmul.msk.f32.gmra.mxu3 %vm387_vm1, %v687_v4  ;;  %3152 = vmatmul.msk.f32.gmra.mxu0 %vm387_vm1, %v687_v4 }
 0x198   :  { %3156 = vmatmul.msk.f32.gmra.mxu1 %vm387_vm1, %v687_v4  ;;  %3160 = vmatmul.msk.f32.gmra.mxu2 %vm387_vm1, %v687_v4  ;;  %v555_v4 = vadd.f32 %v3826_v0, %v3818_v35  ;;  %v584_v35 = vadd.f32 %v583_v26, %v455_v13 }
 0x1fc   :  { %v3854_v28 = vpop.f32.mrf.mxu0 }
 0x1fd   :  { %v826_v27 = vpop.f32.mrf.mxu1 }
 0x1fe   :  { %v869_v53 = vadd.f32 %v826_v27, %v604_v45  ;;  %v581_v27 = vadd.f32 %v580_v23, %v3848_v9  ;;  %v886_v23 = vperm.slane %v883_v39, 1 }
 0x200   :  { %v895_v58 = vadd.f32 %v887_v47, %v869_v53  ;;  %v3951_v53 = vld [vmem:[#allocation8 + $0x18] sm:$0xff] }
 0x202   :  { %v768_v29 = vpop.f32.mrf.mxu3 }
 0x203   :  { %v855_v30 = vpop.f32.mrf.mxu2  ;;  %v867_v57 = vadd.f32 %v768_v29, %v546_v54  ;;  %v3884_v29 = vld [vmem:[#allocation8] sm:$0xff] }
 0x204   :  { %v3856_v32 = vpop.f32.mrf.mxu0  ;;  %v870_v21 = vadd.f32 %v855_v30, %v633_v50  ;;  %v578_v30 = vadd.f32 %v3852_v20, %v3846_v63  ;;  %v575_v20 = vadd.f32 %v3850_v16, %v3844_v11  ;;  %v1286_v54 = vld [vmem:[#allocation10 + $0x4f0] sm:$0xff] }
 0x205   :  { %v829_v31 = vpop.f32.mrf.mxu1 }
 0x206   :  { %v873_v48 = vadd.f32 %v829_v31, %v607_v42  ;;  %v872_v39 = vadd.f32 %v3856_v32, %v578_v30  ;;  %v868_v45 = vadd.f32 %v3854_v28, %v575_v20  ;;  %v1332_v30 = vld [vmem:[#allocation10 + $0x660] sm:$0xff] }
 0x207   :  { %v1364_v20 = vld [vmem:[#allocation10 + $0x760] sm:$0xff] }
 0x208   :  { %v899_v5 = vadd.f32 %v887_v47, %v873_v48  ;;  %v898_v16 = vadd.f32 %v886_v23, %v872_v39  ;;  %v894_v28 = vadd.f32 %v886_v23, %v868_v45  ;;  %v1260_v39 = vld [vmem:[#allocation10 + $0x420] sm:$0xff] }
 0x209   :  { %v1328_v45 = vld [vmem:[#allocation10 + $0x640] sm:$0xff] }
 0x20a   :  { %v771_v33 = vpop.f32.mrf.mxu3  ;;  %v3874_v25 = vmax.f32 %v899_v5, 0.0  ;;  %v3941_v50 = vmax.f32 %v898_v16, 0.0  ;;  %v1278_v5 = vld [vmem:[#allocation10 + $0x4b0] sm:$0xff] }
 0x20b   :  { %v858_v34 = vpop.f32.mrf.mxu2  ;;  %v871_v60 = vadd.f32 %v771_v33, %v549_v3  ;;  %v1348_v3 = vld [vmem:[#allocation10 + $0x6e0] sm:$0xff]  ;;  %v1258_v16 = vld [vmem:[#allocation10 + $0x410] sm:$0xff] }
 0x20c   :  { %v3858_v40 = vpop.f32.mrf.mxu0  ;;  %v874_v59 = vadd.f32 %v858_v34, %v636_v2  ;;  %v3879_v34 = vmax.f32 %v895_v58, 0.0  ;;  %v1382_v2 = vld [vmem:[#allocation10 + $0x7f0] sm:$0xff]  ;;  %v1344_v58 = vld [vmem:[#allocation10 + $0x6c0] sm:$0xff] }
 0x20d   :  { %v832_v36 = vpop.f32.mrf.mxu1  ;;  %v897_v31 = vadd.f32 %v885_v14, %v871_v60  ;;  %v1274_v60 = vld [vmem:[#allocation10 + $0x490] sm:$0xff] }
 0x20e   :  { %v877_v44 = vadd.f32 %v832_v36, %v610_v37  ;;  %v900_v36 = vadd.f32 %v888_v15, %v874_v59  ;;  %v893_v37 = vadd.f32 %v885_v14, %v867_v57  ;;  %v1340_v59 = vld [vmem:[#allocation10 + $0x6a0] sm:$0xff] }
 0x20f   :  { %v3900_v63 = vmax.f32 %v897_v31, 0.0  ;;  %v1372_v57 = vld [vmem:[#allocation10 + $0x7a0] sm:$0xff] }
 0x210   :  { %v903_v56 = vadd.f32 %v887_v47, %v877_v44  ;;  %v3911_v44 = vmax.f32 %v893_v37, 0.0  ;;  %v1368_v31 = vld [vmem:[#allocation10 + $0x780] sm:$0xff]  ;;  %v1366_v37 = vld [vmem:[#allocation10 + $0x770] sm:$0xff] }
 0x212   :  { %v774_v38 = vpop.f32.mrf.mxu3  ;;  %v3871_v61 = vmax.f32 %v903_v56, 0.0  ;;  %v1350_v56 = vld [vmem:[#allocation10 + $0x6f0] sm:$0xff] }
 0x213   :  { %v861_v41 = vpop.f32.mrf.mxu2  ;;  %v875_v8 = vadd.f32 %v774_v38, %v552_v51  ;;  %v896_v38 = vadd.f32 %v888_v15, %v870_v21  ;;  %v3947_v51 = vmax.f32 %v894_v28, 0.0  ;;  %v1370_v21 = vld [vmem:[#allocation10 + $0x790] sm:$0xff] }
 0x214   :  { %v878_v7 = vadd.f32 %v861_v41, %v639_v55  ;;  %v806_v10 = vpop.f32.mrf.mxu0  ;;  %v876_v41 = vadd.f32 %v3858_v40, %v581_v27  ;;  %v3907_v40 = vmax.f32 %v900_v36, 0.0  ;;  %v1284_v55 = vld [vmem:[#allocation10 + $0x4e0] sm:$0xff]  ;;  %v1266_v27 = vld [vmem:[#allocation10 + $0x450] sm:$0xff] }
 0x215   :  { %v835_v46 = vpop.f32.mrf.mxu1  ;;  %v901_v0 = vadd.f32 %v885_v14, %v875_v8  ;;  %v880_v13 = vadd.f32 %v806_v10, %v584_v35  ;;  %v3916_v11 = vmax.f32 %v896_v38, 0.0  ;;  %v1280_v8 = vld [vmem:[#allocation10 + $0x4c0] sm:$0xff]  ;;  %v1270_v35 = vld [vmem:[#allocation10 + $0x470] sm:$0xff] }
 0x216   :  { %v881_v49 = vadd.f32 %v835_v46, %v613_v43  ;;  %v904_v22 = vadd.f32 %v888_v15, %v878_v7  ;;  %v902_v46 = vadd.f32 %v886_v23, %v876_v41  ;;  %v1378_v7 = vld [vmem:[#allocation10 + $0x7d0] sm:$0xff]  ;;  %v1316_v10 = vld [vmem:[#allocation10 + $0x5e0] sm:$0xff] }
 0x217   :  { %v3890_v9 = vmax.f32 %v901_v0, 0.0  ;;  %v906_v43 = vadd.f32 %v886_v23, %v880_v13  ;;  %v1338_v0 = vld [vmem:[#allocation10 + $0x690] sm:$0xff]  ;;  %v1312_v13 = vld [vmem:[#allocation10 + $0x5c0] sm:$0xff] }
 0x218   :  { %v907_v1 = vadd.f32 %v887_v47, %v881_v49  ;;  %v3895_v42 = vmax.f32 %v904_v22, 0.0  ;;  %v3924_v47 = vld [vmem:[#allocation8 + $0x10] sm:$0xff]  ;;  %v3932_v48 = vmax.f32 %v902_v46, 0.0  ;;  %v3934_v49 = vld [vmem:[#allocation8 + $0x8] sm:$0xff]  ;;  %v1334_v36 = vld [vmem:[#allocation10 + $0x670] sm:$0xff] }
 0x219   :  { %v3920_v32 = vmax.f32 %v906_v43, 0.0  ;;  %v1336_v22 = vld [vmem:[#allocation10 + $0x680] sm:$0xff]  ;;  %v1262_v23 = vld [vmem:[#allocation10 + $0x430] sm:$0xff] }
 0x21a   :  { %v3868_v12 = vmax.f32 %v907_v1, 0.0  ;;  %v777_v18 = vpop.f32.mrf.mxu3  ;;  %v1282_v1 = vld [vmem:[#allocation10 + $0x4d0] sm:$0xff]  ;;  %v1308_v43 = vld [vmem:[#allocation10 + $0x5a0] sm:$0xff] }
 0x21b   :  { %v879_v52 = vadd.f32 %v777_v18, %v555_v4  ;;  %v864_v6 = vpop.f32.mrf.mxu2  ;;  %v1380_v4 = vld [vmem:[#allocation10 + $0x7e0] sm:$0xff]  ;;  %v1310_v38 = vld [vmem:[#allocation10 + $0x5b0] sm:$0xff] }
 0x21c   :  { %v882_v17 = vadd.f32 %v864_v6, %v642_v62  ;;  %992 = vmatpush.msra.mxu0 %v3868_v12  ;;  %v1346_v62 = vld [vmem:[#allocation10 + $0x6d0] sm:$0xff]  ;;  %v1276_v18 = vld [vmem:[#allocation10 + $0x4a0] sm:$0xff] }
 0x21d   :  { %v905_v19 = vadd.f32 %v885_v14, %v879_v52  ;;  %v1376_v14 = vld [vmem:[#allocation10 + $0x7c0] sm:$0xff]  ;;  %v1342_v52 = vld [vmem:[#allocation10 + $0x6b0] sm:$0xff] }
 0x21e   :  { %v908_v24 = vadd.f32 %v888_v15, %v882_v17  ;;  %993 = vmatpush.msra.mxu0 %v3871_v61  ;;  %v1374_v6 = vld [vmem:[#allocation10 + $0x7b0] sm:$0xff]  ;;  %v1272_v15 = vld [vmem:[#allocation10 + $0x480] sm:$0xff] }
 0x21f   :  { %v3877_v33 = vmax.f32 %v905_v19, 0.0  ;;  %v1318_v17 = vld [vmem:[#allocation10 + $0x5f0] sm:$0xff]  ;;  %v1268_v19 = vld [vmem:[#allocation10 + $0x460] sm:$0xff] }
 0x220   :  { %v3881_v26 = vmax.f32 %v908_v24, 0.0  ;;  %994 = vmatpush.msra.mxu0 %v3874_v25  ;;  %v1314_v24 = vld [vmem:[#allocation10 + $0x5d0] sm:$0xff] }
 0x221   :  { %946 = vmatpush.msrb.mxu3 %v3877_v33  ;;  %1175 = vmatpush.msra.mxu2 %v3877_v33  ;;  %v1330_v41 = vld [vmem:[#allocation10 + $0x650] sm:$0xff] }
 0x222   :  { %995 = vmatpush.msra.mxu0 %v3879_v34  ;;  %1015 = vmatpush.msra.mxu1 %v3881_v26  ;;  %v1362_v46 = vld [vmem:[#allocation10 + $0x750] sm:$0xff] }
 0x223   :  { %3165 = vmatmul.msk.f32.vlgmr.msra.gmra.mxu0 %vm927_vm2, %v3884_v29  ;;  %947 = vmatpush.msrb.mxu3 %v3890_v9  ;;  %v1306_v28 = vld [vmem:[#allocation10 + $0x590] sm:$0xff] }
 0x224   :  { %1221 = vmatpush.msrb.mxu0 %v3868_v12  ;;  %1016 = vmatpush.msra.mxu1 %v3895_v42 }
 0x225   :  { %1176 = vmatpush.msra.mxu2 %v3890_v9  ;;  %948 = vmatpush.msrb.mxu3 %v3900_v63 }
 0x226   :  { %1222 = vmatpush.msrb.mxu0 %v3871_v61  ;;  %1017 = vmatpush.msra.mxu1 %v3907_v40 }
 0x227   :  { %1177 = vmatpush.msra.mxu2 %v3900_v63  ;;  %949 = vmatpush.msrb.mxu3 %v3911_v44 }
 0x228   :  { %1223 = vmatpush.msrb.mxu0 %v3874_v25  ;;  %1018 = vmatpush.msra.mxu1 %v3916_v11 }
 0x229   :  { %1178 = vmatpush.msra.mxu2 %v3911_v44  ;;  %3161 = vmatmul.msk.f32.vlgmr.msrb.gmra.mxu3 %vm927_vm2, %v3884_v29 }
 0x22a   :  { %969 = vmatpush.msra.mxu3 %v3920_v32  ;;  %3167 = vmatmul.msk.f32.vlgmr.msra.gmra.mxu1 %vm927_vm2, %v3884_v29 }
 0x22b   :  { %3169 = vmatmul.msk.f32.vlgmr.msra.gmra.mxu2 %vm927_vm2, %v3924_v47  ;;  %1224 = vmatpush.msrb.mxu0 %v3879_v34 }
 0x22c   :  { %1244 = vmatpush.msrb.mxu1 %v3881_v26  ;;  %970 = vmatpush.msra.mxu3 %v3932_v48 }
 0x22d   :  { %3166 = vmatmul.msk.f32.gmra.mxu0 %vm927_vm2, %v3934_v49  ;;  %1384 = vmatpush.msrb.mxu2 %v1286_v54  ;;  %v1360_v54 = vld [vmem:[#allocation10 + $0x740] sm:$0xff] }
 0x22e   :  { %1245 = vmatpush.msrb.mxu1 %v3895_v42  ;;  %971 = vmatpush.msra.mxu3 %v3941_v50 }
 0x22f   :  { %1385 = vmatpush.msrb.mxu2 %v1284_v55  ;;  %1430 = vmatpush.msra.mxu0 %v1350_v56  ;;  %v1324_v55 = vld [vmem:[#allocation10 + $0x620] sm:$0xff]  ;;  %v1287_v56 = vld [vmem:[#allocation10 + $0x4f8] sm:$0xff] }
 0x230   :  { %1246 = vmatpush.msrb.mxu1 %v3907_v40  ;;  %972 = vmatpush.msra.mxu3 %v3947_v51 }
 0x231   :  { %3162 = vmatmul.msk.f32.gmra.mxu3 %vm927_vm2, %v3934_v49  ;;  %1386 = vmatpush.msrb.mxu2 %v1282_v1  ;;  %v1358_v1 = vld [vmem:[#allocation10 + $0x730] sm:$0xff] }
 0x232   :  { %1198 = vmatpush.msrb.mxu3 %v3920_v32  ;;  %1247 = vmatpush.msrb.mxu1 %v3916_v11 }
 0x233   :  { %3168 = vmatmul.msk.f32.gmra.mxu1 %vm927_vm2, %v3934_v49  ;;  %3170 = vmatmul.msk.f32.gmra.mxu2 %vm927_vm2, %v3951_v53 }
 0x234   :  { %1199 = vmatpush.msrb.mxu3 %v3932_v48  ;;  %1453 = vmatpush.msra.mxu1 %v1382_v2  ;;  %v1304_v2 = vld [vmem:[#allocation10 + $0x580] sm:$0xff] }
 0x235   :  { %3173 = vmatmul.msk.f32.vlgmr.msrb.gmra.mxu0 %vm927_vm2, %v3924_v47  ;;  %1387 = vmatpush.msrb.mxu2 %v1280_v8  ;;  %v1356_v8 = vld [vmem:[#allocation10 + $0x720] sm:$0xff] }
 0x236   :  { %1200 = vmatpush.msrb.mxu3 %v3941_v50  ;;  %1431 = vmatpush.msra.mxu0 %v1348_v3  ;;  %v1322_v3 = vld [vmem:[#allocation10 + $0x610] sm:$0xff] }
 0x237   :  { %1454 = vmatpush.msra.mxu1 %v1380_v4  ;;  %1388 = vmatpush.msrb.mxu2 %v1278_v5  ;;  %v1285_v4 = vld [vmem:[#allocation10 + $0x4e8] sm:$0xff]  ;;  %v1320_v5 = vld [vmem:[#allocation10 + $0x600] sm:$0xff] }
 0x238   :  { %1201 = vmatpush.msrb.mxu3 %v3947_v51  ;;  %1432 = vmatpush.msra.mxu0 %v1346_v62  ;;  %v1302_v62 = vld [vmem:[#allocation10 + $0x570] sm:$0xff] }
 0x239   :  { %3163 = vmatmul.msk.f32.vlgmr.msra.gmra.mxu3 %vm927_vm2, %v3884_v29  ;;  %1455 = vmatpush.msra.mxu1 %v1378_v7  ;;  %v1264_v29 = vld [vmem:[#allocation10 + $0x440] sm:$0xff]  ;;  %v1283_v7 = vld [vmem:[#allocation10 + $0x4d8] sm:$0xff] }
 0x23a   :  { %1389 = vmatpush.msrb.mxu2 %v1276_v18  ;;  %1433 = vmatpush.msra.mxu0 %v1344_v58  ;;  %v1351_v18 = vld [vmem:[#allocation10 + $0x6f8] sm:$0xff]  ;;  %v1354_v58 = vld [vmem:[#allocation10 + $0x710] sm:$0xff] }
 0x23b   :  { %3175 = vmatmul.msk.f32.vlgmr.msrb.gmra.mxu1 %vm927_vm2, %v3924_v47  ;;  %1407 = vmatpush.msra.mxu3 %v1318_v17  ;;  %v1381_v17 = vld [vmem:[#allocation10 + $0x7e8] sm:$0xff] }
 0x23c   :  { %1456 = vmatpush.msra.mxu1 %v1376_v14  ;;  %1390 = vmatpush.msrb.mxu2 %v1274_v60  ;;  %v1281_v14 = vld [vmem:[#allocation10 + $0x4c8] sm:$0xff]  ;;  %v1352_v60 = vld [vmem:[#allocation10 + $0x700] sm:$0xff] }
 0x23d   :  { %3174 = vmatmul.msk.f32.gmra.mxu0 %vm927_vm2, %v3951_v53  ;;  %1408 = vmatpush.msra.mxu3 %v1316_v10  ;;  %v1343_v10 = vld [vmem:[#allocation10 + $0x6b8] sm:$0xff] }
 0x23e   :  { %1434 = vmatpush.msra.mxu0 %v1342_v52  ;;  %1457 = vmatpush.msra.mxu1 %v1374_v6  ;;  %v1279_v52 = vld [vmem:[#allocation10 + $0x4b8] sm:$0xff] }
 0x23f   :  { %1391 = vmatpush.msrb.mxu2 %v1272_v15  ;;  %1409 = vmatpush.msra.mxu3 %v1314_v24  ;;  %v1383_v6 = vld [vmem:[#allocation10 + $0x7f8] sm:$0xff] }
 0x240   :  { %1435 = vmatpush.msra.mxu0 %v1340_v59  ;;  %1458 = vmatpush.msra.mxu1 %v1372_v57  ;;  %v1347_v15 = vld [vmem:[#allocation10 + $0x6d8] sm:$0xff]  ;;  %v1277_v59 = vld [vmem:[#allocation10 + $0x4a8] sm:$0xff] }
 0x241   :  { %3164 = vmatmul.msk.f32.gmra.mxu3 %vm927_vm2, %v3934_v49  ;;  %1392 = vmatpush.msrb.mxu2 %v1270_v35  ;;  %v1326_v49 = vld [vmem:[#allocation10 + $0x630] sm:$0xff]  ;;  %v1345_v35 = vld [vmem:[#allocation10 + $0x6c8] sm:$0xff]  ;;  %v1275_v57 = vld [vmem:[#allocation10 + $0x498] sm:$0xff] }
 0x242   :  { %1436 = vmatpush.msra.mxu0 %v1338_v0  ;;  %1459 = vmatpush.msra.mxu1 %v1370_v21  ;;  %v1379_v0 = vld [vmem:[#allocation10 + $0x7d8] sm:$0xff]  ;;  %v1377_v21 = vld [vmem:[#allocation10 + $0x7c8] sm:$0xff] }
 0x243   :  { %3176 = vmatmul.msk.f32.gmra.mxu1 %vm927_vm2, %v3951_v53  ;;  %1393 = vmatpush.msrb.mxu2 %v1268_v19  ;;  %v1273_v19 = vld [vmem:[#allocation10 + $0x488] sm:$0xff]  ;;  %v1271_v24 = vld [vmem:[#allocation10 + $0x478] sm:$0xff] }
 0x244   :  { %1437 = vmatpush.msra.mxu0 %v1336_v22  ;;  %1460 = vmatpush.msra.mxu1 %v1368_v31  ;;  %v1341_v22 = vld [vmem:[#allocation10 + $0x6a8] sm:$0xff] }
 0x245   :  { %1394 = vmatpush.msrb.mxu2 %v1266_v27  ;;  %1410 = vmatpush.msra.mxu3 %v1312_v13  ;;  %v1339_v27 = vld [vmem:[#allocation10 + $0x698] sm:$0xff]  ;;  %v1269_v31 = vld [vmem:[#allocation10 + $0x468] sm:$0xff] }
 0x246   :  { %1438 = vmatpush.msra.mxu0 %v1334_v36  ;;  %1461 = vmatpush.msra.mxu1 %v1366_v37  ;;  %v1337_v36 = vld [vmem:[#allocation10 + $0x688] sm:$0xff]  ;;  %v1375_v13 = vld [vmem:[#allocation10 + $0x7b8] sm:$0xff] }
 0x247   :  { %1395 = vmatpush.msrb.mxu2 %v1264_v29  ;;  %1411 = vmatpush.msra.mxu3 %v1310_v38  ;;  %v1300_v29 = vld [vmem:[#allocation10 + $0x560] sm:$0xff]  ;;  %v1335_v37 = vld [vmem:[#allocation10 + $0x678] sm:$0xff]  ;;  %v1298_v38 = vld [vmem:[#allocation10 + $0x550] sm:$0xff] }
 0x248   :  { %1439 = vmatpush.msra.mxu0 %v1332_v30  ;;  %1462 = vmatpush.msra.mxu1 %v1364_v20  ;;  %v1267_v30 = vld [vmem:[#allocation10 + $0x458] sm:$0xff]  ;;  %v1333_v20 = vld [vmem:[#allocation10 + $0x668] sm:$0xff] }
 0x249   :  { %3171 = vmatmul.msk.f32.vlgmr.msrb.gmra.mxu3 %vm927_vm2, %v3924_v47  ;;  %1396 = vmatpush.msrb.mxu2 %v1262_v23  ;;  %v1256_v47 = vld [vmem:[#allocation10 + $0x400] sm:$0xff]  ;;  %v1373_v23 = vld [vmem:[#allocation10 + $0x7a8] sm:$0xff] }
 0x24a   :  { %1440 = vmatpush.msra.mxu0 %v1330_v41  ;;  %1412 = vmatpush.msra.mxu3 %v1308_v43  ;;  %v1265_v41 = vld [vmem:[#allocation10 + $0x448] sm:$0xff]  ;;  %v1296_v43 = vld [vmem:[#allocation10 + $0x540] sm:$0xff] }
 0x24b   :  { %1397 = vmatpush.msrb.mxu2 %v1260_v39  ;;  %1463 = vmatpush.msra.mxu1 %v1362_v46  ;;  %v1371_v39 = vld [vmem:[#allocation10 + $0x798] sm:$0xff] }
 0x24c   :  { %1441 = vmatpush.msra.mxu0 %v1328_v45  ;;  %1413 = vmatpush.msra.mxu3 %v1306_v28  ;;  %v1263_v45 = vld [vmem:[#allocation10 + $0x438] sm:$0xff]  ;;  %v1294_v28 = vld [vmem:[#allocation10 + $0x530] sm:$0xff] }
 0x24d   :  { %1398 = vmatpush.msrb.mxu2 %v1258_v16  ;;  %1464 = vmatpush.msra.mxu1 %v1360_v54  ;;  %v1331_v46 = vld [vmem:[#allocation10 + $0x658] sm:$0xff]  ;;  %v1369_v16 = vld [vmem:[#allocation10 + $0x788] sm:$0xff] }
 0x24e   :  { %1442 = vmatpush.msra.mxu0 %v1326_v49  ;;  %1414 = vmatpush.msra.mxu3 %v1304_v2  ;;  %v1261_v49 = vld [vmem:[#allocation10 + $0x428] sm:$0xff] }
 0x24f   :  { %1399 = vmatpush.msrb.mxu2 %v1256_v47  ;;  %1465 = vmatpush.msra.mxu1 %v1358_v1  ;;  %v1329_v54 = vld [vmem:[#allocation10 + $0x648] sm:$0xff]  ;;  %v1367_v47 = vld [vmem:[#allocation10 + $0x778] sm:$0xff] }
 0x250   :  { %1443 = vmatpush.msra.mxu0 %v1324_v55  ;;  %1415 = vmatpush.msra.mxu3 %v1302_v62  ;;  %v1292_v55 = vld [vmem:[#allocation10 + $0x520] sm:$0xff]  ;;  %v1327_v1 = vld [vmem:[#allocation10 + $0x638] sm:$0xff]  ;;  %v1365_v2 = vld [vmem:[#allocation10 + $0x768] sm:$0xff] }
 0x251   :  { %3172 = vmatmul.msk.f32.gmra.mxu3 %vm927_vm2, %v3951_v53  ;;  %1476 = vmatpush.msra.mxu2 %v1287_v56  ;;  %v1349_v53 = vld [vmem:[#allocation10 + $0x6e8] sm:$0xff]  ;;  %v1259_v56 = vld [vmem:[#allocation10 + $0x418] sm:$0xff] }
 0x252   :  { %1444 = vmatpush.msra.mxu0 %v1322_v3  ;;  %1466 = vmatpush.msra.mxu1 %v1356_v8  ;;  %v1290_v3 = vld [vmem:[#allocation10 + $0x510] sm:$0xff]  ;;  %v1325_v8 = vld [vmem:[#allocation10 + $0x628] sm:$0xff]  ;;  %v1363_v62 = vld [vmem:[#allocation10 + $0x758] sm:$0xff] }
 0x253   :  { %1477 = vmatpush.msra.mxu2 %v1285_v4  ;;  %1416 = vmatpush.msra.mxu3 %v1300_v29  ;;  %v1257_v4 = vld [vmem:[#allocation10 + $0x408] sm:$0xff] }
 0x254   :  { %1445 = vmatpush.msra.mxu0 %v1320_v5  ;;  %1467 = vmatpush.msra.mxu1 %v1354_v58  ;;  %v1288_v5 = vld [vmem:[#allocation10 + $0x500] sm:$0xff]  ;;  %v1361_v58 = vld [vmem:[#allocation10 + $0x748] sm:$0xff] }
 0x255   :  { %1478 = vmatpush.msra.mxu2 %v1283_v7  ;;  %1417 = vmatpush.msra.mxu3 %v1298_v38  ;;  %v1319_v7 = vld [vmem:[#allocation10 + $0x5f8] sm:$0xff] }
 0x256   :  { %1522 = vmatpush.msrb.mxu0 %v1351_v18  ;;  %1468 = vmatpush.msra.mxu1 %v1352_v60  ;;  %v1323_v18 = vld [vmem:[#allocation10 + $0x618] sm:$0xff] }
 0x257   :  { %1479 = vmatpush.msra.mxu2 %v1281_v14  ;;  %1418 = vmatpush.msra.mxu3 %v1296_v43  ;;  %v1317_v14 = vld [vmem:[#allocation10 + $0x5e8] sm:$0xff]  ;;  %v1359_v60 = vld [vmem:[#allocation10 + $0x738] sm:$0xff]  ;;  %v1052_v43 = vld [vmem:[#allocation10 + $0xd0] sm:$0xff] }
 0x258   :  { %1523 = vmatpush.msrb.mxu0 %v1349_v53  ;;  %1545 = vmatpush.msrb.mxu1 %v1383_v6  ;;  %v1321_v53 = vld [vmem:[#allocation10 + $0x608] sm:$0xff]  ;;  %v1291_v38 = vld [vmem:[#allocation10 + $0x518] sm:$0xff] }
 0x259   :  { %1480 = vmatpush.msra.mxu2 %v1279_v52  ;;  %1419 = vmatpush.msra.mxu3 %v1294_v28  ;;  %v1315_v52 = vld [vmem:[#allocation10 + $0x5d8] sm:$0xff]  ;;  %v1357_v6 = vld [vmem:[#allocation10 + $0x728] sm:$0xff]  ;;  %v1118_v28 = vld [vmem:[#allocation10 + $0x2e0] sm:$0xff] }
 0x25a   :  { %1524 = vmatpush.msrb.mxu0 %v1347_v15  ;;  %1546 = vmatpush.msrb.mxu1 %v1381_v17  ;;  %v1313_v15 = vld [vmem:[#allocation10 + $0x5c8] sm:$0xff]  ;;  %v1311_v17 = vld [vmem:[#allocation10 + $0x5b8] sm:$0xff] }
 0x25b   :  { %1481 = vmatpush.msra.mxu2 %v1277_v59  ;;  %1420 = vmatpush.msra.mxu3 %v1292_v55  ;;  %v1355_v59 = vld [vmem:[#allocation10 + $0x718] sm:$0xff] }
 0x25c   :  { %1525 = vmatpush.msrb.mxu0 %v1345_v35  ;;  %1547 = vmatpush.msrb.mxu1 %v1379_v0  ;;  %v1353_v35 = vld [vmem:[#allocation10 + $0x708] sm:$0xff]  ;;  %v1307_v0 = vld [vmem:[#allocation10 + $0x598] sm:$0xff] }
 0x25d   :  { %1482 = vmatpush.msra.mxu2 %v1275_v57  ;;  %1421 = vmatpush.msra.mxu3 %v1290_v3  ;;  %v1309_v57 = vld [vmem:[#allocation10 + $0x5a8] sm:$0xff]  ;;  %v1152_v3 = vld [vmem:[#allocation10 + $0x3f0] sm:$0xff] }
 0x25e   :  { %1526 = vmatpush.msrb.mxu0 %v1343_v10  ;;  %1548 = vmatpush.msrb.mxu1 %v1377_v21  ;;  %v1305_v10 = vld [vmem:[#allocation10 + $0x588] sm:$0xff]  ;;  %v1303_v21 = vld [vmem:[#allocation10 + $0x578] sm:$0xff] }
 0x25f   :  { %1483 = vmatpush.msra.mxu2 %v1273_v19  ;;  %1422 = vmatpush.msra.mxu3 %v1288_v5  ;;  %v1150_v5 = vld [vmem:[#allocation10 + $0x3e0] sm:$0xff] }
 0x260   :  { %1527 = vmatpush.msrb.mxu0 %v1341_v22  ;;  %1549 = vmatpush.msrb.mxu1 %v1375_v13  ;;  %v1301_v22 = vld [vmem:[#allocation10 + $0x568] sm:$0xff]  ;;  %v1295_v13 = vld [vmem:[#allocation10 + $0x538] sm:$0xff] }
 0x261   :  { %1484 = vmatpush.msra.mxu2 %v1271_v24  ;;  %1499 = vmatpush.msrb.mxu3 %v1319_v7  ;;  %v1299_v24 = vld [vmem:[#allocation10 + $0x558] sm:$0xff]  ;;  %v1042_v7 = vld [vmem:[#allocation10 + $0x80] sm:$0xff] }
 0x262   :  { %1528 = vmatpush.msrb.mxu0 %v1339_v27  ;;  %1550 = vmatpush.msrb.mxu1 %v1373_v23 }
 0x263   :  { %1485 = vmatpush.msra.mxu2 %v1269_v31  ;;  %1500 = vmatpush.msrb.mxu3 %v1317_v14  ;;  %v1297_v31 = vld [vmem:[#allocation10 + $0x548] sm:$0xff] }
 0x264   :  { %1529 = vmatpush.msrb.mxu0 %v1337_v36  ;;  %1551 = vmatpush.msrb.mxu1 %v1371_v39  ;;  %v1289_v39 = vld [vmem:[#allocation10 + $0x508] sm:$0xff] }
 0x265   :  { %1486 = vmatpush.msra.mxu2 %v1267_v30  ;;  %1501 = vmatpush.msrb.mxu3 %v1315_v52  ;;  %v1293_v30 = vld [vmem:[#allocation10 + $0x528] sm:$0xff]  ;;  %v1146_v52 = vld [vmem:[#allocation10 + $0x3c0] sm:$0xff] }
 0x266   :  { %1530 = vmatpush.msrb.mxu0 %v1335_v37  ;;  %1552 = vmatpush.msrb.mxu1 %v1369_v16  ;;  %v1056_v37 = vld [vmem:[#allocation10 + $0xf0] sm:$0xff]  ;;  %v1050_v16 = vld [vmem:[#allocation10 + $0xc0] sm:$0xff] }
 0x267   :  { %1487 = vmatpush.msra.mxu2 %v1265_v41  ;;  %1502 = vmatpush.msrb.mxu3 %v1313_v15  ;;  %v1054_v41 = vld [vmem:[#allocation10 + $0xe0] sm:$0xff] }
 0x268   :  { %1531 = vmatpush.msrb.mxu0 %v1333_v20  ;;  %1553 = vmatpush.msrb.mxu1 %v1367_v47  ;;  %v1116_v47 = vld [vmem:[#allocation10 + $0x2d0] sm:$0xff] }
 0x269   :  { %1488 = vmatpush.msra.mxu2 %v1263_v45  ;;  %1503 = vmatpush.msrb.mxu3 %v1311_v17  ;;  %v1120_v45 = vld [vmem:[#allocation10 + $0x2f0] sm:$0xff] }
 0x26a   :  { %1532 = vmatpush.msrb.mxu0 %v1331_v46  ;;  %1554 = vmatpush.msrb.mxu1 %v1365_v2  ;;  %v1144_v17 = vld [vmem:[#allocation10 + $0x3b0] sm:$0xff] }
 0x26b   :  { %1489 = vmatpush.msra.mxu2 %v1261_v49  ;;  %1504 = vmatpush.msrb.mxu3 %v1309_v57  ;;  %v1104_v57 = vld [vmem:[#allocation10 + $0x270] sm:$0xff] }
 0x26c   :  { %1533 = vmatpush.msrb.mxu0 %v1329_v54  ;;  %1555 = vmatpush.msrb.mxu1 %v1363_v62  ;;  %v1048_v54 = vld [vmem:[#allocation10 + $0xb0] sm:$0xff] }
 0x26d   :  { %1490 = vmatpush.msra.mxu2 %v1259_v56  ;;  %1505 = vmatpush.msrb.mxu3 %v1307_v0  ;;  %v1046_v56 = vld [vmem:[#allocation10 + $0xa0] sm:$0xff] }
 0x26e   :  { %1534 = vmatpush.msrb.mxu0 %v1327_v1  ;;  %1556 = vmatpush.msrb.mxu1 %v1361_v58  ;;  %v1114_v1 = vld [vmem:[#allocation10 + $0x2c0] sm:$0xff]  ;;  %v1148_v58 = vld [vmem:[#allocation10 + $0x3d0] sm:$0xff] }
 0x26f   :  { %1491 = vmatpush.msra.mxu2 %v1257_v4  ;;  %1506 = vmatpush.msrb.mxu3 %v1305_v10  ;;  %v1044_v4 = vld [vmem:[#allocation10 + $0x90] sm:$0xff]  ;;  %v1142_v0 = vld [vmem:[#allocation10 + $0x3a0] sm:$0xff] }
 0x270   :  { %1535 = vmatpush.msrb.mxu0 %v1325_v8  ;;  %1557 = vmatpush.msrb.mxu1 %v1359_v60  ;;  %v1112_v8 = vld [vmem:[#allocation10 + $0x2b0] sm:$0xff]  ;;  %v1034_v10 = vld [vmem:[#allocation10 + $0x40] sm:$0xff] }
 0x271   :  { %1507 = vmatpush.msrb.mxu3 %v1303_v21  ;;  %v1108_v60 = vld [vmem:[#allocation10 + $0x290] sm:$0xff]  ;;  %v1102_v21 = vld [vmem:[#allocation10 + $0x260] sm:$0xff] }
 0x272   :  { %1536 = vmatpush.msrb.mxu0 %v1323_v18  ;;  %1558 = vmatpush.msrb.mxu1 %v1357_v6  ;;  %v1110_v18 = vld [vmem:[#allocation10 + $0x2a0] sm:$0xff] }
 0x273   :  { %1508 = vmatpush.msrb.mxu3 %v1301_v22  ;;  %v1038_v6 = vld [vmem:[#allocation10 + $0x60] sm:$0xff]  ;;  %v1140_v22 = vld [vmem:[#allocation10 + $0x390] sm:$0xff] }
 0x274   :  { %1537 = vmatpush.msrb.mxu0 %v1321_v53  ;;  %1559 = vmatpush.msrb.mxu1 %v1355_v59  ;;  %v1040_v53 = vld [vmem:[#allocation10 + $0x70] sm:$0xff]  ;;  %v1106_v59 = vld [vmem:[#allocation10 + $0x280] sm:$0xff] }
 0x275   :  { %1509 = vmatpush.msrb.mxu3 %v1299_v24 }
 0x276   :  { %1560 = vmatpush.msrb.mxu1 %v1353_v35  ;;  %v1036_v35 = vld [vmem:[#allocation10 + $0x50] sm:$0xff] }
 0x277   :  { %1510 = vmatpush.msrb.mxu3 %v1297_v31  ;;  %v1032_v31 = vld [vmem:[#allocation10 + $0x30] sm:$0xff] }
 0x279   :  { %1511 = vmatpush.msrb.mxu3 %v1295_v13  ;;  %v1100_v13 = vld [vmem:[#allocation10 + $0x250] sm:$0xff] }
 0x27b   :  { %1512 = vmatpush.msrb.mxu3 %v1293_v30  ;;  %v1138_v30 = vld [vmem:[#allocation10 + $0x380] sm:$0xff] }
 0x27d   :  { %1513 = vmatpush.msrb.mxu3 %v1291_v38  ;;  %v1136_v38 = vld [vmem:[#allocation10 + $0x370] sm:$0xff] }
 0x27f   :  { %1514 = vmatpush.msrb.mxu3 %v1289_v39  ;;  %v1096_v39 = vld [vmem:[#allocation10 + $0x230] sm:$0xff] }
 0x2a0   :  { %v3980_v19 = vpop.f32.mrf.mxu0 }
 0x2a7   :  { %v3982_v27 = vpop.f32.mrf.mxu1 }
 0x2aa   :  { %v3984_v36 = vpop.f32.mrf.mxu0 }
 0x2ac   :  { %v3986_v29 = vpop.f32.mrf.mxu3 }
 0x2ae   :  { %v1180_v23 = vpop.f32.mrf.mxu2 }
 0x2af   :  { %1400 = vmatmul.f32.vlgmr.msrb.gmra.mxu2 %v1180_v23 }
 0x2b0   :  { %1568 = vmatpush.msrb.mxu2 %v1056_v37  ;;  %v3988_v20 = vpop.f32.mrf.mxu1  ;;  %v1030_v37 = vld [vmem:[#allocation10 + $0x20] sm:$0xff] }
 0x2b2   :  { %1569 = vmatpush.msrb.mxu2 %v1054_v41  ;;  %v1226_v46 = vpop.f32.mrf.mxu0  ;;  %v1028_v41 = vld [vmem:[#allocation10 + $0x10] sm:$0xff] }
 0x2b3   :  { %1446 = vmatmul.f32.vlgmr.msra.gmra.mxu0 %v1226_v46 }
 0x2b4   :  { %1570 = vmatpush.msrb.mxu2 %v1052_v43  ;;  %1614 = vmatpush.msra.mxu0 %v1120_v45  ;;  %v3990_v49 = vpop.f32.mrf.mxu3  ;;  %v1134_v43 = vld [vmem:[#allocation10 + $0x360] sm:$0xff] }
 0x2b5   :  { %v1026_v45 = vld [vmem:[#allocation10] sm:$0xff] }
 0x2b6   :  { %1571 = vmatpush.msrb.mxu2 %v1050_v16  ;;  %1615 = vmatpush.msra.mxu0 %v1118_v28  ;;  %v1183_v55 = vpop.f32.mrf.mxu2  ;;  %v1132_v16 = vld [vmem:[#allocation10 + $0x350] sm:$0xff] }
 0x2b7   :  { %1403 = vmatmul.f32.gmra.mxu2 %v1183_v55 }
 0x2b8   :  { %1572 = vmatpush.msrb.mxu2 %v1048_v54  ;;  %1616 = vmatpush.msra.mxu0 %v1116_v47  ;;  %v1249_v2 = vpop.f32.mrf.mxu1  ;;  %v1057_v54 = vld [vmem:[#allocation10 + $0xf8] sm:$0xff]  ;;  %v1088_v47 = vld [vmem:[#allocation10 + $0x1f0] sm:$0xff] }
 0x2b9   :  { %1469 = vmatmul.f32.vlgmr.msra.gmra.mxu1 %v1249_v2 }
 0x2ba   :  { %1573 = vmatpush.msrb.mxu2 %v1046_v56  ;;  %1617 = vmatpush.msra.mxu0 %v1114_v1  ;;  %v1229_v62 = vpop.f32.mrf.mxu0  ;;  %v1130_v56 = vld [vmem:[#allocation10 + $0x340] sm:$0xff]  ;;  %v1055_v1 = vld [vmem:[#allocation10 + $0xe8] sm:$0xff] }
 0x2bb   :  { %1637 = vmatpush.msra.mxu1 %v1152_v3  ;;  %1449 = vmatmul.f32.gmra.mxu0 %v1229_v62  ;;  %v1090_v3 = vld [vmem:[#allocation10 + $0x200] sm:$0xff] }
 0x2bc   :  { %1574 = vmatpush.msrb.mxu2 %v1044_v4  ;;  %1618 = vmatpush.msra.mxu0 %v1112_v8  ;;  %v3992_v14 = vpop.f32.mrf.mxu3  ;;  %v1128_v4 = vld [vmem:[#allocation10 + $0x330] sm:$0xff]  ;;  %v1053_v8 = vld [vmem:[#allocation10 + $0xd8] sm:$0xff] }
 0x2bd   :  { %1638 = vmatpush.msra.mxu1 %v1150_v5  ;;  %v1084_v5 = vld [vmem:[#allocation10 + $0x1d0] sm:$0xff] }
 0x2be   :  { %1575 = vmatpush.msrb.mxu2 %v1042_v7  ;;  %1619 = vmatpush.msra.mxu0 %v1110_v18  ;;  %v1126_v7 = vld [vmem:[#allocation10 + $0x320] sm:$0xff]  ;;  %v1051_v18 = vld [vmem:[#allocation10 + $0xc8] sm:$0xff] }
 0x2bf   :  { %1639 = vmatpush.msra.mxu1 %v1148_v58  ;;  %1492 = vmatmul.f32.vlgmr.msra.gmra.mxu2 %v1180_v23  ;;  %v1098_v23 = vld [vmem:[#allocation10 + $0x240] sm:$0xff]  ;;  %v1119_v58 = vld [vmem:[#allocation10 + $0x2e8] sm:$0xff] }
 0x2c0   :  { %1576 = vmatpush.msrb.mxu2 %v1040_v53  ;;  %1620 = vmatpush.msra.mxu0 %v1108_v60  ;;  %v3994_v15 = vpop.f32.mrf.mxu1  ;;  %v1082_v53 = vld [vmem:[#allocation10 + $0x1c0] sm:$0xff]  ;;  %v1124_v60 = vld [vmem:[#allocation10 + $0x310] sm:$0xff] }
 0x2c1   :  { %1640 = vmatpush.msra.mxu1 %v1146_v52  ;;  %v1049_v52 = vld [vmem:[#allocation10 + $0xb8] sm:$0xff] }
 0x2c2   :  { %1472 = vmatmul.f32.gmra.mxu1 %v3994_v15  ;;  %1577 = vmatpush.msrb.mxu2 %v1038_v6 }
 0x2c3   :  { %1621 = vmatpush.msra.mxu0 %v1106_v59  ;;  %1641 = vmatpush.msra.mxu1 %v1144_v17  ;;  %v1080_v59 = vld [vmem:[#allocation10 + $0x1b0] sm:$0xff]  ;;  %v1122_v17 = vld [vmem:[#allocation10 + $0x300] sm:$0xff] }
 0x2c4   :  { %1538 = vmatmul.f32.vlgmr.msrb.gmra.mxu0 %v1226_v46  ;;  %1578 = vmatpush.msrb.mxu2 %v1036_v35  ;;  %v3997_v24 = vpop.f32.mrf.mxu3  ;;  %v1094_v46 = vld [vmem:[#allocation10 + $0x220] sm:$0xff]  ;;  %v1047_v35 = vld [vmem:[#allocation10 + $0xa8] sm:$0xff] }
 0x2c5   :  { %1622 = vmatpush.msra.mxu0 %v1104_v57  ;;  %1642 = vmatpush.msra.mxu1 %v1142_v0  ;;  %v1115_v57 = vld [vmem:[#allocation10 + $0x2c8] sm:$0xff]  ;;  %v1153_v0 = vld [vmem:[#allocation10 + $0x3f8] sm:$0xff] }
 0x2c6   :  { %1579 = vmatpush.msrb.mxu2 %v1034_v10  ;;  %v1078_v10 = vld [vmem:[#allocation10 + $0x1a0] sm:$0xff] }
 0x2c7   :  { %1623 = vmatpush.msra.mxu0 %v1102_v21  ;;  %1643 = vmatpush.msra.mxu1 %v1140_v22  ;;  %v1045_v21 = vld [vmem:[#allocation10 + $0x98] sm:$0xff] }
 0x2c8   :  { %1495 = vmatmul.f32.gmra.mxu2 %v1183_v55  ;;  %v1092_v55 = vld [vmem:[#allocation10 + $0x210] sm:$0xff]  ;;  %v1113_v22 = vld [vmem:[#allocation10 + $0x2b8] sm:$0xff] }
 0x2c9   :  { %1580 = vmatpush.msrb.mxu2 %v1032_v31  ;;  %1624 = vmatpush.msra.mxu0 %v1100_v13  ;;  %v1151_v31 = vld [vmem:[#allocation10 + $0x3e8] sm:$0xff]  ;;  %v1076_v13 = vld [vmem:[#allocation10 + $0x190] sm:$0xff] }
 0x2ca   :  { %1644 = vmatpush.msra.mxu1 %v1138_v30  ;;  %v1043_v30 = vld [vmem:[#allocation10 + $0x88] sm:$0xff] }
 0x2cb   :  { %1561 = vmatmul.f32.vlgmr.msrb.gmra.mxu1 %v1249_v2  ;;  %1581 = vmatpush.msrb.mxu2 %v1030_v37  ;;  %v1086_v2 = vld [vmem:[#allocation10 + $0x1e0] sm:$0xff]  ;;  %v1111_v37 = vld [vmem:[#allocation10 + $0x2a8] sm:$0xff] }
 0x2cc   :  { %1625 = vmatpush.msra.mxu0 %v1098_v23  ;;  %1645 = vmatpush.msra.mxu1 %v1136_v38  ;;  %v3999_v28 = vpop.f32.mrf.mxu3  ;;  %v1149_v23 = vld [vmem:[#allocation10 + $0x3d8] sm:$0xff]  ;;  %v1074_v38 = vld [vmem:[#allocation10 + $0x180] sm:$0xff] }
 0x2cd   :  { %1541 = vmatmul.f32.gmra.mxu0 %v1229_v62  ;;  %1582 = vmatpush.msrb.mxu2 %v1028_v41  ;;  %v1121_v62 = vld [vmem:[#allocation10 + $0x2f8] sm:$0xff] }
 0x2ce   :  { %1626 = vmatpush.msra.mxu0 %v1096_v39  ;;  %1646 = vmatpush.msra.mxu1 %v1134_v43  ;;  %v1041_v41 = vld [vmem:[#allocation10 + $0x78] sm:$0xff]  ;;  %v1147_v43 = vld [vmem:[#allocation10 + $0x3c8] sm:$0xff] }
 0x2cf   :  { %1583 = vmatpush.msrb.mxu2 %v1026_v45  ;;  %1423 = vmatmul.f32.vlgmr.msra.gmra.mxu3 %v3999_v28  ;;  %v1109_v39 = vld [vmem:[#allocation10 + $0x298] sm:$0xff]  ;;  %v1039_v45 = vld [vmem:[#allocation10 + $0x68] sm:$0xff] }
 0x2d0   :  { %1627 = vmatpush.msra.mxu0 %v1094_v46  ;;  %1647 = vmatpush.msra.mxu1 %v1132_v16  ;;  %v1072_v46 = vld [vmem:[#allocation10 + $0x170] sm:$0xff]  ;;  %v1107_v16 = vld [vmem:[#allocation10 + $0x288] sm:$0xff] }
 0x2d1   :  { %1660 = vmatpush.msra.mxu2 %v1057_v54  ;;  %1591 = vmatpush.msra.mxu3 %v1088_v47  ;;  %v1145_v54 = vld [vmem:[#allocation10 + $0x3b8] sm:$0xff] }
 0x2d2   :  { %1584 = vmatmul.f32.vlgmr.msrb.gmra.mxu2 %v3986_v29  ;;  %1628 = vmatpush.msra.mxu0 %v1092_v55  ;;  %v1037_v47 = vld [vmem:[#allocation10 + $0x58] sm:$0xff]  ;;  %v1070_v55 = vld [vmem:[#allocation10 + $0x160] sm:$0xff] }
 0x2d3   :  { %1648 = vmatpush.msra.mxu1 %v1130_v56  ;;  %1661 = vmatpush.msra.mxu2 %v1055_v1  ;;  %v1105_v56 = vld [vmem:[#allocation10 + $0x278] sm:$0xff]  ;;  %v1143_v1 = vld [vmem:[#allocation10 + $0x3a8] sm:$0xff] }
 0x2d4   :  { %1564 = vmatmul.f32.gmra.mxu1 %v3994_v15  ;;  %1592 = vmatpush.msra.mxu3 %v1086_v2  ;;  %v4005_v6 = vpop.f32.mrf.mxu3  ;;  %v1117_v15 = vld [vmem:[#allocation10 + $0x2d8] sm:$0xff]  ;;  %v1068_v2 = vld [vmem:[#allocation10 + $0x150] sm:$0xff] }
 0x2d5   :  { %1629 = vmatpush.msra.mxu0 %v1090_v3  ;;  %1649 = vmatpush.msra.mxu1 %v1128_v4  ;;  %v1035_v3 = vld [vmem:[#allocation10 + $0x48] sm:$0xff] }
 0x2d6   :  { %1662 = vmatpush.msra.mxu2 %v1053_v8  ;;  %1593 = vmatpush.msra.mxu3 %v1084_v5  ;;  %v1103_v4 = vld [vmem:[#allocation10 + $0x268] sm:$0xff]  ;;  %v1141_v8 = vld [vmem:[#allocation10 + $0x398] sm:$0xff] }
 0x2d7   :  { %1706 = vmatpush.msrb.mxu0 %v1121_v62  ;;  %1650 = vmatpush.msra.mxu1 %v1126_v7  ;;  %v1066_v62 = vld [vmem:[#allocation10 + $0x140] sm:$0xff]  ;;  %v1033_v5 = vld [vmem:[#allocation10 + $0x38] sm:$0xff]  ;;  %v1139_v7 = vld [vmem:[#allocation10 + $0x388] sm:$0xff] }
 0x2d8   :  { %1630 = vmatmul.f32.vlgmr.msra.gmra.mxu0 %v3980_v19  ;;  %1663 = vmatpush.msra.mxu2 %v1051_v18  ;;  %v1031_v18 = vld [vmem:[#allocation10 + $0x28] sm:$0xff] }
 0x2d9   :  { %1707 = vmatpush.msrb.mxu0 %v1119_v58  ;;  %1594 = vmatpush.msra.mxu3 %v1082_v53  ;;  %v1064_v58 = vld [vmem:[#allocation10 + $0x130] sm:$0xff]  ;;  %v1099_v53 = vld [vmem:[#allocation10 + $0x248] sm:$0xff] }
 0x2da   :  { %1651 = vmatpush.msra.mxu1 %v1124_v60  ;;  %1664 = vmatpush.msra.mxu2 %v1049_v52  ;;  %v1137_v60 = vld [vmem:[#allocation10 + $0x378] sm:$0xff] }
 0x2db   :  { %1708 = vmatpush.msrb.mxu0 %v1117_v15  ;;  %1426 = vmatmul.f32.gmra.mxu3 %v4005_v6  ;;  %v1029_v52 = vld [vmem:[#allocation10 + $0x18] sm:$0xff]  ;;  %v1062_v15 = vld [vmem:[#allocation10 + $0x120] sm:$0xff] }
 0x2dc   :  { %1587 = vmatmul.f32.gmra.mxu2 %v3990_v49  ;;  %1595 = vmatpush.msra.mxu3 %v1080_v59  ;;  %v1097_v59 = vld [vmem:[#allocation10 + $0x238] sm:$0xff] }
 0x2dd   :  { %1652 = vmatpush.msra.mxu1 %v1122_v17  ;;  %1665 = vmatpush.msra.mxu2 %v1047_v35  ;;  %v1135_v17 = vld [vmem:[#allocation10 + $0x368] sm:$0xff] }
 0x2de   :  { %1709 = vmatpush.msrb.mxu0 %v1115_v57  ;;  %1596 = vmatpush.msra.mxu3 %v1078_v10  ;;  %v1027_v35 = vld [vmem:[#allocation10 + $0x8] sm:$0xff]  ;;  %v1060_v57 = vld [vmem:[#allocation10 + $0x110] sm:$0xff]  ;;  %v1133_v10 = vld [vmem:[#allocation10 + $0x358] sm:$0xff] }
 0x2df   :  { %1729 = vmatpush.msrb.mxu1 %v1153_v0  ;;  %1666 = vmatpush.msra.mxu2 %v1045_v21  ;;  %v1095_v0 = vld [vmem:[#allocation10 + $0x228] sm:$0xff]  ;;  %v1058_v21 = vld [vmem:[#allocation10 + $0x100] sm:$0xff] }
 0x2e0   :  { %1653 = vmatmul.f32.vlgmr.msra.gmra.mxu1 %v3982_v27  ;;  %1710 = vmatpush.msrb.mxu0 %v1113_v22  ;;  %v1093_v22 = vld [vmem:[#allocation10 + $0x218] sm:$0xff] }
 0x2e1   :  { %1730 = vmatpush.msrb.mxu1 %v1151_v31  ;;  %1597 = vmatpush.msra.mxu3 %v1076_v13  ;;  %v1131_v31 = vld [vmem:[#allocation10 + $0x348] sm:$0xff] }
 0x2e2   :  { %1633 = vmatmul.f32.gmra.mxu0 %v3984_v36  ;;  %1667 = vmatpush.msra.mxu2 %v1043_v30  ;;  %v1087_v13 = vld [vmem:[#allocation10 + $0x1e8] sm:$0xff] }
 0x2e3   :  { %1711 = vmatpush.msrb.mxu0 %v1111_v37  ;;  %1731 = vmatpush.msrb.mxu1 %v1149_v23  ;;  %v1091_v30 = vld [vmem:[#allocation10 + $0x208] sm:$0xff]  ;;  %v1129_v37 = vld [vmem:[#allocation10 + $0x338] sm:$0xff] }
 0x2e4   :  { %1598 = vmatpush.msra.mxu3 %v1074_v38  ;;  %1668 = vmatpush.msra.mxu2 %v1041_v41  ;;  %v1085_v23 = vld [vmem:[#allocation10 + $0x1d8] sm:$0xff]  ;;  %v1127_v38 = vld [vmem:[#allocation10 + $0x328] sm:$0xff] }
 0x2e5   :  { %1712 = vmatpush.msrb.mxu0 %v1109_v39  ;;  %1732 = vmatpush.msrb.mxu1 %v1147_v43  ;;  %v1081_v41 = vld [vmem:[#allocation10 + $0x1b8] sm:$0xff] }
 0x2e6   :  { %1515 = vmatmul.f32.vlgmr.msrb.gmra.mxu3 %v3999_v28  ;;  %1669 = vmatpush.msra.mxu2 %v1039_v45  ;;  %v1101_v28 = vld [vmem:[#allocation10 + $0x258] sm:$0xff]  ;;  %v1884_v45 = vld [vmem:[#allocation10 + $0x8f0] sm:$0xff] }
 0x2e7   :  { %1599 = vmatpush.msra.mxu3 %v1072_v46  ;;  %1713 = vmatpush.msrb.mxu0 %v1107_v16  ;;  %v1882_v46 = vld [vmem:[#allocation10 + $0x8e0] sm:$0xff] }
 0x2e8   :  { %1733 = vmatpush.msrb.mxu1 %v1145_v54  ;;  %1670 = vmatpush.msra.mxu2 %v1037_v47 }
 0x2e9   :  { %1600 = vmatpush.msra.mxu3 %v1070_v55  ;;  %1656 = vmatmul.f32.gmra.mxu1 %v3988_v20 }
 0x2ea   :  { %1714 = vmatpush.msrb.mxu0 %v1105_v56  ;;  %1734 = vmatpush.msrb.mxu1 %v1143_v1  ;;  %v1876_v56 = vld [vmem:[#allocation10 + $0x8b0] sm:$0xff] }
 0x2eb   :  { %1601 = vmatpush.msra.mxu3 %v1068_v2  ;;  %1671 = vmatpush.msra.mxu2 %v1035_v3  ;;  %v1948_v1 = vld [vmem:[#allocation10 + $0xaf0] sm:$0xff]  ;;  %v1874_v2 = vld [vmem:[#allocation10 + $0x8a0] sm:$0xff] }
 0x2ec   :  { %1715 = vmatpush.msrb.mxu0 %v1103_v4  ;;  %1735 = vmatpush.msrb.mxu1 %v1141_v8  ;;  %v1946_v3 = vld [vmem:[#allocation10 + $0xae0] sm:$0xff]  ;;  %v1980_v4 = vld [vmem:[#allocation10 + $0xbf0] sm:$0xff] }
 0x2ed   :  { %1602 = vmatpush.msra.mxu3 %v1066_v62  ;;  %1672 = vmatpush.msra.mxu2 %v1033_v5  ;;  %v1872_v5 = vld [vmem:[#allocation10 + $0x890] sm:$0xff] }
 0x2ee   :  { %1716 = vmatpush.msrb.mxu0 %v1101_v28  ;;  %1736 = vmatpush.msrb.mxu1 %v1139_v7  ;;  %v1944_v28 = vld [vmem:[#allocation10 + $0xad0] sm:$0xff]  ;;  %v1978_v7 = vld [vmem:[#allocation10 + $0xbe0] sm:$0xff] }
 0x2ef   :  { %1518 = vmatmul.f32.gmra.mxu3 %v4005_v6  ;;  %1673 = vmatpush.msra.mxu2 %v1031_v18  ;;  %v1089_v6 = vld [vmem:[#allocation10 + $0x1f8] sm:$0xff] }
 0x2f0   :  { %1603 = vmatpush.msra.mxu3 %v1064_v58  ;;  %1717 = vmatpush.msrb.mxu0 %v1099_v53  ;;  %v1870_v53 = vld [vmem:[#allocation10 + $0x880] sm:$0xff] }
 0x2f1   :  { %1737 = vmatpush.msrb.mxu1 %v1137_v60  ;;  %1674 = vmatpush.msra.mxu2 %v1029_v52  ;;  %v1942_v60 = vld [vmem:[#allocation10 + $0xac0] sm:$0xff]  ;;  %v1976_v52 = vld [vmem:[#allocation10 + $0xbd0] sm:$0xff] }
 0x2f2   :  { %1604 = vmatpush.msra.mxu3 %v1062_v15  ;;  %1718 = vmatpush.msrb.mxu0 %v1097_v59 }
 0x2f3   :  { %1738 = vmatpush.msrb.mxu1 %v1135_v17  ;;  %1675 = vmatpush.msra.mxu2 %v1027_v35  ;;  %v1868_v17 = vld [vmem:[#allocation10 + $0x870] sm:$0xff] }
 0x2f4   :  { %1605 = vmatpush.msra.mxu3 %v1060_v57  ;;  %1719 = vmatpush.msrb.mxu0 %v1095_v0  ;;  %v1916_v35 = vld [vmem:[#allocation10 + $0x9f0] sm:$0xff] }
 0x2f5   :  { %1739 = vmatpush.msrb.mxu1 %v1133_v10  ;;  %1676 = vmatmul.f32.vlgmr.msra.gmra.mxu2 %v3986_v29  ;;  %v1125_v29 = vld [vmem:[#allocation10 + $0x318] sm:$0xff]  ;;  %v1940_v57 = vld [vmem:[#allocation10 + $0xab0] sm:$0xff]  ;;  %v1974_v10 = vld [vmem:[#allocation10 + $0xbc0] sm:$0xff] }
 0x2f6   :  { %1606 = vmatpush.msra.mxu3 %v1058_v21  ;;  %1773 = vmatpush.msrb.mxu2 %v3877_v33  ;;  %v1083_v33 = vld [vmem:[#allocation10 + $0x1c8] sm:$0xff]  ;;  %v1866_v21 = vld [vmem:[#allocation10 + $0x860] sm:$0xff] }
 0x2f7   :  { %1720 = vmatpush.msrb.mxu0 %v1093_v22  ;;  %1740 = vmatpush.msrb.mxu1 %v1131_v31  ;;  %v1938_v22 = vld [vmem:[#allocation10 + $0xaa0] sm:$0xff] }
 0x2f8   :  { %1683 = vmatpush.msrb.mxu3 %v1089_v6  ;;  %1774 = vmatpush.msrb.mxu2 %v3890_v9  ;;  %v1123_v9 = vld [vmem:[#allocation10 + $0x308] sm:$0xff]  ;;  %v1914_v6 = vld [vmem:[#allocation10 + $0x9e0] sm:$0xff] }
 0x2f9   :  { %1607 = vmatmul.f32.vlgmr.msra.gmra.mxu3 %v3992_v14  ;;  %1721 = vmatpush.msrb.mxu0 %v1091_v30  ;;  %v1864_v30 = vld [vmem:[#allocation10 + $0x850] sm:$0xff] }
 0x2fa   :  { %1684 = vmatpush.msrb.mxu3 %v1087_v13  ;;  %1741 = vmatpush.msrb.mxu1 %v1129_v37  ;;  %v1972_v13 = vld [vmem:[#allocation10 + $0xbb0] sm:$0xff] }
 0x2fb   :  { %1722 = vmatmul.f32.vlgmr.msrb.gmra.mxu0 %v3980_v19  ;;  %1775 = vmatpush.msrb.mxu2 %v3900_v63  ;;  %v1079_v63 = vld [vmem:[#allocation10 + $0x1a8] sm:$0xff]  ;;  %v1912_v37 = vld [vmem:[#allocation10 + $0x9d0] sm:$0xff] }
 0x2fc   :  { %1819 = vmatpush.msra.mxu0 %v3868_v12  ;;  %1685 = vmatpush.msrb.mxu3 %v1085_v23  ;;  %v1077_v12 = vld [vmem:[#allocation10 + $0x198] sm:$0xff]  ;;  %v1071_v19 = vld [vmem:[#allocation10 + $0x168] sm:$0xff]  ;;  %v1936_v23 = vld [vmem:[#allocation10 + $0xa90] sm:$0xff] }
 0x2fd   :  { %1742 = vmatpush.msrb.mxu1 %v1127_v38  ;;  %1776 = vmatpush.msrb.mxu2 %v3911_v44  ;;  %v1073_v44 = vld [vmem:[#allocation10 + $0x178] sm:$0xff]  ;;  %v1970_v38 = vld [vmem:[#allocation10 + $0xba0] sm:$0xff] }
 0x2fe   :  { %1820 = vmatpush.msra.mxu0 %v3871_v61  ;;  %1686 = vmatpush.msrb.mxu3 %v1083_v33  ;;  %v1075_v61 = vld [vmem:[#allocation10 + $0x188] sm:$0xff] }
 0x2ff   :  { %1743 = vmatpush.msrb.mxu1 %v1125_v29  ;;  %1679 = vmatmul.f32.gmra.mxu2 %v3990_v49 }
 0x300   :  { %1821 = vmatpush.msra.mxu0 %v3874_v25  ;;  %1687 = vmatpush.msrb.mxu3 %v1081_v41  ;;  %v1753_v25 = vld [vmem:[#allocation8 + $0x20] sm:$0xff]  ;;  %v1862_v41 = vld [vmem:[#allocation10 + $0x840] sm:$0xff] }
 0x301   :  { %1744 = vmatpush.msrb.mxu1 %v1123_v9  ;;  %1610 = vmatmul.f32.gmra.mxu3 %v3997_v24  ;;  %v1910_v9 = vld [vmem:[#allocation10 + $0x9c0] sm:$0xff] }
 0x302   :  { %1745 = vmatmul.f32.vlgmr.msrb.gmra.mxu1 %v3982_v27  ;;  %1822 = vmatpush.msra.mxu0 %v3879_v34  ;;  %v1069_v34 = vld [vmem:[#allocation10 + $0x158] sm:$0xff] }
 0x303   :  { %1842 = vmatpush.msra.mxu1 %v3881_v26  ;;  %1688 = vmatpush.msrb.mxu3 %v1079_v63  ;;  %v1067_v26 = vld [vmem:[#allocation10 + $0x148] sm:$0xff]  ;;  %v1065_v27 = vld [vmem:[#allocation10 + $0x138] sm:$0xff]  ;;  %v1934_v63 = vld [vmem:[#allocation10 + $0xa80] sm:$0xff] }
 0x304   :  { %1725 = vmatmul.f32.gmra.mxu0 %v3984_v36  ;;  %v1063_v36 = vld [vmem:[#allocation10 + $0x128] sm:$0xff]  ;;  %1982 = vmatpush.msra.mxu2 %v1884_v45  ;;  %v1962_v45 = vld [vmem:[#allocation10 + $0xb60] sm:$0xff] }
 0x305   :  { %1843 = vmatpush.msra.mxu1 %v3895_v42  ;;  %1689 = vmatpush.msrb.mxu3 %v1077_v12  ;;  %v1754_v42 = vld [vmem:[#allocation8 + $0x28] sm:$0xff] }
 0x306   :  { %1983 = vmatpush.msra.mxu2 %v1882_v46  ;;  %2028 = vmatpush.msrb.mxu0 %v1948_v1  ;;  %v1854_v46 = vld [vmem:[#allocation10 + $0x800] sm:$0xff] }
 0x307   :  { %1844 = vmatpush.msra.mxu1 %v3907_v40  ;;  %1690 = vmatpush.msrb.mxu3 %v1075_v61  ;;  %v1061_v40 = vld [vmem:[#allocation10 + $0x118] sm:$0xff]  ;;  %v1968_v61 = vld [vmem:[#allocation10 + $0xb90] sm:$0xff]  ;;  %v1958_v1 = vld [vmem:[#allocation10 + $0xb40] sm:$0xff] }
 0x308   :  { %3177 = vmatmul.msk.f32.vlgmr.msrb.gmra.mxu2 %vm927_vm2, %v1753_v25  ;;  %2029 = vmatpush.msrb.mxu0 %v1946_v3  ;;  %v1883_v3 = vld [vmem:[#allocation10 + $0x8e8] sm:$0xff] }
 0x309   :  { %1845 = vmatpush.msra.mxu1 %v3916_v11  ;;  %1691 = vmatpush.msrb.mxu3 %v1073_v44  ;;  %v1059_v11 = vld [vmem:[#allocation10 + $0x108] sm:$0xff] }
 0x30a   :  { %1748 = vmatmul.f32.gmra.mxu1 %v3988_v20  ;;  %2030 = vmatpush.msrb.mxu0 %v1944_v28  ;;  %v1896_v28 = vld [vmem:[#allocation10 + $0x950] sm:$0xff] }
 0x30b   :  { %1692 = vmatpush.msrb.mxu3 %v1071_v19  ;;  %2051 = vmatpush.msrb.mxu1 %v1980_v4  ;;  %v1860_v19 = vld [vmem:[#allocation10 + $0x830] sm:$0xff]  ;;  %v1898_v4 = vld [vmem:[#allocation10 + $0x960] sm:$0xff] }
 0x30c   :  { %3181 = vmatmul.msk.f32.vlgmr.msra.gmra.mxu0 %vm927_vm2, %v1753_v25 }
 0x30d   :  { %1693 = vmatpush.msrb.mxu3 %v1069_v34  ;;  %2052 = vmatpush.msrb.mxu1 %v1978_v7  ;;  %v1908_v34 = vld [vmem:[#allocation10 + $0x9b0] sm:$0xff] }
 0x30e   :  { %2031 = vmatpush.msrb.mxu0 %v1942_v60  ;;  %v1920_v7 = vld [vmem:[#allocation10 + $0xa10] sm:$0xff] }
 0x30f   :  { %1694 = vmatpush.msrb.mxu3 %v1067_v26  ;;  %2053 = vmatpush.msrb.mxu1 %v1976_v52  ;;  %v1932_v26 = vld [vmem:[#allocation10 + $0xa70] sm:$0xff]  ;;  %v1894_v52 = vld [vmem:[#allocation10 + $0x940] sm:$0xff] }
 0x310   :  { %3178 = vmatmul.msk.f32.gmra.mxu2 %vm927_vm2, %v1754_v42  ;;  %2032 = vmatpush.msrb.mxu0 %v1940_v57  ;;  %v1877_v57 = vld [vmem:[#allocation10 + $0x8b8] sm:$0xff] }
 0x311   :  { %1695 = vmatpush.msrb.mxu3 %v1065_v27  ;;  %2054 = vmatpush.msrb.mxu1 %v1974_v10  ;;  %v1858_v27 = vld [vmem:[#allocation10 + $0x820] sm:$0xff] }
 0x312   :  { %3183 = vmatmul.msk.f32.vlgmr.msra.gmra.mxu1 %vm927_vm2, %v1753_v25  ;;  %2033 = vmatpush.msrb.mxu0 %v1938_v22  ;;  %v1875_v22 = vld [vmem:[#allocation10 + $0x8a8] sm:$0xff] }
 0x313   :  { %1696 = vmatpush.msrb.mxu3 %v1063_v36  ;;  %2055 = vmatpush.msrb.mxu1 %v1972_v13  ;;  %v1906_v36 = vld [vmem:[#allocation10 + $0x9a0] sm:$0xff] }
 0x314   :  { %3182 = vmatmul.msk.f32.gmra.mxu0 %vm927_vm2, %v1754_v42 }
 0x315   :  { %1697 = vmatpush.msrb.mxu3 %v1061_v40  ;;  %2034 = vmatpush.msrb.mxu0 %v1936_v23  ;;  %v1930_v40 = vld [vmem:[#allocation10 + $0xa60] sm:$0xff] }
 0x316   :  { %2056 = vmatpush.msrb.mxu1 %v1970_v38 }
 0x317   :  { %1698 = vmatpush.msrb.mxu3 %v1059_v11  ;;  %2035 = vmatpush.msrb.mxu0 %v1934_v63  ;;  %v1888_v63 = vld [vmem:[#allocation10 + $0x910] sm:$0xff] }
 0x318   :  { %1699 = vmatmul.f32.vlgmr.msrb.gmra.mxu3 %v3992_v14  ;;  %2057 = vmatpush.msrb.mxu1 %v1968_v61  ;;  %v1943_v61 = vld [vmem:[#allocation10 + $0xac8] sm:$0xff] }
 0x319   :  { %1796 = vmatpush.msra.mxu3 %v3920_v32  ;;  %2036 = vmatpush.msrb.mxu0 %v1932_v26  ;;  %v1886_v26 = vld [vmem:[#allocation10 + $0x900] sm:$0xff] }
 0x31a   :  { %3184 = vmatmul.msk.f32.gmra.mxu1 %vm927_vm2, %v1754_v42 }
 0x31b   :  { %1797 = vmatpush.msra.mxu3 %v3932_v48  ;;  %2037 = vmatpush.msrb.mxu0 %v1930_v40 }
 0x31d   :  { %1798 = vmatpush.msra.mxu3 %v3941_v50  ;;  %v1880_v50 = vld [vmem:[#allocation10 + $0x8d0] sm:$0xff] }
 0x31e   :  { %1984 = vmatpush.msra.mxu2 %v1880_v50  ;;  %v1902_v50 = vld [vmem:[#allocation10 + $0x980] sm:$0xff] }
 0x31f   :  { %1799 = vmatpush.msra.mxu3 %v3947_v51 }
 0x320   :  { %1702 = vmatmul.f32.gmra.mxu3 %v3997_v24  ;;  %v1878_v24 = vld [vmem:[#allocation10 + $0x8c0] sm:$0xff] }
 0x321   :  { %1985 = vmatpush.msra.mxu2 %v1878_v24  ;;  %2005 = vmatpush.msrb.mxu3 %v1916_v35  ;;  %v1960_v24 = vld [vmem:[#allocation10 + $0xb50] sm:$0xff] }
 0x322   :  { %v1952_v35 = vld [vmem:[#allocation10 + $0xb10] sm:$0xff] }
 0x323   :  { %1986 = vmatpush.msra.mxu2 %v1876_v56  ;;  %2006 = vmatpush.msrb.mxu3 %v1914_v6  ;;  %v1950_v6 = vld [vmem:[#allocation10 + $0xb00] sm:$0xff] }
 0x325   :  { %1987 = vmatpush.msra.mxu2 %v1874_v2  ;;  %2007 = vmatpush.msrb.mxu3 %v1912_v37  ;;  %v1890_v37 = vld [vmem:[#allocation10 + $0x920] sm:$0xff] }
 0x327   :  { %1988 = vmatpush.msra.mxu2 %v1872_v5  ;;  %2008 = vmatpush.msrb.mxu3 %v1910_v9  ;;  %v1881_v5 = vld [vmem:[#allocation10 + $0x8d8] sm:$0xff]  ;;  %v1979_v9 = vld [vmem:[#allocation10 + $0xbe8] sm:$0xff] }
 0x328   :  { %3179 = vmatmul.msk.f32.vlgmr.msra.gmra.mxu3 %vm927_vm2, %v1753_v25 }
 0x329   :  { %1989 = vmatpush.msra.mxu2 %v1870_v53  ;;  %2009 = vmatpush.msrb.mxu3 %v1908_v34  ;;  %v1954_v53 = vld [vmem:[#allocation10 + $0xb20] sm:$0xff] }
 0x32b   :  { %1990 = vmatpush.msra.mxu2 %v1868_v17  ;;  %2010 = vmatpush.msrb.mxu3 %v1906_v36  ;;  %v1918_v17 = vld [vmem:[#allocation10 + $0xa00] sm:$0xff]  ;;  %v1941_v36 = vld [vmem:[#allocation10 + $0xab8] sm:$0xff] }
 0x32d   :  { %1991 = vmatpush.msra.mxu2 %v1866_v21  ;;  %v1892_v21 = vld [vmem:[#allocation10 + $0x930] sm:$0xff] }
 0x32f   :  { %1992 = vmatpush.msra.mxu2 %v1864_v30  ;;  %v1981_v30 = vld [vmem:[#allocation10 + $0xbf8] sm:$0xff] }
 0x330   :  { %3180 = vmatmul.msk.f32.gmra.mxu3 %vm927_vm2, %v1754_v42  ;;  %v1447_v39 = vpop.f32.mrf.mxu0  ;;  %v1966_v42 = vld [vmem:[#allocation10 + $0xb80] sm:$0xff] }
 0x331   :  { %1993 = vmatpush.msra.mxu2 %v1862_v41  ;;  %2058 = vmatpush.msrb.mxu1 %v1966_v42  ;;  %v1869_v42 = vld [vmem:[#allocation10 + $0x878] sm:$0xff] }
 0x332   :  { %v1401_v20 = vpop.f32.mrf.mxu2 }
 0x333   :  { %1994 = vmatpush.msra.mxu2 %v1860_v19  ;;  %v1977_v19 = vld [vmem:[#allocation10 + $0xbd8] sm:$0xff] }
 0x335   :  { %1995 = vmatpush.msra.mxu2 %v1858_v27  ;;  %v1917_v27 = vld [vmem:[#allocation10 + $0x9f8] sm:$0xff] }
 0x336   :  { %v1470_v32 = vpop.f32.mrf.mxu1 }
 0x338   :  { %v1450_v43 = vpop.f32.mrf.mxu0 }
 0x33a   :  { %v1404_v49 = vpop.f32.mrf.mxu2 }
 0x33f   :  { %v1473_v51 = vpop.f32.mrf.mxu1 }
 0x341   :  { %v4052_v16 = vpop.f32.mrf.mxu0 }
 0x342   :  { %v4048_v14 = vpop.f32.mrf.mxu2 }
 0x348   :  { %v4054_v18 = vpop.f32.mrf.mxu1 }
 0x34a   :  { %v4058_v15 = vpop.f32.mrf.mxu0 }
 0x34b   :  { %v4050_v48 = vpop.f32.mrf.mxu2 }
 0x351   :  { %v4060_v33 = vpop.f32.mrf.mxu1 }
 0x352   :  { %v1424_v54 = vpop.f32.mrf.mxu3 }
 0x353   :  { %v1425_v47 = vadd.f32 %v1424_v54, %v1401_v20  ;;  %v1964_v20 = vld [vmem:[#allocation10 + $0xb70] sm:$0xff] }
 0x354   :  { %2059 = vmatpush.msrb.mxu1 %v1964_v20 }
 0x355   :  { %v1448_v55 = vadd.f32 %v1447_v39, %v1425_v47  ;;  %v1585_v62 = vpop.f32.mrf.mxu2  ;;  %v4064_v44 = vpop.f32.mrf.mxu0  ;;  %v1904_v39 = vld [vmem:[#allocation10 + $0x990] sm:$0xff]  ;;  %v1885_v47 = vld [vmem:[#allocation10 + $0x8f8] sm:$0xff] }
 0x356   :  { %2011 = vmatpush.msrb.mxu3 %v1904_v39  ;;  %2060 = vmatpush.msrb.mxu1 %v1962_v45  ;;  %v1915_v39 = vld [vmem:[#allocation10 + $0x9e8] sm:$0xff]  ;;  %v1865_v45 = vld [vmem:[#allocation10 + $0x858] sm:$0xff] }
 0x357   :  { %v1471_v8 = vadd.f32 %v1470_v32, %v1448_v55  ;;  %v1900_v55 = vld [vmem:[#allocation10 + $0x970] sm:$0xff] }
 0x358   :  { %2012 = vmatpush.msrb.mxu3 %v1902_v50  ;;  %2061 = vmatpush.msrb.mxu1 %v1960_v24 }
 0x359   :  { %v4056_v58 = vadd.f32 %v1585_v62, %v1471_v8  ;;  %v1922_v8 = vld [vmem:[#allocation10 + $0xa20] sm:$0xff] }
 0x35a   :  { %2013 = vmatpush.msrb.mxu3 %v1900_v55  ;;  %2062 = vmatpush.msrb.mxu1 %v1958_v1  ;;  %v1911_v55 = vld [vmem:[#allocation10 + $0x9c8] sm:$0xff]  ;;  %v1969_v1 = vld [vmem:[#allocation10 + $0xb98] sm:$0xff] }
 0x35c   :  { %2014 = vmatpush.msrb.mxu3 %v1898_v4  ;;  %v1909_v4 = vld [vmem:[#allocation10 + $0x9b8] sm:$0xff] }
 0x35d   :  { %v4068_v56 = vpop.f32.mrf.mxu1 }
 0x35e   :  { %v1427_v59 = vpop.f32.mrf.mxu3  ;;  %2015 = vmatpush.msrb.mxu3 %v1896_v28 }
 0x35f   :  { %v1428_v0 = vadd.f32 %v1427_v59, %v1404_v49  ;;  %v1588_v12 = vpop.f32.mrf.mxu2  ;;  %v1856_v49 = vld [vmem:[#allocation10 + $0x810] sm:$0xff]  ;;  %v4071_v62 = vpop.f32.mrf.mxu0 }
 0x360   :  { %1996 = vmatpush.msra.mxu2 %v1856_v49  ;;  %2016 = vmatpush.msrb.mxu3 %v1894_v52  ;;  %v1867_v49 = vld [vmem:[#allocation10 + $0x868] sm:$0xff] }
 0x361   :  { %v1451_v31 = vadd.f32 %v1450_v43, %v1428_v0  ;;  %v1928_v43 = vld [vmem:[#allocation10 + $0xa50] sm:$0xff]  ;;  %v1949_v0 = vld [vmem:[#allocation10 + $0xaf8] sm:$0xff] }
 0x362   :  { %2038 = vmatpush.msrb.mxu0 %v1928_v43  ;;  %1997 = vmatpush.msra.mxu2 %v1854_v46  ;;  %v1973_v43 = vld [vmem:[#allocation10 + $0xbb8] sm:$0xff] }
 0x363   :  { %v1474_v29 = vadd.f32 %v1473_v51, %v1451_v31  ;;  %v1926_v51 = vld [vmem:[#allocation10 + $0xa40] sm:$0xff]  ;;  %v1947_v31 = vld [vmem:[#allocation10 + $0xae8] sm:$0xff]  ;;  %2017 = vmatpush.msrb.mxu3 %v1892_v21  ;;  %v1913_v46 = vld [vmem:[#allocation10 + $0x9d8] sm:$0xff] }
 0x364   :  { %2039 = vmatpush.msrb.mxu0 %v1926_v51  ;;  %2074 = vmatpush.msrb.mxu2 %v1885_v47  ;;  %v1971_v51 = vld [vmem:[#allocation10 + $0xba8] sm:$0xff] }
 0x365   :  { %v4062_v25 = vadd.f32 %v1588_v12, %v1474_v29  ;;  %v1945_v29 = vld [vmem:[#allocation10 + $0xad8] sm:$0xff]  ;;  %2018 = vmatpush.msrb.mxu3 %v1890_v37  ;;  %v1871_v12 = vld [vmem:[#allocation10 + $0x888] sm:$0xff] }
 0x366   :  { %2075 = vmatpush.msrb.mxu2 %v1883_v3  ;;  %v4075_v13 = vpop.f32.mrf.mxu1  ;;  %v1863_v47 = vld [vmem:[#allocation10 + $0x848] sm:$0xff]  ;;  %v1861_v3 = vld [vmem:[#allocation10 + $0x838] sm:$0xff] }
 0x367   :  { %2019 = vmatpush.msrb.mxu3 %v1888_v63  ;;  %v1927_v21 = vld [vmem:[#allocation10 + $0xa48] sm:$0xff] }
 0x368   :  { %2076 = vmatpush.msrb.mxu2 %v1881_v5  ;;  %v1923_v37 = vld [vmem:[#allocation10 + $0xa28] sm:$0xff] }
 0x369   :  { %v1516_v11 = vpop.f32.mrf.mxu3  ;;  %2020 = vmatpush.msrb.mxu3 %v1886_v26  ;;  %v1955_v63 = vld [vmem:[#allocation10 + $0xb28] sm:$0xff] }
 0x36a   :  { %v1517_v32 = vadd.f32 %v1516_v11, %v4048_v14  ;;  %v1924_v14 = vld [vmem:[#allocation10 + $0xa30] sm:$0xff]  ;;  %v1975_v11 = vld [vmem:[#allocation10 + $0xbc8] sm:$0xff] }
 0x36b   :  { %2040 = vmatpush.msrb.mxu0 %v1924_v14  ;;  %2097 = vmatpush.msra.mxu3 %v1917_v27  ;;  %v1951_v26 = vld [vmem:[#allocation10 + $0xb08] sm:$0xff] }
 0x36c   :  { %v1540_v54 = vadd.f32 %v4052_v16, %v1517_v32  ;;  %v1956_v16 = vld [vmem:[#allocation10 + $0xb30] sm:$0xff]  ;;  %v1891_v27 = vld [vmem:[#allocation10 + $0x928] sm:$0xff] }
 0x36d   :  { %2041 = vmatpush.msrb.mxu0 %v1922_v8  ;;  %2063 = vmatpush.msrb.mxu1 %v1956_v16  ;;  %v1933_v8 = vld [vmem:[#allocation10 + $0xa78] sm:$0xff]  ;;  %v1967_v16 = vld [vmem:[#allocation10 + $0xb88] sm:$0xff] }
 0x36e   :  { %v1563_v2 = vadd.f32 %v4054_v18, %v1540_v54  ;;  %v1879_v18 = vld [vmem:[#allocation10 + $0x8c8] sm:$0xff]  ;;  %2098 = vmatpush.msra.mxu3 %v1915_v39 }
 0x36f   :  { %2042 = vmatpush.msrb.mxu0 %v1920_v7  ;;  %2064 = vmatpush.msrb.mxu1 %v1954_v53  ;;  %v1859_v7 = vld [vmem:[#allocation10 + $0x828] sm:$0xff] }
 0x370   :  { %2077 = vmatpush.msrb.mxu2 %v1879_v18  ;;  %2099 = vmatpush.msra.mxu3 %v1913_v46  ;;  %v1907_v53 = vld [vmem:[#allocation10 + $0x9a8] sm:$0xff]  ;;  %v1857_v18 = vld [vmem:[#allocation10 + $0x818] sm:$0xff] }
 0x371   :  { %2043 = vmatpush.msrb.mxu0 %v1918_v17  ;;  %2065 = vmatpush.msrb.mxu1 %v1952_v35  ;;  %v1905_v17 = vld [vmem:[#allocation10 + $0x998] sm:$0xff]  ;;  %v1963_v35 = vld [vmem:[#allocation10 + $0xb68] sm:$0xff] }
 0x372   :  { %v1519_v60 = vpop.f32.mrf.mxu3  ;;  %2078 = vmatpush.msrb.mxu2 %v1877_v57  ;;  %2100 = vmatpush.msra.mxu3 %v1911_v55 }
 0x373   :  { %v1520_v59 = vadd.f32 %v1519_v60, %v4050_v48  ;;  %2120 = vmatpush.msra.mxu0 %v1949_v0  ;;  %2066 = vmatpush.msrb.mxu1 %v1950_v6  ;;  %v1931_v60 = vld [vmem:[#allocation10 + $0xa68] sm:$0xff]  ;;  %v1961_v6 = vld [vmem:[#allocation10 + $0xb58] sm:$0xff] }
 0x374   :  { %2079 = vmatpush.msrb.mxu2 %v1875_v22  ;;  %2101 = vmatpush.msra.mxu3 %v1909_v4  ;;  %v1855_v0 = vld [vmem:[#allocation10 + $0x808] sm:$0xff]  ;;  %v1901_v22 = vld [vmem:[#allocation10 + $0x978] sm:$0xff]  ;;  %v2170_v4 = vld [vmem:[#allocation11] sm:$0x3] }
 0x375   :  { %v1543_v10 = vadd.f32 %v4058_v15, %v1520_v59  ;;  %v1873_v15 = vld [vmem:[#allocation10 + $0x898] sm:$0xff]  ;;  %2121 = vmatpush.msra.mxu0 %v1947_v31  ;;  %2143 = vmatpush.msra.mxu1 %v1981_v30  ;;  %v1899_v30 = vld [vmem:[#allocation10 + $0x968] sm:$0xff] }
 0x376   :  { %2080 = vmatpush.msrb.mxu2 %v1873_v15  ;;  %2102 = vmatpush.msra.mxu3 %v1907_v53  ;;  %v1925_v31 = vld [vmem:[#allocation10 + $0xa38] sm:$0xff] }
 0x377   :  { %v1566_v48 = vadd.f32 %v4060_v33, %v1543_v10  ;;  %2122 = vmatpush.msra.mxu0 %v1945_v29  ;;  %2144 = vmatpush.msra.mxu1 %v1979_v9  ;;  %v1903_v10 = vld [vmem:[#allocation10 + $0x988] sm:$0xff]  ;;  %v1897_v29 = vld [vmem:[#allocation10 + $0x958] sm:$0xff] }
 0x378   :  { %v4078_v23 = vpop.f32.mrf.mxu0  ;;  %v1677_v38 = vpop.f32.mrf.mxu2  ;;  %2081 = vmatpush.msrb.mxu2 %v1871_v12  ;;  %2103 = vmatpush.msra.mxu3 %v1905_v17  ;;  %v1921_v9 = vld [vmem:[#allocation10 + $0xa18] sm:$0xff]  ;;  %v1895_v12 = vld [vmem:[#allocation10 + $0x948] sm:$0xff] }
 0x379   :  { %v4080_v41 = vadd.f32 %v1677_v38, %v1563_v2  ;;  %2123 = vmatpush.msra.mxu0 %v1943_v61  ;;  %2145 = vmatpush.msra.mxu1 %v1977_v19  ;;  %v1957_v38 = vld [vmem:[#allocation10 + $0xb38] sm:$0xff]  ;;  %v1919_v61 = vld [vmem:[#allocation10 + $0xa08] sm:$0xff] }
 0x37a   :  { %2082 = vmatpush.msrb.mxu2 %v1869_v42  ;;  %2104 = vmatpush.msra.mxu3 %v1903_v10  ;;  %v1953_v19 = vld [vmem:[#allocation10 + $0xb18] sm:$0xff]  ;;  %v2184_v10 = vld [vmem:[#allocation13] sm:$0xff] }
 0x37b   :  { %2124 = vmatpush.msra.mxu0 %v1941_v36  ;;  %2146 = vmatpush.msra.mxu1 %v1975_v11  ;;  %v1889_v36 = vld [vmem:[#allocation10 + $0x918] sm:$0xff]  ;;  %v1887_v11 = vld [vmem:[#allocation10 + $0x908] sm:$0xff] }
 0x37c   :  { %v1608_v33 = vpop.f32.mrf.mxu3  ;;  %2083 = vmatpush.msrb.mxu2 %v1867_v49  ;;  %2105 = vmatpush.msra.mxu3 %v1901_v22  ;;  %v2367_v22 = vld [vmem:[#allocation14 + $0x2e0] sm:$0xff] }
 0x37d   :  { %v1609_v34 = vadd.f32 %v1608_v33, %v4056_v58  ;;  %v1939_v58 = vld [vmem:[#allocation10 + $0xaa8] sm:$0xff]  ;;  %2147 = vmatpush.msra.mxu1 %v1973_v43 }
 0x37e   :  { %2125 = vmatpush.msra.mxu0 %v1939_v58  ;;  %2084 = vmatpush.msrb.mxu2 %v1865_v45 }
 0x37f   :  { %v1632_v40 = vadd.f32 %v4064_v44, %v1609_v34  ;;  %v4084_v20 = vpop.f32.mrf.mxu1  ;;  %v1937_v44 = vld [vmem:[#allocation10 + $0xa98] sm:$0xff]  ;;  %2148 = vmatpush.msra.mxu1 %v1971_v51  ;;  %2106 = vmatpush.msra.mxu3 %v1899_v30 }
 0x380   :  { %2126 = vmatpush.msra.mxu0 %v1937_v44  ;;  %2085 = vmatpush.msrb.mxu2 %v1863_v47  ;;  %v1893_v34 = vld [vmem:[#allocation10 + $0x938] sm:$0xff] }
 0x381   :  { %v4087_v32 = vadd.f32 %v4068_v56, %v1632_v40  ;;  %v4089_v50 = vpop.f32.mrf.mxu0  ;;  %v1935_v56 = vld [vmem:[#allocation10 + $0xa88] sm:$0xff]  ;;  %2149 = vmatpush.msra.mxu1 %v1969_v1  ;;  %2107 = vmatpush.msra.mxu3 %v1897_v29 }
 0x382   :  { %v1680_v24 = vpop.f32.mrf.mxu2  ;;  %2127 = vmatpush.msra.mxu0 %v1935_v56  ;;  %2086 = vmatpush.msrb.mxu2 %v1861_v3 }
 0x383   :  { %v4091_v54 = vadd.f32 %v1680_v24, %v1566_v48  ;;  %2150 = vmatpush.msra.mxu1 %v1967_v16  ;;  %2108 = vmatpush.msra.mxu3 %v1895_v12  ;;  %v2173_v12 = vperm.slane %v2170_v4, 1 }
 0x384   :  { %v1611_v14 = vpop.f32.mrf.mxu3  ;;  %2128 = vmatpush.msra.mxu0 %v1933_v8  ;;  %2087 = vmatpush.msrb.mxu2 %v1859_v7 }
 0x385   :  { %v1612_v2 = vadd.f32 %v1611_v14, %v4062_v25  ;;  %v1965_v25 = vld [vmem:[#allocation10 + $0xb78] sm:$0xff]  ;;  %2109 = vmatpush.msra.mxu3 %v1893_v34  ;;  %v2364_v34 = vld [vmem:[#allocation14 + $0x2c8] sm:$0xff] }
 0x386   :  { %2151 = vmatpush.msra.mxu1 %v1965_v25  ;;  %2129 = vmatpush.msra.mxu0 %v1931_v60 }
 0x387   :  { %v1635_v5 = vadd.f32 %v4071_v62, %v1612_v2  ;;  %v4095_v28 = vpop.f32.mrf.mxu1  ;;  %v1929_v62 = vld [vmem:[#allocation10 + $0xa58] sm:$0xff]  ;;  %2088 = vmatpush.msrb.mxu2 %v1857_v18  ;;  %2110 = vmatpush.msra.mxu3 %v1891_v27 }
 0x388   :  { %2130 = vmatpush.msra.mxu0 %v1929_v62  ;;  %2152 = vmatpush.msra.mxu1 %v1963_v35  ;;  %v2362_v27 = vld [vmem:[#allocation14 + $0x2b8] sm:$0xff] }
 0x389   :  { %v4098_v52 = vadd.f32 %v4075_v13, %v1635_v5  ;;  %v1824_v59 = vpop.f32.mrf.mxu0  ;;  %2089 = vmatpush.msrb.mxu2 %v1855_v0  ;;  %v1959_v13 = vld [vmem:[#allocation10 + $0xb48] sm:$0xff]  ;;  %2111 = vmatpush.msra.mxu3 %v1889_v36  ;;  %v2172_v5 = vperm.slane %v2170_v4, 0 }
 0x38a   :  { %2044 = vmatmul.f32.vlgmr.msrb.gmra.mxu0 %v1824_v59  ;;  %2153 = vmatpush.msra.mxu1 %v1961_v6  ;;  %v2393_v4 = vld [vmem:[#allocation14 + $0x3b0] sm:$0xff] }
 0x38b   :  { %v1778_v57 = vpop.f32.mrf.mxu2  ;;  %2131 = vmatpush.msra.mxu0 %v1927_v21  ;;  %2112 = vmatpush.msra.mxu3 %v1887_v11  ;;  %v2369_v21 = vld [vmem:[#allocation14 + $0x2f0] sm:$0xff]  ;;  %v2360_v11 = vld [vmem:[#allocation14 + $0x2a8] sm:$0xff] }
 0x38c   :  { %1998 = vmatmul.f32.vlgmr.msra.gmra.mxu2 %v1778_v57  ;;  %2154 = vmatpush.msra.mxu1 %v1959_v13 }
 0x38d   :  { %2132 = vmatpush.msra.mxu0 %v1925_v31 }
 0x38e   :  { %2155 = vmatpush.msra.mxu1 %v1957_v38  ;;  %v2368_v38 = vld [vmem:[#allocation14 + $0x2e8] sm:$0xff] }
 0x38f   :  { %v1847_v48 = vpop.f32.mrf.mxu1  ;;  %2133 = vmatpush.msra.mxu0 %v1923_v37  ;;  %v2365_v37 = vld [vmem:[#allocation14 + $0x2d0] sm:$0xff] }
 0x390   :  { %2067 = vmatmul.f32.vlgmr.msrb.gmra.mxu1 %v1847_v48 }
 0x391   :  { %v1827_v15 = vpop.f32.mrf.mxu0  ;;  %2134 = vmatpush.msra.mxu0 %v1921_v9  ;;  %2156 = vmatpush.msra.mxu1 %v1955_v63  ;;  %v2363_v9 = vld [vmem:[#allocation14 + $0x2c0] sm:$0xff]  ;;  %v2366_v63 = vld [vmem:[#allocation14 + $0x2d8] sm:$0xff] }
 0x392   :  { %2047 = vmatmul.f32.gmra.mxu0 %v1827_v15 }
 0x393   :  { %v1781_v33 = vpop.f32.mrf.mxu2  ;;  %2135 = vmatpush.msra.mxu0 %v1919_v61  ;;  %2157 = vmatpush.msra.mxu1 %v1953_v19  ;;  %v2361_v19 = vld [vmem:[#allocation14 + $0x2b0] sm:$0xff] }
 0x394   :  { %2001 = vmatmul.f32.gmra.mxu2 %v1781_v33 }
 0x395   :  { %2158 = vmatpush.msra.mxu1 %v1951_v26 }
 0x397   :  { %v1850_v42 = vpop.f32.mrf.mxu1 }
 0x398   :  { %2070 = vmatmul.f32.gmra.mxu1 %v1850_v42 }
 0x39a   :  { %2136 = vmatmul.f32.vlgmr.msra.gmra.mxu0 %v1824_v59 }
 0x39b   :  { %v1700_v40 = vpop.f32.mrf.mxu3 }
 0x39c   :  { %v1701_v49 = vadd.f32 %v1700_v40, %v4080_v41  ;;  %2090 = vmatmul.f32.vlgmr.msrb.gmra.mxu2 %v1778_v57 }
 0x39e   :  { %v1724_v39 = vadd.f32 %v4078_v23, %v1701_v49 }
 0x3a0   :  { %v4103_v58 = vadd.f32 %v4084_v20, %v1724_v39  ;;  %2159 = vmatmul.f32.vlgmr.msra.gmra.mxu1 %v1847_v48  ;;  %v2370_v48 = vld [vmem:[#allocation14 + $0x2f8] sm:$0xff]  ;;  %v2357_v39 = vld [vmem:[#allocation14 + $0x290] sm:$0xff] }
 0x3a2   :  { %2139 = vmatmul.f32.gmra.mxu0 %v1827_v15 }
 0x3a3   :  { %v1703_v43 = vpop.f32.mrf.mxu3 }
 0x3a4   :  { %v1704_v45 = vadd.f32 %v1703_v43, %v4091_v54  ;;  %2093 = vmatmul.f32.gmra.mxu2 %v1781_v33 }
 0x3a6   :  { %v1727_v46 = vadd.f32 %v4089_v50, %v1704_v45  ;;  %v2355_v45 = vld [vmem:[#allocation14 + $0x280] sm:$0xff] }
 0x3a8   :  { %v4108_v44 = vadd.f32 %v4095_v28, %v1727_v46  ;;  %2162 = vmatmul.f32.gmra.mxu1 %v1850_v42  ;;  %v2359_v42 = vld [vmem:[#allocation14 + $0x2a0] sm:$0xff]  ;;  %v2401_v46 = vld [vmem:[#allocation14 + $0x3f0] sm:$0xff] }
 0x3ab   :  { %v1801_v41 = vpop.f32.mrf.mxu3 }
 0x3ac   :  { %2021 = vmatmul.f32.vlgmr.msrb.gmra.mxu3 %v1801_v41 }
 0x3b3   :  { %v1804_v51 = vpop.f32.mrf.mxu3 }
 0x3b4   :  { %2024 = vmatmul.f32.gmra.mxu3 %v1804_v51 }
 0x3bc   :  { %2113 = vmatmul.f32.vlgmr.msra.gmra.mxu3 %v1801_v41  ;;  %v2356_v41 = vld [vmem:[#allocation14 + $0x288] sm:$0xff] }
 0x3c4   :  { %2116 = vmatmul.f32.gmra.mxu3 %v1804_v51  ;;  %v2353_v51 = vld [vmem:[#allocation14 + $0x270] sm:$0xff] }
 0x407   :  { %v2045_v20 = vpop.f32.mrf.mxu0 }
 0x40d   :  { %v2068_v24 = vpop.f32.mrf.mxu1 }
 0x40f   :  { %v1999_v23 = vpop.f32.mrf.mxu2  ;;  %v2048_v14 = vpop.f32.mrf.mxu0 }
 0x415   :  { %v2071_v1 = vpop.f32.mrf.mxu1 }
 0x417   :  { %v2002_v56 = vpop.f32.mrf.mxu2  ;;  %v2137_v60 = vpop.f32.mrf.mxu0 }
 0x41d   :  { %v2160_v62 = vpop.f32.mrf.mxu1 }
 0x41f   :  { %v2091_v7 = vpop.f32.mrf.mxu2  ;;  %v2140_v30 = vpop.f32.mrf.mxu0 }
 0x425   :  { %v2163_v29 = vpop.f32.mrf.mxu1 }
 0x42f   :  { %v2022_v47 = vpop.f32.mrf.mxu3 }
 0x430   :  { %v2023_v55 = vadd.f32 %v2022_v47, %v1999_v23  ;;  %v2399_v23 = vld [vmem:[#allocation14 + $0x3e0] sm:$0xff] }
 0x431   :  { %v2351_v47 = vld [vmem:[#allocation14 + $0x260] sm:$0xff] }
 0x432   :  { %v2046_v54 = vadd.f32 %v2045_v20, %v2023_v55  ;;  %v2400_v20 = vld [vmem:[#allocation14 + $0x3e8] sm:$0xff]  ;;  %v2397_v55 = vld [vmem:[#allocation14 + $0x3d0] sm:$0xff] }
 0x434   :  { %v2069_v2 = vadd.f32 %v2068_v24, %v2046_v54  ;;  %v2354_v24 = vld [vmem:[#allocation14 + $0x278] sm:$0xff]  ;;  %v2352_v54 = vld [vmem:[#allocation14 + $0x268] sm:$0xff] }
 0x436   :  { %v2166_v28 = vadd.f32 %v2069_v2, %v4087_v32  ;;  %v2294_v32 = vld [vmem:[#allocation13 + $0x8] sm:$0xff]  ;;  %v2350_v2 = vld [vmem:[#allocation14 + $0x258] sm:$0xff] }
 0x437   :  { %v2025_v50 = vpop.f32.mrf.mxu3 }
 0x438   :  { %v2026_v3 = vadd.f32 %v2025_v50, %v2002_v56  ;;  %v2176_v17 = vadd.f32 %v2172_v5, %v2166_v28  ;;  %v2398_v56 = vld [vmem:[#allocation14 + $0x3d8] sm:$0xff]  ;;  %v2396_v50 = vld [vmem:[#allocation14 + $0x3c8] sm:$0xff]  ;;  %v2391_v28 = vld [vmem:[#allocation14 + $0x3a0] sm:$0xff] }
 0x43a   :  { %v2049_v8 = vadd.f32 %v2048_v14, %v2026_v3  ;;  %v4116_v0 = vmax.f32 %v2176_v17, 0.0  ;;  %v2349_v14 = vld [vmem:[#allocation14 + $0x250] sm:$0xff]  ;;  %v2347_v3 = vld [vmem:[#allocation14 + $0x240] sm:$0xff] }
 0x43b   :  { %v2341_v17 = vld [vmem:[#allocation14 + $0x210] sm:$0xff] }
 0x43c   :  { %v2072_v16 = vadd.f32 %v2071_v1, %v2049_v8  ;;  %v2395_v1 = vld [vmem:[#allocation14 + $0x3c0] sm:$0xff]  ;;  %v2394_v8 = vld [vmem:[#allocation14 + $0x3b8] sm:$0xff] }
 0x43e   :  { %v2168_v53 = vadd.f32 %v2072_v16, %v4098_v52  ;;  %v2094_v52 = vpop.f32.mrf.mxu2  ;;  %v2348_v16 = vld [vmem:[#allocation14 + $0x248] sm:$0xff] }
 0x43f   :  { %v2114_v25 = vpop.f32.mrf.mxu3 }
 0x440   :  { %v2115_v18 = vadd.f32 %v2114_v25, %v2091_v7  ;;  %v2178_v59 = vadd.f32 %v2172_v5, %v2168_v53  ;;  %v2345_v5 = vld [vmem:[#allocation14 + $0x230] sm:$0xff]  ;;  %v2392_v7 = vld [vmem:[#allocation14 + $0x3a8] sm:$0xff]  ;;  %v2346_v53 = vld [vmem:[#allocation14 + $0x238] sm:$0xff] }
 0x441   :  { %v2389_v25 = vld [vmem:[#allocation14 + $0x390] sm:$0xff] }
 0x442   :  { %v4112_v35 = vmax.f32 %v2178_v59, 0.0  ;;  %v2138_v57 = vadd.f32 %v2137_v60, %v2115_v18  ;;  %v2343_v60 = vld [vmem:[#allocation14 + $0x220] sm:$0xff]  ;;  %v2390_v18 = vld [vmem:[#allocation14 + $0x398] sm:$0xff]  ;;  %v2344_v59 = vld [vmem:[#allocation14 + $0x228] sm:$0xff] }
 0x444   :  { %2203 = vmatpush.msra.mxu2 %v4112_v35  ;;  %2312 = vmatpush.msrb.mxu0 %v4112_v35  ;;  %v2161_v31 = vadd.f32 %v2160_v62, %v2138_v57  ;;  %v2387_v62 = vld [vmem:[#allocation14 + $0x380] sm:$0xff]  ;;  %v2388_v57 = vld [vmem:[#allocation14 + $0x388] sm:$0xff] }
 0x446   :  { %2204 = vmatpush.msra.mxu2 %v4116_v0  ;;  %2313 = vmatpush.msrb.mxu0 %v4116_v0  ;;  %v2167_v61 = vadd.f32 %v2161_v31, %v4103_v58  ;;  %v2358_v58 = vld [vmem:[#allocation14 + $0x298] sm:$0xff]  ;;  %v2257_v31 = vld [vmem:[#allocation14 + $0xe0] sm:$0xff] }
 0x447   :  { %v2117_v6 = vpop.f32.mrf.mxu3  ;;  %3187 = vmatmul.msk.f32.vlgmr.msrb.gmra.mxu0 %vm2185_vm3, %v2294_v32  ;;  %3185 = vmatmul.msk.f32.vlgmr.msra.gmra.mxu2 %vm2185_vm3, %v2184_v10 }
 0x448   :  { %v2118_v13 = vadd.f32 %v2117_v6, %v2094_v52  ;;  %2403 = vmatpush.msrb.mxu2 %v2369_v21  ;;  %2443 = vmatpush.msra.mxu0 %v2370_v48  ;;  %v2177_v40 = vadd.f32 %v2173_v12, %v2167_v61  ;;  %v2385_v21 = vld [vmem:[#allocation14 + $0x370] sm:$0xff]  ;;  %v2386_v6 = vld [vmem:[#allocation14 + $0x378] sm:$0xff]  ;;  %v2249_v61 = vld [vmem:[#allocation14 + $0xa0] sm:$0xff] }
 0x449   :  { %v2259_v52 = vld [vmem:[#allocation14 + $0xf0] sm:$0xff] }
 0x44a   :  { %v2141_v15 = vadd.f32 %v2140_v30, %v2118_v13  ;;  %2404 = vmatpush.msrb.mxu2 %v2367_v22  ;;  %2444 = vmatpush.msra.mxu0 %v2368_v38  ;;  %v4128_v43 = vmax.f32 %v2177_v40, 0.0  ;;  %v2383_v22 = vld [vmem:[#allocation14 + $0x360] sm:$0xff]  ;;  %v2384_v13 = vld [vmem:[#allocation14 + $0x368] sm:$0xff]  ;;  %v2381_v48 = vld [vmem:[#allocation14 + $0x350] sm:$0xff] }
 0x44b   :  { %v2255_v30 = vld [vmem:[#allocation14 + $0xd0] sm:$0xff]  ;;  %v2379_v38 = vld [vmem:[#allocation14 + $0x340] sm:$0xff] }
 0x44c   :  { %v2164_v33 = vadd.f32 %v2163_v29, %v2141_v15  ;;  %2405 = vmatpush.msrb.mxu2 %v2365_v37  ;;  %2445 = vmatpush.msra.mxu0 %v2366_v63  ;;  %v2382_v37 = vld [vmem:[#allocation14 + $0x358] sm:$0xff]  ;;  %v2253_v15 = vld [vmem:[#allocation14 + $0xc0] sm:$0xff]  ;;  %v2380_v29 = vld [vmem:[#allocation14 + $0x348] sm:$0xff] }
 0x44d   :  { %v2251_v63 = vld [vmem:[#allocation14 + $0xb0] sm:$0xff] }
 0x44e   :  { %v2169_v26 = vadd.f32 %v2164_v33, %v4108_v44  ;;  %2406 = vmatpush.msrb.mxu2 %v2363_v9  ;;  %2446 = vmatpush.msra.mxu0 %v2364_v34  ;;  %v2402_v44 = vld [vmem:[#allocation14 + $0x3f8] sm:$0xff]  ;;  %v2377_v9 = vld [vmem:[#allocation14 + $0x330] sm:$0xff] }
 0x44f   :  { %v2378_v33 = vld [vmem:[#allocation14 + $0x338] sm:$0xff]  ;;  %v2373_v34 = vld [vmem:[#allocation14 + $0x310] sm:$0xff] }
 0x450   :  { %v2179_v36 = vadd.f32 %v2173_v12, %v2169_v26  ;;  %2407 = vmatpush.msrb.mxu2 %v2361_v19  ;;  %2447 = vmatpush.msra.mxu0 %v2362_v27  ;;  %v2375_v12 = vld [vmem:[#allocation14 + $0x320] sm:$0xff]  ;;  %v2376_v19 = vld [vmem:[#allocation14 + $0x328] sm:$0xff]  ;;  %v2247_v26 = vld [vmem:[#allocation14 + $0x90] sm:$0xff] }
 0x451   :  { %v2245_v27 = vld [vmem:[#allocation14 + $0x80] sm:$0xff]  ;;  %v2243_v40 = vld [vmem:[#allocation14 + $0x70] sm:$0xff] }
 0x452   :  { %v4124_v49 = vmax.f32 %v2179_v36, 0.0  ;;  %2408 = vmatpush.msrb.mxu2 %v2359_v42  ;;  %2448 = vmatpush.msra.mxu0 %v2360_v11  ;;  %v2371_v42 = vld [vmem:[#allocation14 + $0x300] sm:$0xff]  ;;  %v2291_v36 = vld [vmem:[#allocation14 + $0x1f0] sm:$0xff] }
 0x453   :  { %v2289_v11 = vld [vmem:[#allocation14 + $0x1e0] sm:$0xff] }
 0x454   :  { %2223 = vmatpush.msrb.mxu3 %v4124_v49  ;;  %2332 = vmatpush.msrb.mxu1 %v4124_v49 }
 0x455   :  { %2409 = vmatpush.msrb.mxu2 %v2357_v39  ;;  %2449 = vmatpush.msra.mxu0 %v2358_v58  ;;  %v2241_v39 = vld [vmem:[#allocation14 + $0x60] sm:$0xff]  ;;  %v2287_v58 = vld [vmem:[#allocation14 + $0x1d0] sm:$0xff] }
 0x456   :  { %2224 = vmatpush.msrb.mxu3 %v4128_v43  ;;  %2333 = vmatpush.msrb.mxu1 %v4128_v43 }
 0x457   :  { %3188 = vmatmul.msk.f32.vlgmr.msrb.gmra.mxu1 %vm2185_vm3, %v2294_v32  ;;  %3186 = vmatmul.msk.f32.vlgmr.msrb.gmra.mxu3 %vm2185_vm3, %v2184_v10  ;;  %v2342_v32 = vld [vmem:[#allocation14 + $0x218] sm:$0xff]  ;;  %v2339_v10 = vld [vmem:[#allocation14 + $0x200] sm:$0xff] }
 0x458   :  { %2410 = vmatpush.msrb.mxu2 %v2355_v45  ;;  %2423 = vmatpush.msra.mxu3 %v2401_v46  ;;  %v2239_v45 = vld [vmem:[#allocation14 + $0x50] sm:$0xff]  ;;  %v2285_v46 = vld [vmem:[#allocation14 + $0x1c0] sm:$0xff] }
 0x459   :  { %2463 = vmatpush.msra.mxu1 %v2402_v44  ;;  %2450 = vmatpush.msra.mxu0 %v2356_v41  ;;  %v2237_v44 = vld [vmem:[#allocation14 + $0x40] sm:$0xff]  ;;  %v2283_v41 = vld [vmem:[#allocation14 + $0x1b0] sm:$0xff] }
 0x45a   :  { %2411 = vmatpush.msrb.mxu2 %v2353_v51  ;;  %2424 = vmatpush.msra.mxu3 %v2399_v23  ;;  %v2235_v51 = vld [vmem:[#allocation14 + $0x30] sm:$0xff]  ;;  %v2281_v23 = vld [vmem:[#allocation14 + $0x1a0] sm:$0xff] }
 0x45b   :  { %2464 = vmatpush.msra.mxu1 %v2400_v20  ;;  %2451 = vmatpush.msra.mxu0 %v2354_v24  ;;  %v2233_v20 = vld [vmem:[#allocation14 + $0x20] sm:$0xff]  ;;  %v2279_v24 = vld [vmem:[#allocation14 + $0x190] sm:$0xff] }
 0x45c   :  { %2412 = vmatpush.msrb.mxu2 %v2351_v47  ;;  %2425 = vmatpush.msra.mxu3 %v2397_v55  ;;  %v2231_v47 = vld [vmem:[#allocation14 + $0x10] sm:$0xff]  ;;  %v2340_v55 = vld [vmem:[#allocation14 + $0x208] sm:$0xff] }
 0x45d   :  { %2465 = vmatpush.msra.mxu1 %v2398_v56  ;;  %2452 = vmatpush.msra.mxu0 %v2352_v54  ;;  %v2260_v56 = vld [vmem:[#allocation14 + $0xf8] sm:$0xff]  ;;  %v2258_v54 = vld [vmem:[#allocation14 + $0xe8] sm:$0xff] }
 0x45e   :  { %2413 = vmatpush.msrb.mxu2 %v2349_v14  ;;  %2426 = vmatpush.msra.mxu3 %v2395_v1  ;;  %v2374_v14 = vld [vmem:[#allocation14 + $0x318] sm:$0xff] }
 0x45f   :  { %2466 = vmatpush.msra.mxu1 %v2396_v50  ;;  %2453 = vmatpush.msra.mxu0 %v2350_v2  ;;  %v2256_v1 = vld [vmem:[#allocation14 + $0xd8] sm:$0xff]  ;;  %v2372_v50 = vld [vmem:[#allocation14 + $0x308] sm:$0xff] }
 0x460   :  { %2414 = vmatpush.msrb.mxu2 %v2347_v3  ;;  %2427 = vmatpush.msra.mxu3 %v2393_v4  ;;  %v2292_v2 = vld [vmem:[#allocation14 + $0x1f8] sm:$0xff]  ;;  %v2254_v3 = vld [vmem:[#allocation14 + $0xc8] sm:$0xff] }
 0x461   :  { %2467 = vmatpush.msra.mxu1 %v2394_v8  ;;  %2454 = vmatpush.msra.mxu0 %v2348_v16  ;;  %v2290_v4 = vld [vmem:[#allocation14 + $0x1e8] sm:$0xff]  ;;  %v2252_v8 = vld [vmem:[#allocation14 + $0xb8] sm:$0xff] }
 0x462   :  { %2415 = vmatpush.msrb.mxu2 %v2345_v5  ;;  %2428 = vmatpush.msra.mxu3 %v2391_v28  ;;  %v2288_v16 = vld [vmem:[#allocation14 + $0x1d8] sm:$0xff]  ;;  %v2250_v5 = vld [vmem:[#allocation14 + $0xa8] sm:$0xff]  ;;  %v2229_v28 = vld [vmem:[#allocation14] sm:$0xff] }
 0x463   :  { %2468 = vmatpush.msra.mxu1 %v2392_v7  ;;  %2455 = vmatpush.msra.mxu0 %v2346_v53  ;;  %v2277_v7 = vld [vmem:[#allocation14 + $0x180] sm:$0xff]  ;;  %v2286_v53 = vld [vmem:[#allocation14 + $0x1c8] sm:$0xff] }
 0x464   :  { %2416 = vmatpush.msrb.mxu2 %v2343_v60  ;;  %2429 = vmatpush.msra.mxu3 %v2389_v25  ;;  %v2248_v60 = vld [vmem:[#allocation14 + $0x98] sm:$0xff]  ;;  %v2275_v25 = vld [vmem:[#allocation14 + $0x170] sm:$0xff] }
 0x465   :  { %2469 = vmatpush.msra.mxu1 %v2390_v18  ;;  %2456 = vmatpush.msra.mxu0 %v2344_v59  ;;  %v2284_v18 = vld [vmem:[#allocation14 + $0x1b8] sm:$0xff]  ;;  %v2246_v59 = vld [vmem:[#allocation14 + $0x88] sm:$0xff] }
 0x466   :  { %2417 = vmatpush.msrb.mxu2 %v2341_v17  ;;  %2430 = vmatpush.msra.mxu3 %v2387_v62  ;;  %v2273_v17 = vld [vmem:[#allocation14 + $0x160] sm:$0xff]  ;;  %v2271_v62 = vld [vmem:[#allocation14 + $0x150] sm:$0xff] }
 0x467   :  { %2470 = vmatpush.msra.mxu1 %v2388_v57  ;;  %2457 = vmatpush.msra.mxu0 %v2342_v32  ;;  %v2282_v57 = vld [vmem:[#allocation14 + $0x1a8] sm:$0xff]  ;;  %v2269_v32 = vld [vmem:[#allocation14 + $0x140] sm:$0xff] }
 0x468   :  { %2418 = vmatpush.msrb.mxu2 %v2339_v10  ;;  %2431 = vmatpush.msra.mxu3 %v2385_v21  ;;  %v2280_v10 = vld [vmem:[#allocation14 + $0x198] sm:$0xff] }
 0x469   :  { %2471 = vmatpush.msra.mxu1 %v2386_v6  ;;  %2458 = vmatpush.msra.mxu0 %v2340_v55  ;;  %v2244_v21 = vld [vmem:[#allocation14 + $0x78] sm:$0xff]  ;;  %v2267_v6 = vld [vmem:[#allocation14 + $0x130] sm:$0xff]  ;;  %v2669_v55 = vld [vmem:[#allocation14 + $0x5e0] sm:$0xff] }
 0x46a   :  { %2483 = vmatpush.msra.mxu2 %v2259_v52  ;;  %2432 = vmatpush.msra.mxu3 %v2383_v22  ;;  %v2242_v52 = vld [vmem:[#allocation14 + $0x68] sm:$0xff] }
 0x46b   :  { %2472 = vmatpush.msra.mxu1 %v2384_v13  ;;  %2523 = vmatpush.msrb.mxu0 %v2260_v56  ;;  %v2278_v22 = vld [vmem:[#allocation14 + $0x188] sm:$0xff]  ;;  %v2265_v13 = vld [vmem:[#allocation14 + $0x120] sm:$0xff] }
 0x46c   :  { %2484 = vmatpush.msra.mxu2 %v2257_v31  ;;  %2433 = vmatpush.msra.mxu3 %v2381_v48  ;;  %v2240_v31 = vld [vmem:[#allocation14 + $0x58] sm:$0xff]  ;;  %v2630_v56 = vld [vmem:[#allocation14 + $0x4a8] sm:$0xff] }
 0x46d   :  { %2473 = vmatpush.msra.mxu1 %v2382_v37  ;;  %2524 = vmatpush.msrb.mxu0 %v2258_v54  ;;  %v2276_v48 = vld [vmem:[#allocation14 + $0x178] sm:$0xff]  ;;  %v2263_v37 = vld [vmem:[#allocation14 + $0x110] sm:$0xff] }
 0x46e   :  { %2485 = vmatpush.msra.mxu2 %v2255_v30  ;;  %2434 = vmatpush.msra.mxu3 %v2379_v38  ;;  %v2238_v30 = vld [vmem:[#allocation14 + $0x48] sm:$0xff]  ;;  %v2667_v54 = vld [vmem:[#allocation14 + $0x5d0] sm:$0xff] }
 0x46f   :  { %2474 = vmatpush.msra.mxu1 %v2380_v29  ;;  %2525 = vmatpush.msrb.mxu0 %v2256_v1  ;;  %v2274_v38 = vld [vmem:[#allocation14 + $0x168] sm:$0xff]  ;;  %v2272_v29 = vld [vmem:[#allocation14 + $0x158] sm:$0xff] }
 0x470   :  { %2486 = vmatpush.msra.mxu2 %v2253_v15  ;;  %2435 = vmatpush.msra.mxu3 %v2377_v9  ;;  %v2236_v15 = vld [vmem:[#allocation14 + $0x38] sm:$0xff]  ;;  %v2234_v9 = vld [vmem:[#allocation14 + $0x28] sm:$0xff] }
 0x471   :  { %2475 = vmatpush.msra.mxu1 %v2378_v33  ;;  %2526 = vmatpush.msrb.mxu0 %v2254_v3  ;;  %v2270_v33 = vld [vmem:[#allocation14 + $0x148] sm:$0xff]  ;;  %v2663_v3 = vld [vmem:[#allocation14 + $0x5b0] sm:$0xff] }
 0x472   :  { %2487 = vmatpush.msra.mxu2 %v2251_v63  ;;  %2436 = vmatpush.msra.mxu3 %v2375_v12  ;;  %v2261_v63 = vld [vmem:[#allocation14 + $0x100] sm:$0xff]  ;;  %v2232_v12 = vld [vmem:[#allocation14 + $0x18] sm:$0xff] }
 0x473   :  { %2476 = vmatpush.msra.mxu1 %v2376_v19  ;;  %2527 = vmatpush.msrb.mxu0 %v2252_v8  ;;  %v2230_v19 = vld [vmem:[#allocation14 + $0x8] sm:$0xff]  ;;  %v2661_v8 = vld [vmem:[#allocation14 + $0x5a0] sm:$0xff] }
 0x474   :  { %2488 = vmatpush.msra.mxu2 %v2249_v61  ;;  %2437 = vmatpush.msra.mxu3 %v2373_v34  ;;  %v2268_v61 = vld [vmem:[#allocation14 + $0x138] sm:$0xff]  ;;  %v2266_v34 = vld [vmem:[#allocation14 + $0x128] sm:$0xff] }
 0x475   :  { %2477 = vmatpush.msra.mxu1 %v2374_v14  ;;  %2528 = vmatpush.msrb.mxu0 %v2250_v5  ;;  %v2628_v14 = vld [vmem:[#allocation14 + $0x498] sm:$0xff] }
 0x476   :  { %2489 = vmatpush.msra.mxu2 %v2247_v26  ;;  %2438 = vmatpush.msra.mxu3 %v2371_v42  ;;  %v2264_v26 = vld [vmem:[#allocation14 + $0x118] sm:$0xff]  ;;  %v2262_v42 = vld [vmem:[#allocation14 + $0x108] sm:$0xff] }
 0x477   :  { %2478 = vmatpush.msra.mxu1 %v2372_v50  ;;  %2529 = vmatpush.msrb.mxu0 %v2248_v60  ;;  %v2672_v50 = vld [vmem:[#allocation14 + $0x5f8] sm:$0xff]  ;;  %v2657_v60 = vld [vmem:[#allocation14 + $0x580] sm:$0xff] }
 0x478   :  { %2490 = vmatpush.msra.mxu2 %v2245_v27  ;;  %2503 = vmatpush.msrb.mxu3 %v2291_v36  ;;  %v2639_v36 = vld [vmem:[#allocation14 + $0x4f0] sm:$0xff]  ;;  %v2664_v5 = vld [vmem:[#allocation14 + $0x5b8] sm:$0xff] }
 0x479   :  { %2543 = vmatpush.msrb.mxu1 %v2292_v2  ;;  %2530 = vmatpush.msrb.mxu0 %v2246_v59  ;;  %v2665_v2 = vld [vmem:[#allocation14 + $0x5c0] sm:$0xff]  ;;  %v2623_v59 = vld [vmem:[#allocation14 + $0x470] sm:$0xff] }
 0x47a   :  { %2491 = vmatpush.msra.mxu2 %v2243_v40  ;;  %2504 = vmatpush.msrb.mxu3 %v2289_v11  ;;  %v2637_v40 = vld [vmem:[#allocation14 + $0x4e0] sm:$0xff]  ;;  %v2635_v11 = vld [vmem:[#allocation14 + $0x4d0] sm:$0xff] }
 0x47b   :  { %2544 = vmatpush.msrb.mxu1 %v2290_v4  ;;  %2531 = vmatpush.msrb.mxu0 %v2244_v21  ;;  %v2668_v4 = vld [vmem:[#allocation14 + $0x5d8] sm:$0xff]  ;;  %v2622_v21 = vld [vmem:[#allocation14 + $0x468] sm:$0xff] }
 0x47c   :  { %2492 = vmatpush.msra.mxu2 %v2241_v39  ;;  %2505 = vmatpush.msrb.mxu3 %v2287_v58  ;;  %v2633_v39 = vld [vmem:[#allocation14 + $0x4c0] sm:$0xff] }
 0x47d   :  { %2545 = vmatpush.msrb.mxu1 %v2288_v16  ;;  %2532 = vmatpush.msrb.mxu0 %v2242_v52  ;;  %v2659_v16 = vld [vmem:[#allocation14 + $0x590] sm:$0xff]  ;;  %v2654_v52 = vld [vmem:[#allocation14 + $0x568] sm:$0xff] }
 0x47e   :  { %2493 = vmatpush.msra.mxu2 %v2239_v45  ;;  %2506 = vmatpush.msrb.mxu3 %v2285_v46  ;;  %v2640_v45 = vld [vmem:[#allocation14 + $0x4f8] sm:$0xff]  ;;  %v2631_v46 = vld [vmem:[#allocation14 + $0x4b0] sm:$0xff] }
 0x47f   :  { %2546 = vmatpush.msrb.mxu1 %v2286_v53  ;;  %2533 = vmatpush.msrb.mxu0 %v2240_v31  ;;  %v2625_v53 = vld [vmem:[#allocation14 + $0x480] sm:$0xff]  ;;  %v2620_v31 = vld [vmem:[#allocation14 + $0x458] sm:$0xff] }
 0x480   :  { %2494 = vmatpush.msra.mxu2 %v2237_v44  ;;  %2507 = vmatpush.msrb.mxu3 %v2283_v41  ;;  %v2638_v44 = vld [vmem:[#allocation14 + $0x4e8] sm:$0xff]  ;;  %v2629_v41 = vld [vmem:[#allocation14 + $0x4a0] sm:$0xff] }
 0x481   :  { %2547 = vmatpush.msrb.mxu1 %v2284_v18  ;;  %2534 = vmatpush.msrb.mxu0 %v2238_v30  ;;  %v2658_v18 = vld [vmem:[#allocation14 + $0x588] sm:$0xff]  ;;  %v2649_v30 = vld [vmem:[#allocation14 + $0x540] sm:$0xff] }
 0x482   :  { %2495 = vmatpush.msra.mxu2 %v2235_v51  ;;  %2508 = vmatpush.msrb.mxu3 %v2281_v23  ;;  %v2636_v51 = vld [vmem:[#allocation14 + $0x4d8] sm:$0xff]  ;;  %v2634_v23 = vld [vmem:[#allocation14 + $0x4c8] sm:$0xff] }
 0x483   :  { %2548 = vmatpush.msrb.mxu1 %v2282_v57  ;;  %2535 = vmatpush.msrb.mxu0 %v2236_v15  ;;  %v2656_v57 = vld [vmem:[#allocation14 + $0x578] sm:$0xff]  ;;  %v2615_v15 = vld [vmem:[#allocation14 + $0x430] sm:$0xff] }
 0x484   :  { %2496 = vmatpush.msra.mxu2 %v2233_v20  ;;  %2509 = vmatpush.msrb.mxu3 %v2279_v24  ;;  %v2671_v24 = vld [vmem:[#allocation14 + $0x5f0] sm:$0xff] }
 0x485   :  { %2549 = vmatpush.msrb.mxu1 %v2280_v10  ;;  %2536 = vmatpush.msrb.mxu0 %v2234_v9  ;;  %v2653_v10 = vld [vmem:[#allocation14 + $0x560] sm:$0xff]  ;;  %v2616_v9 = vld [vmem:[#allocation14 + $0x438] sm:$0xff] }
 0x486   :  { %2497 = vmatpush.msra.mxu2 %v2231_v47  ;;  %2510 = vmatpush.msrb.mxu3 %v2277_v7  ;;  %v2632_v47 = vld [vmem:[#allocation14 + $0x4b8] sm:$0xff] }
 0x487   :  { %2550 = vmatpush.msrb.mxu1 %v2278_v22  ;;  %2537 = vmatpush.msrb.mxu0 %v2232_v12  ;;  %v2660_v7 = vld [vmem:[#allocation14 + $0x598] sm:$0xff]  ;;  %v2651_v22 = vld [vmem:[#allocation14 + $0x550] sm:$0xff]  ;;  %v2645_v12 = vld [vmem:[#allocation14 + $0x520] sm:$0xff] }
 0x488   :  { %2498 = vmatpush.msra.mxu2 %v2229_v28  ;;  %2511 = vmatpush.msrb.mxu3 %v2275_v25  ;;  %v2662_v28 = vld [vmem:[#allocation14 + $0x5a8] sm:$0xff] }
 0x489   :  { %2551 = vmatpush.msrb.mxu1 %v2276_v48  ;;  %2538 = vmatpush.msrb.mxu0 %v2230_v19  ;;  %v2626_v25 = vld [vmem:[#allocation14 + $0x488] sm:$0xff]  ;;  %v2617_v48 = vld [vmem:[#allocation14 + $0x440] sm:$0xff] }
 0x48a   :  { %2512 = vmatpush.msrb.mxu3 %v2273_v17  ;;  %v2655_v17 = vld [vmem:[#allocation14 + $0x570] sm:$0xff]  ;;  %v2646_v19 = vld [vmem:[#allocation14 + $0x528] sm:$0xff] }
 0x48b   :  { %2552 = vmatpush.msrb.mxu1 %v2274_v38  ;;  %v2650_v38 = vld [vmem:[#allocation14 + $0x548] sm:$0xff] }
 0x48c   :  { %2513 = vmatpush.msrb.mxu3 %v2271_v62  ;;  %v2624_v62 = vld [vmem:[#allocation14 + $0x478] sm:$0xff] }
 0x48d   :  { %2553 = vmatpush.msrb.mxu1 %v2272_v29  ;;  %v2647_v29 = vld [vmem:[#allocation14 + $0x530] sm:$0xff] }
 0x48e   :  { %2514 = vmatpush.msrb.mxu3 %v2269_v32  ;;  %v2621_v32 = vld [vmem:[#allocation14 + $0x460] sm:$0xff] }
 0x48f   :  { %2554 = vmatpush.msrb.mxu1 %v2270_v33  ;;  %v2613_v33 = vld [vmem:[#allocation14 + $0x420] sm:$0xff] }
 0x490   :  { %2515 = vmatpush.msrb.mxu3 %v2267_v6  ;;  %v2619_v6 = vld [vmem:[#allocation14 + $0x450] sm:$0xff] }
 0x491   :  { %2555 = vmatpush.msrb.mxu1 %v2268_v61  ;;  %v2614_v61 = vld [vmem:[#allocation14 + $0x428] sm:$0xff] }
 0x492   :  { %2516 = vmatpush.msrb.mxu3 %v2265_v13  ;;  %v2652_v13 = vld [vmem:[#allocation14 + $0x558] sm:$0xff] }
 0x493   :  { %2556 = vmatpush.msrb.mxu1 %v2266_v34  ;;  %v2611_v34 = vld [vmem:[#allocation14 + $0x410] sm:$0xff] }
 0x494   :  { %2517 = vmatpush.msrb.mxu3 %v2263_v37  ;;  %v2618_v37 = vld [vmem:[#allocation14 + $0x448] sm:$0xff] }
 0x495   :  { %2557 = vmatpush.msrb.mxu1 %v2264_v26  ;;  %v2643_v26 = vld [vmem:[#allocation14 + $0x510] sm:$0xff] }
 0x496   :  { %2518 = vmatpush.msrb.mxu3 %v2261_v63  ;;  %v2648_v63 = vld [vmem:[#allocation14 + $0x538] sm:$0xff] }
 0x497   :  { %2558 = vmatpush.msrb.mxu1 %v2262_v42  ;;  %v2612_v42 = vld [vmem:[#allocation14 + $0x418] sm:$0xff] }
 0x4c4   :  { %v2315_v27 = vpop.f32.mrf.mxu0 }
 0x4c5   :  { %2419 = vmatmul.f32.vlgmr.msrb.gmra.mxu2 %v2315_v27  ;;  %2459 = vmatmul.f32.vlgmr.msra.gmra.mxu0 %v2315_v27  ;;  %v2644_v27 = vld [vmem:[#allocation14 + $0x518] sm:$0xff] }
 0x4c6   :  { %2582 = vmatpush.msrb.mxu2 %v4112_v35  ;;  %2673 = vmatpush.msra.mxu0 %v2639_v36  ;;  %v2627_v35 = vld [vmem:[#allocation14 + $0x490] sm:$0xff] }
 0x4c8   :  { %2583 = vmatpush.msrb.mxu2 %v4116_v0  ;;  %2674 = vmatpush.msra.mxu0 %v2637_v40  ;;  %v2564_v0 = vld [vmem:[#allocation13 + $0x10] sm:$0xff]  ;;  %v2609_v40 = vld [vmem:[#allocation14 + $0x400] sm:$0xff] }
 0x4ca   :  { %v2206_v58 = vpop.f32.mrf.mxu2  ;;  %2675 = vmatpush.msra.mxu0 %v2635_v11  ;;  %v2641_v11 = vld [vmem:[#allocation14 + $0x500] sm:$0xff] }
 0x4cc   :  { %2676 = vmatpush.msra.mxu0 %v2633_v39  ;;  %v2610_v39 = vld [vmem:[#allocation14 + $0x408] sm:$0xff] }
 0x4cd   :  { %2499 = vmatmul.f32.vlgmr.msra.gmra.mxu2 %v2206_v58  ;;  %2539 = vmatmul.f32.vlgmr.msrb.gmra.mxu0 %v2206_v58  ;;  %v2642_v58 = vld [vmem:[#allocation14 + $0x508] sm:$0xff] }
 0x4ce   :  { %2713 = vmatpush.msra.mxu2 %v2640_v45  ;;  %2677 = vmatpush.msra.mxu0 %v2631_v46  ;;  %v2780_v45 = vld [vmem:[%s4543_s10 + $0x78] sm:$0xff] }
 0x4cf   :  { %v3206_v46 = vld [vmem:[%s4543_s10 + $0x178] sm:$0xff] }
 0x4d0   :  { %2714 = vmatpush.msra.mxu2 %v2638_v44  ;;  %2678 = vmatpush.msra.mxu0 %v2629_v41  ;;  %v2779_v44 = vld [vmem:[%s4543_s10 + $0x70] sm:$0xff] }
 0x4d1   :  { %v3205_v41 = vld [vmem:[%s4543_s10 + $0x170] sm:$0xff] }
 0x4d2   :  { %2715 = vmatpush.msra.mxu2 %v2636_v51  ;;  %2679 = vmatpush.msra.mxu0 %v2627_v35  ;;  %v2796_v51 = vld [vmem:[%s4543_s10 + $0xf8] sm:$0xff]  ;;  %v2778_v35 = vld [vmem:[%s4543_s10 + $0x68] sm:$0xff] }
 0x4d4   :  { %v2335_v20 = vpop.f32.mrf.mxu1  ;;  %2716 = vmatpush.msra.mxu2 %v2634_v23  ;;  %2680 = vmatpush.msra.mxu0 %v2625_v53  ;;  %v3204_v23 = vld [vmem:[%s4543_s10 + $0x168] sm:$0xff] }
 0x4d5   :  { %2439 = vmatmul.f32.vlgmr.msra.gmra.mxu3 %v2335_v20  ;;  %2479 = vmatmul.f32.vlgmr.msra.gmra.mxu1 %v2335_v20  ;;  %v2795_v20 = vld [vmem:[%s4543_s10 + $0xf0] sm:$0xff]  ;;  %v2790_v53 = vld [vmem:[%s4543_s10 + $0xc8] sm:$0xff] }
 0x4d6   :  { %2602 = vmatpush.msra.mxu3 %v4124_v49  ;;  %3189 = vmatmul.msk.f32.vlgmr.msrb.gmra.mxu2 %vm2185_vm3, %v2564_v0  ;;  %v2670_v49 = vld [vmem:[#allocation14 + $0x5e8] sm:$0xff] }
 0x4d7   :  { %2693 = vmatpush.msra.mxu1 %v2671_v24  ;;  %2717 = vmatpush.msra.mxu2 %v2632_v47  ;;  %v3221_v24 = vld [vmem:[%s4543_s10 + $0x1f0] sm:$0xff]  ;;  %v2777_v47 = vld [vmem:[%s4543_s10 + $0x60] sm:$0xff] }
 0x4d8   :  { %2603 = vmatpush.msra.mxu3 %v4128_v43  ;;  %v2666_v43 = vld [vmem:[#allocation14 + $0x5c8] sm:$0xff]  ;;  %2681 = vmatpush.msra.mxu0 %v2623_v59 }
 0x4d9   :  { %2694 = vmatpush.msra.mxu1 %v2669_v55  ;;  %2718 = vmatpush.msra.mxu2 %v2630_v56  ;;  %v3203_v55 = vld [vmem:[%s4543_s10 + $0x160] sm:$0xff]  ;;  %v2794_v56 = vld [vmem:[%s4543_s10 + $0xe8] sm:$0xff]  ;;  %v2772_v59 = vld [vmem:[%s4543_s10 + $0x38] sm:$0xff] }
 0x4da   :  { %v2226_v1 = vpop.f32.mrf.mxu3  ;;  %2682 = vmatpush.msra.mxu0 %v2621_v32  ;;  %v3216_v32 = vld [vmem:[%s4543_s10 + $0x1c8] sm:$0xff] }
 0x4db   :  { %2695 = vmatpush.msra.mxu1 %v2667_v54  ;;  %2719 = vmatpush.msra.mxu2 %v2628_v14  ;;  %v3220_v54 = vld [vmem:[%s4543_s10 + $0x1e8] sm:$0xff]  ;;  %v2793_v14 = vld [vmem:[%s4543_s10 + $0xe0] sm:$0xff] }
 0x4dc   :  { %2683 = vmatpush.msra.mxu0 %v2619_v6 }
 0x4dd   :  { %2519 = vmatmul.f32.vlgmr.msrb.gmra.mxu3 %v2226_v1  ;;  %2559 = vmatmul.f32.vlgmr.msrb.gmra.mxu1 %v2226_v1  ;;  %v2776_v1 = vld [vmem:[%s4543_s10 + $0x58] sm:$0xff] }
 0x4de   :  { %2733 = vmatpush.msrb.mxu3 %v2672_v50  ;;  %2696 = vmatpush.msra.mxu1 %v2665_v2  ;;  %v3202_v50 = vld [vmem:[%s4543_s10 + $0x158] sm:$0xff] }
 0x4df   :  { %2720 = vmatpush.msra.mxu2 %v2626_v25  ;;  %2684 = vmatpush.msra.mxu0 %v2617_v48  ;;  %v3199_v25 = vld [vmem:[%s4543_s10 + $0x140] sm:$0xff]  ;;  %v3196_v48 = vld [vmem:[%s4543_s10 + $0x128] sm:$0xff] }
 0x4e0   :  { %2734 = vmatpush.msrb.mxu3 %v2670_v49  ;;  %2697 = vmatpush.msra.mxu1 %v2663_v3  ;;  %v3219_v49 = vld [vmem:[%s4543_s10 + $0x1e0] sm:$0xff]  ;;  %v2792_v3 = vld [vmem:[%s4543_s10 + $0xd8] sm:$0xff] }
 0x4e1   :  { %2721 = vmatpush.msra.mxu2 %v2624_v62  ;;  %2685 = vmatpush.msra.mxu0 %v2615_v15  ;;  %v3195_v15 = vld [vmem:[%s4543_s10 + $0x120] sm:$0xff] }
 0x4e2   :  { %2735 = vmatpush.msrb.mxu3 %v2668_v4  ;;  %2698 = vmatpush.msra.mxu1 %v2661_v8  ;;  %v2775_v4 = vld [vmem:[%s4543_s10 + $0x50] sm:$0xff] }
 0x4e3   :  { %2722 = vmatpush.msra.mxu2 %v2622_v21  ;;  %2686 = vmatpush.msra.mxu0 %v2613_v33  ;;  %v3201_v8 = vld [vmem:[%s4543_s10 + $0x150] sm:$0xff]  ;;  %v2768_v33 = vld [vmem:[%s4543_s10 + $0x18] sm:$0xff] }
 0x4e4   :  { %2736 = vmatpush.msrb.mxu3 %v2666_v43  ;;  %2699 = vmatpush.msra.mxu1 %v2659_v16  ;;  %v3218_v43 = vld [vmem:[%s4543_s10 + $0x1d8] sm:$0xff]  ;;  %v2791_v16 = vld [vmem:[%s4543_s10 + $0xd0] sm:$0xff] }
 0x4e5   :  { %3190 = vmatmul.msk.f32.vlgmr.msra.gmra.mxu3 %vm2185_vm3, %v2564_v0  ;;  %2723 = vmatpush.msra.mxu2 %v2620_v31  ;;  %v3222_v0 = vld [vmem:[%s4543_s10 + $0x1f8] sm:$0xff]  ;;  %v2771_v21 = vld [vmem:[%s4543_s10 + $0x30] sm:$0xff] }
 0x4e6   :  { %2737 = vmatpush.msrb.mxu3 %v2664_v5  ;;  %2700 = vmatpush.msra.mxu1 %v2657_v60  ;;  %v2774_v5 = vld [vmem:[%s4543_s10 + $0x48] sm:$0xff]  ;;  %v2773_v60 = vld [vmem:[%s4543_s10 + $0x40] sm:$0xff]  ;;  %v2788_v31 = vld [vmem:[%s4543_s10 + $0xb8] sm:$0xff] }
 0x4e7   :  { %2724 = vmatpush.msra.mxu2 %v2618_v37  ;;  %2687 = vmatpush.msra.mxu0 %v2611_v34  ;;  %v2787_v37 = vld [vmem:[%s4543_s10 + $0xb0] sm:$0xff]  ;;  %v2785_v34 = vld [vmem:[%s4543_s10 + $0xa0] sm:$0xff] }
 0x4e8   :  { %2738 = vmatpush.msrb.mxu3 %v2662_v28  ;;  %2701 = vmatpush.msra.mxu1 %v2655_v17  ;;  %v3200_v28 = vld [vmem:[%s4543_s10 + $0x148] sm:$0xff]  ;;  %v3198_v17 = vld [vmem:[%s4543_s10 + $0x138] sm:$0xff] }
 0x4e9   :  { %2725 = vmatpush.msra.mxu2 %v2616_v9  ;;  %2688 = vmatpush.msra.mxu0 %v2609_v40  ;;  %v2786_v9 = vld [vmem:[%s4543_s10 + $0xa8] sm:$0xff] }
 0x4ea   :  { %2739 = vmatpush.msrb.mxu3 %v2660_v7  ;;  %2702 = vmatpush.msra.mxu1 %v2653_v10  ;;  %v3217_v7 = vld [vmem:[%s4543_s10 + $0x1d0] sm:$0xff]  ;;  %v2789_v10 = vld [vmem:[%s4543_s10 + $0xc0] sm:$0xff]  ;;  %v2766_v40 = vld [vmem:[%s4543_s10 + $0x8] sm:$0xff] }
 0x4eb   :  { %2726 = vmatpush.msra.mxu2 %v2614_v61  ;;  %2836 = vmatpush.msrb.mxu0 %v3206_v46  ;;  %v3191_v46 = vld [vmem:[%s4543_s10 + $0x100] sm:$0xff] }
 0x4ec   :  { %2740 = vmatpush.msrb.mxu3 %v2658_v18  ;;  %2703 = vmatpush.msra.mxu1 %v2651_v22  ;;  %v3215_v22 = vld [vmem:[%s4543_s10 + $0x1c0] sm:$0xff] }
 0x4ed   :  { %2727 = vmatpush.msra.mxu2 %v2612_v42  ;;  %2837 = vmatpush.msrb.mxu0 %v3205_v41  ;;  %v3193_v42 = vld [vmem:[%s4543_s10 + $0x110] sm:$0xff]  ;;  %v3270_v41 = vld [vmem:[%s4543_s10 + $0x378] sm:$0xff] }
 0x4ee   :  { %2741 = vmatpush.msrb.mxu3 %v2656_v57  ;;  %2704 = vmatpush.msra.mxu1 %v2649_v30  ;;  %v3214_v30 = vld [vmem:[%s4543_s10 + $0x1b8] sm:$0xff] }
 0x4ef   :  { %2728 = vmatpush.msra.mxu2 %v2610_v39  ;;  %2838 = vmatpush.msrb.mxu0 %v3204_v23  ;;  %v3210_v39 = vld [vmem:[%s4543_s10 + $0x198] sm:$0xff]  ;;  %v2782_v23 = vld [vmem:[%s4543_s10 + $0x88] sm:$0xff] }
 0x4f0   :  { %2742 = vmatpush.msrb.mxu3 %v2654_v52  ;;  %2705 = vmatpush.msra.mxu1 %v2647_v29  ;;  %v3197_v52 = vld [vmem:[%s4543_s10 + $0x130] sm:$0xff] }
 0x4f1   :  { %2876 = vmatpush.msrb.mxu2 %v2780_v45  ;;  %2839 = vmatpush.msrb.mxu0 %v3203_v55  ;;  %v3213_v29 = vld [vmem:[%s4543_s10 + $0x1b0] sm:$0xff]  ;;  %v2765_v45 = vld [vmem:[%s4543_s10] sm:$0xff]  ;;  %v3268_v55 = vld [vmem:[%s4543_s10 + $0x368] sm:$0xff] }
 0x4f2   :  { %2743 = vmatpush.msrb.mxu3 %v2652_v13  ;;  %2706 = vmatpush.msra.mxu1 %v2645_v12  ;;  %v2770_v13 = vld [vmem:[%s4543_s10 + $0x28] sm:$0xff]  ;;  %v3194_v12 = vld [vmem:[%s4543_s10 + $0x118] sm:$0xff] }
 0x4f3   :  { %2877 = vmatpush.msrb.mxu2 %v2779_v44  ;;  %2840 = vmatpush.msrb.mxu0 %v3202_v50  ;;  %v3235_v50 = vld [vmem:[%s4543_s10 + $0x260] sm:$0xff] }
 0x4f4   :  { %2744 = vmatpush.msrb.mxu3 %v2650_v38  ;;  %2707 = vmatpush.msra.mxu1 %v2643_v26  ;;  %v2769_v38 = vld [vmem:[%s4543_s10 + $0x20] sm:$0xff]  ;;  %v2767_v26 = vld [vmem:[%s4543_s10 + $0x10] sm:$0xff] }
 0x4f5   :  { %2878 = vmatpush.msrb.mxu2 %v2778_v35  ;;  %2841 = vmatpush.msrb.mxu0 %v3201_v8  ;;  %v3209_v35 = vld [vmem:[%s4543_s10 + $0x190] sm:$0xff] }
 0x4f6   :  { %2745 = vmatpush.msrb.mxu3 %v2648_v63  ;;  %2708 = vmatpush.msra.mxu1 %v2641_v11  ;;  %v3192_v11 = vld [vmem:[%s4543_s10 + $0x108] sm:$0xff]  ;;  %v3253_v8 = vld [vmem:[%s4543_s10 + $0x2f0] sm:$0xff] }
 0x4f7   :  { %2879 = vmatpush.msrb.mxu2 %v2777_v47  ;;  %2842 = vmatpush.msrb.mxu0 %v3200_v28  ;;  %v2781_v47 = vld [vmem:[%s4543_s10 + $0x80] sm:$0xff]  ;;  %v3252_v28 = vld [vmem:[%s4543_s10 + $0x2e8] sm:$0xff] }
 0x4f8   :  { %2746 = vmatpush.msrb.mxu3 %v2646_v19  ;;  %2856 = vmatpush.msrb.mxu1 %v3222_v0  ;;  %v3212_v19 = vld [vmem:[%s4543_s10 + $0x1a8] sm:$0xff]  ;;  %v3269_v0 = vld [vmem:[%s4543_s10 + $0x370] sm:$0xff] }
 0x4f9   :  { %2880 = vmatpush.msrb.mxu2 %v2776_v1  ;;  %2843 = vmatpush.msrb.mxu0 %v3199_v25  ;;  %v3267_v1 = vld [vmem:[%s4543_s10 + $0x360] sm:$0xff] }
 0x4fa   :  { %2747 = vmatpush.msrb.mxu3 %v2644_v27  ;;  %2857 = vmatpush.msrb.mxu1 %v3221_v24  ;;  %v3211_v27 = vld [vmem:[%s4543_s10 + $0x1a0] sm:$0xff]  ;;  %v3208_v24 = vld [vmem:[%s4543_s10 + $0x188] sm:$0xff] }
 0x4fb   :  { %2881 = vmatpush.msrb.mxu2 %v2775_v4  ;;  %2844 = vmatpush.msrb.mxu0 %v3198_v17  ;;  %v3234_v4 = vld [vmem:[%s4543_s10 + $0x258] sm:$0xff]  ;;  %v3251_v25 = vld [vmem:[%s4543_s10 + $0x2e0] sm:$0xff] }
 0x4fc   :  { %2748 = vmatpush.msrb.mxu3 %v2642_v58  ;;  %2858 = vmatpush.msrb.mxu1 %v3220_v54  ;;  %v2783_v58 = vld [vmem:[%s4543_s10 + $0x90] sm:$0xff]  ;;  %v3286_v54 = vld [vmem:[%s4543_s10 + $0x3f8] sm:$0xff]  ;;  %v3231_v17 = vld [vmem:[%s4543_s10 + $0x240] sm:$0xff] }
 0x4fd   :  { %2882 = vmatpush.msrb.mxu2 %v2774_v5  ;;  %2845 = vmatpush.msrb.mxu0 %v3197_v52  ;;  %v3233_v5 = vld [vmem:[%s4543_s10 + $0x250] sm:$0xff] }
 0x4fe   :  { %2896 = vmatpush.msra.mxu3 %v2796_v51  ;;  %2859 = vmatpush.msrb.mxu1 %v3219_v49  ;;  %v3238_v51 = vld [vmem:[%s4543_s10 + $0x278] sm:$0xff]  ;;  %v3285_v49 = vld [vmem:[%s4543_s10 + $0x3f0] sm:$0xff] }
 0x4ff   :  { %2883 = vmatpush.msrb.mxu2 %v2773_v60  ;;  %2846 = vmatpush.msrb.mxu0 %v3196_v48  ;;  %v3232_v60 = vld [vmem:[%s4543_s10 + $0x248] sm:$0xff]  ;;  %v3261_v52 = vld [vmem:[%s4543_s10 + $0x330] sm:$0xff]  ;;  %v3279_v48 = vld [vmem:[%s4543_s10 + $0x3c0] sm:$0xff] }
 0x500   :  { %2897 = vmatpush.msra.mxu3 %v2795_v20  ;;  %2860 = vmatpush.msrb.mxu1 %v3218_v43  ;;  %v3237_v20 = vld [vmem:[%s4543_s10 + $0x270] sm:$0xff]  ;;  %v3284_v43 = vld [vmem:[%s4543_s10 + $0x3e8] sm:$0xff] }
 0x501   :  { %2884 = vmatpush.msrb.mxu2 %v2772_v59  ;;  %2847 = vmatpush.msrb.mxu0 %v3195_v15  ;;  %v3282_v59 = vld [vmem:[%s4543_s10 + $0x3d8] sm:$0xff] }
 0x502   :  { %2898 = vmatpush.msra.mxu3 %v2794_v56  ;;  %2861 = vmatpush.msrb.mxu1 %v3217_v7  ;;  %v3236_v56 = vld [vmem:[%s4543_s10 + $0x268] sm:$0xff]  ;;  %v3283_v7 = vld [vmem:[%s4543_s10 + $0x3e0] sm:$0xff]  ;;  %v3278_v15 = vld [vmem:[%s4543_s10 + $0x3b8] sm:$0xff] }
 0x503   :  { %2885 = vmatpush.msrb.mxu2 %v2771_v21  ;;  %2848 = vmatpush.msrb.mxu0 %v3194_v12  ;;  %v3249_v21 = vld [vmem:[%s4543_s10 + $0x2d0] sm:$0xff] }
 0x504   :  { %2899 = vmatpush.msra.mxu3 %v2793_v14  ;;  %2862 = vmatpush.msrb.mxu1 %v3216_v32  ;;  %v3207_v14 = vld [vmem:[%s4543_s10 + $0x180] sm:$0xff]  ;;  %v3281_v32 = vld [vmem:[%s4543_s10 + $0x3d0] sm:$0xff] }
 0x505   :  { %2886 = vmatpush.msrb.mxu2 %v2770_v13  ;;  %2849 = vmatpush.msrb.mxu0 %v3193_v42  ;;  %v3260_v13 = vld [vmem:[%s4543_s10 + $0x328] sm:$0xff] }
 0x506   :  { %2900 = vmatpush.msra.mxu3 %v2792_v3  ;;  %2863 = vmatpush.msrb.mxu1 %v3215_v22  ;;  %v3266_v3 = vld [vmem:[%s4543_s10 + $0x358] sm:$0xff]  ;;  %v3229_v22 = vld [vmem:[%s4543_s10 + $0x230] sm:$0xff]  ;;  %v3276_v42 = vld [vmem:[%s4543_s10 + $0x3a8] sm:$0xff] }
 0x507   :  { %2887 = vmatpush.msrb.mxu2 %v2769_v38  ;;  %2850 = vmatpush.msrb.mxu0 %v3192_v11  ;;  %v3259_v38 = vld [vmem:[%s4543_s10 + $0x320] sm:$0xff]  ;;  %v3256_v11 = vld [vmem:[%s4543_s10 + $0x308] sm:$0xff] }
 0x508   :  { %2901 = vmatpush.msra.mxu3 %v2791_v16  ;;  %2864 = vmatpush.msrb.mxu1 %v3214_v30  ;;  %v3265_v16 = vld [vmem:[%s4543_s10 + $0x350] sm:$0xff]  ;;  %v3228_v30 = vld [vmem:[%s4543_s10 + $0x228] sm:$0xff] }
 0x509   :  { %2888 = vmatpush.msrb.mxu2 %v2768_v33  ;;  %2851 = vmatpush.msrb.mxu0 %v3191_v46  ;;  %v3277_v33 = vld [vmem:[%s4543_s10 + $0x3b0] sm:$0xff]  ;;  %v3255_v46 = vld [vmem:[%s4543_s10 + $0x300] sm:$0xff] }
 0x50a   :  { %2902 = vmatpush.msra.mxu3 %v2790_v53  ;;  %2865 = vmatpush.msrb.mxu1 %v3213_v29  ;;  %v3264_v53 = vld [vmem:[%s4543_s10 + $0x348] sm:$0xff]  ;;  %v3227_v29 = vld [vmem:[%s4543_s10 + $0x220] sm:$0xff] }
 0x50b   :  { %2889 = vmatpush.msrb.mxu2 %v2767_v26  ;;  %v3257_v26 = vld [vmem:[%s4543_s10 + $0x310] sm:$0xff] }
 0x50c   :  { %2903 = vmatpush.msra.mxu3 %v2789_v10  ;;  %2866 = vmatpush.msrb.mxu1 %v3212_v19  ;;  %v3230_v10 = vld [vmem:[%s4543_s10 + $0x238] sm:$0xff] }
 0x50d   :  { %2890 = vmatpush.msrb.mxu2 %v2766_v40  ;;  %v3226_v19 = vld [vmem:[%s4543_s10 + $0x218] sm:$0xff] }
 0x50e   :  { %2904 = vmatpush.msra.mxu3 %v2788_v31  ;;  %2867 = vmatpush.msrb.mxu1 %v3211_v27  ;;  %v3248_v31 = vld [vmem:[%s4543_s10 + $0x2c8] sm:$0xff]  ;;  %v3225_v27 = vld [vmem:[%s4543_s10 + $0x210] sm:$0xff] }
 0x50f   :  { %2891 = vmatpush.msrb.mxu2 %v2765_v45  ;;  %v3243_v45 = vld [vmem:[%s4543_s10 + $0x2a0] sm:$0xff] }
 0x510   :  { %2905 = vmatpush.msra.mxu3 %v2787_v37  ;;  %2868 = vmatpush.msrb.mxu1 %v3210_v39  ;;  %v3247_v37 = vld [vmem:[%s4543_s10 + $0x2c0] sm:$0xff] }
 0x511   :  { %v3275_v39 = vld [vmem:[%s4543_s10 + $0x3a0] sm:$0xff] }
 0x512   :  { %2906 = vmatpush.msra.mxu3 %v2786_v9  ;;  %2869 = vmatpush.msrb.mxu1 %v3209_v35  ;;  %v3246_v9 = vld [vmem:[%s4543_s10 + $0x2b8] sm:$0xff]  ;;  %v3273_v35 = vld [vmem:[%s4543_s10 + $0x390] sm:$0xff] }
 0x514   :  { %2907 = vmatpush.msra.mxu3 %v2785_v34  ;;  %2870 = vmatpush.msrb.mxu1 %v3208_v24  ;;  %v3245_v34 = vld [vmem:[%s4543_s10 + $0x2b0] sm:$0xff]  ;;  %v3271_v24 = vld [vmem:[%s4543_s10 + $0x380] sm:$0xff] }
 0x516   :  { %2871 = vmatpush.msrb.mxu1 %v3207_v14  ;;  %v2755_v14 = vld [vmem:[#allocation16] sm:$0x3] }
 0x542   :  { %v2460_v12 = vpop.f32.mrf.mxu0 }
 0x548   :  { %v4140_v36 = vpop.f32.mrf.mxu2 }
 0x550   :  { %v2500_v2 = vpop.f32.mrf.mxu2 }
 0x552   :  { %v2480_v40 = vpop.f32.mrf.mxu1 }
 0x558   :  { %v2440_v18 = vpop.f32.mrf.mxu3 }
 0x559   :  { %v2441_v62 = vadd.f32 %v2440_v18, %v4140_v36  ;;  %v2585_v57 = vpop.f32.mrf.mxu2  ;;  %v2784_v36 = vld [vmem:[%s4543_s10 + $0x98] sm:$0xff]  ;;  %v3263_v18 = vld [vmem:[%s4543_s10 + $0x340] sm:$0xff] }
 0x55a   :  { %2689 = vmatmul.f32.vlgmr.msra.gmra.mxu0 %v2585_v57  ;;  %2729 = vmatmul.f32.vlgmr.msra.gmra.mxu2 %v2585_v57  ;;  %v3262_v57 = vld [vmem:[%s4543_s10 + $0x338] sm:$0xff] }
 0x55b   :  { %v2501_v6 = vadd.f32 %v2500_v2, %v2441_v62  ;;  %2908 = vmatpush.msra.mxu3 %v2784_v36  ;;  %3031 = vmatpush.msra.mxu2 %v3270_v41  ;;  %v3254_v2 = vld [vmem:[%s4543_s10 + $0x2f8] sm:$0xff]  ;;  %v3244_v36 = vld [vmem:[%s4543_s10 + $0x2a8] sm:$0xff]  ;;  %v3223_v41 = vld [vmem:[%s4543_s10 + $0x200] sm:$0xff] }
 0x55c   :  { %2953 = vmatpush.msra.mxu0 %v3238_v51  ;;  %v3250_v62 = vld [vmem:[%s4543_s10 + $0x2d8] sm:$0xff] }
 0x55d   :  { %2909 = vmatpush.msra.mxu3 %v2783_v58  ;;  %3032 = vmatpush.msra.mxu2 %v3269_v0  ;;  %v3224_v58 = vld [vmem:[%s4543_s10 + $0x208] sm:$0xff]  ;;  %v3242_v51 = vld [vmem:[%s4543_s10 + $0x298] sm:$0xff] }
 0x55e   :  { %2954 = vmatpush.msra.mxu0 %v3237_v20  ;;  %v3272_v0 = vld [vmem:[%s4543_s10 + $0x388] sm:$0xff] }
 0x55f   :  { %2910 = vmatpush.msra.mxu3 %v2782_v23  ;;  %3033 = vmatpush.msra.mxu2 %v3268_v55  ;;  %v3241_v23 = vld [vmem:[%s4543_s10 + $0x290] sm:$0xff]  ;;  %v3240_v20 = vld [vmem:[%s4543_s10 + $0x288] sm:$0xff]  ;;  %v3239_v55 = vld [vmem:[%s4543_s10 + $0x280] sm:$0xff] }
 0x560   :  { %v2520_v63 = vpop.f32.mrf.mxu3  ;;  %2955 = vmatpush.msra.mxu0 %v3236_v56  ;;  %v2560_v56 = vpop.f32.mrf.mxu1 }
 0x561   :  { %v4284_v61 = vadd.f32 %v2520_v63, %v2501_v6  ;;  %2911 = vmatpush.msra.mxu3 %v2781_v47  ;;  %3034 = vmatpush.msra.mxu2 %v3267_v1  ;;  %v3280_v6 = vld [vmem:[%s4543_s10 + $0x3c8] sm:$0xff]  ;;  %v3258_v63 = vld [vmem:[%s4543_s10 + $0x318] sm:$0xff]  ;;  %v2540_v47 = vpop.f32.mrf.mxu0 }
 0x562   :  { %2956 = vmatpush.msra.mxu0 %v3235_v50  ;;  %v2481_v50 = vadd.f32 %v2480_v40, %v2460_v12 }
 0x563   :  { %3035 = vmatpush.msra.mxu2 %v3266_v3 }
 0x564   :  { %2957 = vmatpush.msra.mxu0 %v3234_v4 }
 0x565   :  { %3036 = vmatpush.msra.mxu2 %v3265_v16 }
 0x566   :  { %2958 = vmatpush.msra.mxu0 %v3233_v5 }
 0x567   :  { %3037 = vmatpush.msra.mxu2 %v3264_v53  ;;  %v2758_v53 = vperm.slane %v2755_v14, 1 }
 0x568   :  { %v2605_v44 = vpop.f32.mrf.mxu3  ;;  %2959 = vmatpush.msra.mxu0 %v3232_v60 }
 0x569   :  { %2709 = vmatmul.f32.vlgmr.msra.gmra.mxu1 %v2605_v44  ;;  %2749 = vmatmul.f32.vlgmr.msrb.gmra.mxu3 %v2605_v44  ;;  %v3274_v44 = vld [vmem:[%s4543_s10 + $0x398] sm:$0xff]  ;;  %s3599_s10 = smov [#allocation19]  }
 0x56a   :  { %3051 = vmatpush.msrb.mxu3 %v3286_v54  ;;  %2973 = vmatpush.msra.mxu1 %v3254_v2  ;;  %s3084_s20 = sshll.u32 %s3599_s10, 4  ;;  %s3085_s20 = int_to_ptr.vmem [resolvable:$true] %s3084_s20 }
 0x56b   :  { %3038 = vmatpush.msra.mxu2 %v3263_v18  ;;  %2960 = vmatpush.msra.mxu0 %v3231_v17 }
 0x56c   :  { %3052 = vmatpush.msrb.mxu3 %v3285_v49  ;;  %2974 = vmatpush.msra.mxu1 %v3253_v8  ;;  %v2757_v49 = vperm.slane %v2755_v14, 0  ;;  %v2541_v8 = vadd.f32 %v2540_v47, %v2481_v50 }
 0x56d   :  { %3039 = vmatpush.msra.mxu2 %v3262_v57  ;;  %2961 = vmatpush.msra.mxu0 %v3230_v10 }
 0x56e   :  { %3053 = vmatpush.msrb.mxu3 %v3284_v43  ;;  %2975 = vmatpush.msra.mxu1 %v3252_v28  ;;  %v2561_v5 = vadd.f32 %v2560_v56, %v2541_v8 }
 0x56f   :  { %3040 = vmatpush.msra.mxu2 %v3261_v52  ;;  %2962 = vmatpush.msra.mxu0 %v3229_v22 }
 0x570   :  { %3054 = vmatpush.msrb.mxu3 %v3283_v7  ;;  %2976 = vmatpush.msra.mxu1 %v3251_v25 }
 0x571   :  { %3041 = vmatpush.msra.mxu2 %v3260_v13  ;;  %2963 = vmatpush.msra.mxu0 %v3228_v30 }
 0x572   :  { %3055 = vmatpush.msrb.mxu3 %v3282_v59  ;;  %2977 = vmatpush.msra.mxu1 %v3250_v62 }
 0x573   :  { %3042 = vmatpush.msra.mxu2 %v3259_v38  ;;  %2964 = vmatpush.msra.mxu0 %v3227_v29 }
 0x574   :  { %3056 = vmatpush.msrb.mxu3 %v3281_v32  ;;  %2978 = vmatpush.msra.mxu1 %v3249_v21 }
 0x575   :  { %3043 = vmatpush.msra.mxu2 %v3258_v63  ;;  %2965 = vmatpush.msra.mxu0 %v3226_v19  ;;  %v3304_v63 = vld [vmem:[#allocation17] ss:$0 sm:$0xff] }
 0x576   :  { %3057 = vmatpush.msrb.mxu3 %v3280_v6  ;;  %2979 = vmatpush.msra.mxu1 %v3248_v31 }
 0x577   :  { %3044 = vmatpush.msra.mxu2 %v3257_v26  ;;  %2966 = vmatpush.msra.mxu0 %v3225_v27 }
 0x578   :  { %3058 = vmatpush.msrb.mxu3 %v3279_v48  ;;  %2980 = vmatpush.msra.mxu1 %v3247_v37 }
 0x579   :  { %3045 = vmatpush.msra.mxu2 %v3256_v11  ;;  %2967 = vmatpush.msra.mxu0 %v3224_v58 }
 0x57a   :  { %3059 = vmatpush.msrb.mxu3 %v3278_v15  ;;  %2981 = vmatpush.msra.mxu1 %v3246_v9 }
 0x57b   :  { %3046 = vmatpush.msra.mxu2 %v3255_v46  ;;  %2968 = vmatpush.msra.mxu0 %v3223_v41 }
 0x57c   :  { %3060 = vmatpush.msrb.mxu3 %v3277_v33  ;;  %2982 = vmatpush.msra.mxu1 %v3245_v34 }
 0x57e   :  { %3061 = vmatpush.msrb.mxu3 %v3276_v42  ;;  %2983 = vmatpush.msra.mxu1 %v3244_v36 }
 0x580   :  { %3062 = vmatpush.msrb.mxu3 %v3275_v39  ;;  %2984 = vmatpush.msra.mxu1 %v3243_v45 }
 0x582   :  { %3063 = vmatpush.msrb.mxu3 %v3274_v44  ;;  %2985 = vmatpush.msra.mxu1 %v3242_v51 }
 0x584   :  { %3064 = vmatpush.msrb.mxu3 %v3273_v35  ;;  %2986 = vmatpush.msra.mxu1 %v3241_v23 }
 0x586   :  { %3065 = vmatpush.msrb.mxu3 %v3272_v0  ;;  %2987 = vmatpush.msra.mxu1 %v3240_v20 }
 0x588   :  { %3066 = vmatpush.msrb.mxu3 %v3271_v24  ;;  %2988 = vmatpush.msra.mxu1 %v3239_v55 }
 0x5d7   :  { %v2690_v54 = vpop.f32.mrf.mxu0 }
 0x5dd   :  { %v2730_v4 = vpop.f32.mrf.mxu2 }
 0x5e6   :  { %v2710_v1 = vpop.f32.mrf.mxu1 }
 0x5e7   :  { %v2711_v2 = vadd.f32 %v2710_v1, %v2690_v54 }
 0x5e9   :  { %v2753_v3 = vadd.f32 %v2711_v2, %v4284_v61 }
 0x5eb   :  { %v2761_v43 = vadd.f32 %v2757_v49, %v2753_v3 }
 0x5ec   :  { %v2750_v16 = vpop.f32.mrf.mxu3 }
 0x5ed   :  { %v2763_v28 = vmax.f32 %v2761_v43, 0.0  ;;  %v2751_v7 = vadd.f32 %v2750_v16, %v2730_v4 }
 0x5ef   :  { %v2754_v60 = vadd.f32 %v2751_v7, %v2561_v5  ;;  %2892 = vmatmul.f32.vlgmr.msrb.gmra.mxu2 %v2763_v28  ;;  %v2832_v25 = vrot.slane %v2763_v28, 2  ;;  %v3027_v62 = vrot.slane %v2763_v28, 6  ;;  %v2949_v61 = vrot.slane %v2763_v28, 4 }
 0x5f1   :  { %v2762_v18 = vadd.f32 %v2758_v53, %v2754_v60  ;;  %2852 = vmatmul.f32.vlgmr.msrb.gmra.mxu0 %v2832_v25 }
 0x5f3   :  { %v2764_v59 = vmax.f32 %v2762_v18, 0.0 }
 0x5f5   :  { %2912 = vmatmul.f32.vlgmr.msra.gmra.mxu3 %v2764_v59  ;;  %v2833_v17 = vrot.slane %v2764_v59, 2  ;;  %v3028_v57 = vrot.slane %v2764_v59, 6  ;;  %v2950_v32 = vrot.slane %v2764_v59, 4 }
 0x5f7   :  { %2872 = vmatmul.f32.vlgmr.msrb.gmra.mxu1 %v2833_v17  ;;  %3047 = vmatmul.f32.vlgmr.msra.gmra.mxu2 %v3027_v62 }
 0x5f9   :  { %2969 = vmatmul.f32.vlgmr.msra.gmra.mxu0 %v2949_v61 }
 0x5fd   :  { %3067 = vmatmul.f32.vlgmr.msrb.gmra.mxu3 %v3028_v57 }
 0x5ff   :  { %2989 = vmatmul.f32.vlgmr.msra.gmra.mxu1 %v2950_v32 }
 0x66e   :  { %v2853_v10 = vpop.f32.mrf.mxu0 }
 0x672   :  { %v2893_v52 = vpop.f32.mrf.mxu2 }
 0x674   :  { %v2873_v21 = vpop.f32.mrf.mxu1 }
 0x675   :  { %v2874_v6 = vadd.f32 %v2873_v21, %v2853_v10 }
 0x676   :  { %v2970_v13 = vpop.f32.mrf.mxu0 }
 0x677   :  { %v2894_v31 = vadd.f32 %v2893_v52, %v2874_v6 }
 0x678   :  { %v2913_v22 = vpop.f32.mrf.mxu3 }
 0x679   :  { %v2914_v37 = vadd.f32 %v2913_v22, %v2894_v31 }
 0x67a   :  { %v3048_v38 = vpop.f32.mrf.mxu2 }
 0x67c   :  { %v2990_v48 = vpop.f32.mrf.mxu1 }
 0x67d   :  { %v2991_v30 = vadd.f32 %v2990_v48, %v2970_v13 }
 0x67f   :  { %v2993_v29 = vadd.f32 %v2991_v30, %v2914_v37 }
 0x680   :  { %v3068_v15 = vpop.f32.mrf.mxu3 }
 0x681   :  { %v3069_v9 = vadd.f32 %v3068_v15, %v3048_v38 }
 0x683   :  { %v3071_v33 = vadd.f32 %v3069_v9, %v2993_v29 }
 0x685   :  { %v3076_v12 = vadd.f32 %v3304_v63, %v3071_v33 }
 0x687   :  { %3078 = vst.msk [vmem:[#allocation19] sm:$0x3] %vm3077_vm4, %v3076_v12 }
 0x688   :  { %3089 = dma.vmem_to_hbm [thread:$0]  %s3085_s20, 32, %s3087_s4, [#allocation4]  }
 0x689   :  { %3581 = dma.done.wait [#allocation4], 32  }
 0x68a   :  { %3582 = vsyncadd [#allocation4], 4294967264 }
 0x68b   :  { %3094 = vsyncpa [#allocation3], 1 }
 0x68c   :  { %3095 = vsyncpa [#allocation6], 1 }
 0x68d   :  { %3096 = vsyncpa [#allocation9], 1 }
 0x68e   :  { %3097 = vsyncpa [#allocation12], 1 }
 0x68f   :  { %3098 = vsyncpa [#allocation15], 1 }
 0x690   :  { %3099 = vsyncpa [#allocation18], 1 }
 0x691   :  { %3100 = vsyncpa [#allocation4], 1 }

</bundles_post_ra>
